<compile_context>
chip_gen: v7x
topology: tpu7x:2x2x1
jax: 0.10.0
libtpu: 0.0.40
codegen_flags: <defaults>
</compile_context>

<pallas_src>
import jax
import jax.numpy as jnp
import numpy as np
from jax.experimental import pallas as pl
from jax.experimental.pallas import tpu as pltpu

C_EEG = 22     # conv1 kernel height == number of EEG electrodes
C1 = 22        # conv1 output channels
C2 = 20        # conv2 output channels
KW = 12        # conv2 temporal kernel width
PADW = 6       # conv2 padding along time
POOL_W = 62    # AvgPool window
POOL_S = 12    # AvgPool stride
N_CLS = 4      # classifier outputs


def sccnet_kernel(x_ref, w1_ref, t1_ref, w2_ref, t2_ref, pool_ref, wc_ref,
                  bc_ref, out_ref, im2row_ref):
    Bb, _, T = x_ref.shape
    T1 = T + 1
    zpad = jnp.zeros((C1, PADW), jnp.bfloat16)

    rows = []
    for b in range(Bb):                                   # unrolled block-batch loop
        # conv1 (+ folded BN1): 22x22 matmul on the MXU, bf16 operands, f32 acc.
        y1 = jnp.dot(w1_ref[...], x_ref[b],
                     preferred_element_type=jnp.float32) + t1_ref[...]   # (22, T)

        # im2row for conv2: slab k holds y1 zero-padded by 6 and shifted by k.
        # Padding is a 6-column value concat (no scratch re-zero, no big
        # unaligned padded store); slabs fully overwrite the scratch each sample.
        ypad = jnp.concatenate([zpad, y1.astype(jnp.bfloat16), zpad], axis=1)
        for k in range(KW):
            im2row_ref[k * C1:(k + 1) * C1, :] = ypad[:, k:k + T1]

        # conv2 (+ folded BN2): single (20,264)@(264,T1) MXU matmul.
        y2 = jnp.dot(w2_ref[...], im2row_ref[...],
                     preferred_element_type=jnp.float32) + t2_ref[...]   # (20, T1)

        # square (Dropout == identity in eval), AvgPool(1,62; stride 12) as matmul.
        sq = y2 * y2
        pooled = jnp.dot(sq, pool_ref[...],
                         preferred_element_type=jnp.float32)             # (20, 42)
        logf = jnp.log(pooled)

        # classifier Linear(840,4) as a pure-VPU contraction: out[j] = sum(L*Wc[j]).
        cls = []
        for j in range(N_CLS):
            pj = logf * wc_ref[j]                                        # (20, 42)
            sj = jnp.sum(jnp.sum(pj, axis=1, keepdims=True),
                         axis=0, keepdims=True)                          # (1, 1)
            cls.append(sj)
        rows.append(jnp.concatenate(cls, axis=1))                        # (1, 4)

    out_ref[...] = jnp.concatenate(rows, axis=0) + bc_ref[...]           # (Bb, 4)


def sccnet_forward(x, params):
    """x: (B, 1, 22, T) float32 NCHW.  Returns logits (B, 4)."""
    w1, b1, s1, t1, w2, b2, s2, t2, wc_full, bc = params
    B, _, C, T = x.shape
    T1 = T + 1
    W_out = (T1 - POOL_W) // POOL_S + 1
    assert C == C_EEG and C2 * W_out == 840, "shapes must match Linear(840, 4)"

    # Host-side param prep: fold conv bias + BN (eval running stats) into the
    # conv weights/shifts, and cast MXU operands to bf16 (f32 accumulation).
    w1f = (s1 * w1).astype(jnp.bfloat16)                              # (22, 22)
    t1f = (t1 + s1 * b1).astype(jnp.float32)                          # (22, 1)
    w2cat = (jnp.transpose(s2[None] * w2, (1, 0, 2))
             .reshape(C2, KW * C1).astype(jnp.bfloat16))              # (20, 264), col = k*22+c
    t2f = (t2 + s2 * b2).astype(jnp.float32)                          # (20, 1)
    wcT = wc_full.reshape(N_CLS, C2, W_out).astype(jnp.float32)       # (4, 20, 42)

    # pooling matrix: pooled = sq @ P,  P[t, w] = 1/62 if w*12 <= t < w*12+62
    tt = jnp.arange(T1, dtype=jnp.int32)[:, None]
    ws = jnp.arange(W_out, dtype=jnp.int32)[None, :] * POOL_S
    P = ((tt >= ws) & (tt < ws + POOL_W)).astype(jnp.float32) / float(POOL_W)

    xb = x[:, 0, :, :].astype(jnp.bfloat16)                           # (B, 22, T)

    # block batch: Bb samples per grid step (amortizes per-step pipeline/DMA
    # overhead).  Bb must be the full batch or a multiple of 8 (output tiling).
    Bb = B if (B <= 8 or B % 8 != 0) else 8
    assert B % Bb == 0

    def full(a):
        return pl.BlockSpec(a.shape, lambda i, n=a.ndim: (0,) * n)

    out = pl.pallas_call(
        sccnet_kernel,
        out_shape=jax.ShapeDtypeStruct((B, N_CLS), jnp.float32),
        grid_spec=pltpu.PrefetchScalarGridSpec(
            num_scalar_prefetch=0,
            grid=(B // Bb,),
            in_specs=[
                pl.BlockSpec((Bb, C_EEG, T), lambda i: (i, 0, 0)),
                full(w1f), full(t1f), full(w2cat), full(t2f),
                full(P), full(wcT), full(bc),
            ],
            out_specs=pl.BlockSpec((Bb, N_CLS), lambda i: (i, 0)),
            scratch_shapes=[pltpu.VMEM((KW * C1, T1), jnp.bfloat16)],
        ),
        compiler_params=pltpu.CompilerParams(
            dimension_semantics=("parallel",)),   # batch steps are independent (v7x: 2 TCs)
    )(xb, w1f, t1f, w2cat, t2f, P, wcT, bc)
    return out


def sccnet_reference(x, params):
    """Plain-JAX f32 reference of the same eval-mode forward (for verification)."""
    w1, b1, s1, t1, w2, b2, s2, t2, wc_full, bc = params
    B, _, _, T = x.shape
    T1 = T + 1
    x2 = x[:, 0]
    y1 = jnp.einsum('ch,bht->bct', w1, x2) + b1[None]
    y1 = y1 * s1[None] + t1[None]
    y1p = jnp.pad(y1, ((0, 0), (0, 0), (PADW, PADW)))
    y2 = jnp.zeros((B, C2, T1), jnp.float32)
    for k in range(KW):
        y2 = y2 + jnp.einsum('oc,bct->bot', w2[k], y1p[:, :, k:k + T1])
    y2 = (y2 + b2[None]) * s2[None] + t2[None]
    sq = y2 ** 2
    W_out = (T1 - POOL_W) // POOL_S + 1
    pooled = jnp.stack(
        [sq[:, :, w * POOL_S:w * POOL_S + POOL_W].mean(axis=-1) for w in range(W_out)],
        axis=-1)
    L = jnp.log(pooled)
    return L.reshape(B, C2 * W_out) @ wc_full.T + bc


if __name__ == "__main__":
    key = jax.random.PRNGKey(0)
    keys = jax.random.split(key, 16)
    B, T = 2, 562                           # T chosen so that 20 * 42 pooled bins = 840
    x = jax.random.normal(keys[0], (B, 1, C_EEG, T), dtype=jnp.float32)

    eps = 1e-5
    # conv1 + BN1 (eval: fold running stats + gamma/beta into scale/shift)
    w1 = 0.2 * jax.random.normal(keys[1], (C1, C_EEG), jnp.float32)
    b1 = 0.1 * jax.random.normal(keys[2], (C1, 1), jnp.float32)
    g1 = 1.0 + 0.2 * jax.random.normal(keys[3], (C1, 1), jnp.float32)
    be1 = 0.1 * jax.random.normal(keys[4], (C1, 1), jnp.float32)
    rm1 = 0.1 * jax.random.normal(keys[5], (C1, 1), jnp.float32)
    rv1 = 1.0 + 0.3 * jax.random.uniform(keys[6], (C1, 1), jnp.float32)
    s1 = g1 / jnp.sqrt(rv1 + eps)
    t1 = be1 - rm1 * s1

    # conv2 (stored as (KW, out, in) = torch weight (20,22,1,12) permuted) + BN2
    w2 = 0.1 * jax.random.normal(keys[7], (KW, C2, C1), jnp.float32)
    b2 = 0.1 * jax.random.normal(keys[8], (C2, 1), jnp.float32)
    g2 = 1.0 + 0.2 * jax.random.normal(keys[9], (C2, 1), jnp.float32)
    be2 = 0.1 * jax.random.normal(keys[10], (C2, 1), jnp.float32)
    rm2 = 0.1 * jax.random.normal(keys[11], (C2, 1), jnp.float32)
    rv2 = 1.0 + 0.3 * jax.random.uniform(keys[12], (C2, 1), jnp.float32)
    s2 = g2 / jnp.sqrt(rv2 + eps)
    t2 = be2 - rm2 * s2

    # classifier Linear(840, 4): torch weight (4, 840); feature index = o*42 + w
    wc_full = 0.05 * jax.random.normal(keys[13], (N_CLS, 840), jnp.float32)
    bc = 0.1 * jax.random.normal(keys[14], (1, N_CLS), jnp.float32)

    params = (w1, b1, s1, t1, w2, b2, s2, t2, wc_full, bc)

    out = jax.block_until_ready(sccnet_forward(x, params))
    ref = jax.block_until_ready(sccnet_reference(x, params))

    assert out.shape == (B, N_CLS)
    assert bool(jnp.all(jnp.isfinite(out)))
    # bf16 MXU operands with f32 accumulation -> compare against f32 reference.
    np.testing.assert_allclose(np.asarray(out), np.asarray(ref), rtol=5e-2, atol=5e-2)
    print("KERNEL_OK")
</pallas_src>

<mosaic_0001>
module attributes {stable_mosaic.version = 11 : i64} {
  func.func @sccnet_kernel(%arg0: i32, %arg1: memref<2x22x562xbf16, #tpu.memory_space<vmem>>, %arg2: memref<22x22xbf16, #tpu.memory_space<vmem>>, %arg3: memref<22x1xf32, #tpu.memory_space<vmem>>, %arg4: memref<20x264xbf16, #tpu.memory_space<vmem>>, %arg5: memref<20x1xf32, #tpu.memory_space<vmem>>, %arg6: memref<563x42xf32, #tpu.memory_space<vmem>>, %arg7: memref<4x20x42xf32, #tpu.memory_space<vmem>>, %arg8: memref<1x4xf32, #tpu.memory_space<vmem>>, %arg9: memref<2x4xf32, #tpu.memory_space<vmem>>, %arg10: memref<264x563xbf16, #tpu.memory_space<vmem>>) attributes {dimension_semantics = [#tpu.dimension_semantics<parallel>], iteration_bounds = array<i64: 1>, scalar_prefetch = 0 : i64, scratch_operands = 1 : i64, tpu.core_type = #tpu.core_type<tc>, window_params = [{transform_indices = @transform_0, window_bounds = array<i64: 2, 22, 562>}, {pipeline_mode = #tpu.pipeline_mode<synchronous>, transform_indices = @transform_1, window_bounds = array<i64: 22, 22>}, {pipeline_mode = #tpu.pipeline_mode<synchronous>, transform_indices = @transform_2, window_bounds = array<i64: 22, 1>}, {pipeline_mode = #tpu.pipeline_mode<synchronous>, transform_indices = @transform_3, window_bounds = array<i64: 20, 264>}, {pipeline_mode = #tpu.pipeline_mode<synchronous>, transform_indices = @transform_4, window_bounds = array<i64: 20, 1>}, {pipeline_mode = #tpu.pipeline_mode<synchronous>, transform_indices = @transform_5, window_bounds = array<i64: 563, 42>}, {pipeline_mode = #tpu.pipeline_mode<synchronous>, transform_indices = @transform_6, window_bounds = array<i64: 4, 20, 42>}, {pipeline_mode = #tpu.pipeline_mode<synchronous>, transform_indices = @transform_7, window_bounds = array<i64: 1, 4>}, {transform_indices = @transform_8, window_bounds = array<i64: 2, 4>}]} {
    %cst = arith.constant 0.000000e+00 : bf16
    %0 = vector.broadcast %cst : bf16 to vector<22x6xbf16>
    %c0 = arith.constant 0 : index
    %c0_0 = arith.constant 0 : index
    %1 = vector.load %arg2[%c0, %c0_0] : memref<22x22xbf16, #tpu.memory_space<vmem>>, vector<22x22xbf16>
    %c0_1 = arith.constant 0 : index
    %c0_2 = arith.constant 0 : index
    %c0_3 = arith.constant 0 : index
    %2 = vector.load %arg1[%c0_1, %c0_2, %c0_3] : memref<2x22x562xbf16, #tpu.memory_space<vmem>>, vector<1x22x562xbf16>
    %3 = vector.shape_cast %2 : vector<1x22x562xbf16> to vector<22x562xbf16>
    %cst_4 = arith.constant dense<0.000000e+00> : vector<22x562xf32>
    %4 = tpu.matmul %1, %3, %cst_4 {dimension_numbers = #tpu.dot_dimension_numbers<[1], [0], [0], [1], [0, 0, 1, 1], [], []>} : vector<22x22xbf16>, vector<22x562xbf16>, vector<22x562xf32> -> vector<22x562xf32>
    %c0_5 = arith.constant 0 : index
    %c0_6 = arith.constant 0 : index
    %5 = vector.load %arg3[%c0_5, %c0_6] : memref<22x1xf32, #tpu.memory_space<vmem>>, vector<22x1xf32>
    %6 = vector.broadcast %5 : vector<22x1xf32> to vector<22x562xf32>
    %7 = arith.addf %4, %6 : vector<22x562xf32>
    %8 = arith.truncf %7 : vector<22x562xf32> to vector<22x562xbf16>
    %9 = tpu.concatenate %0, %8, %0 in 1 : vector<22x6xbf16>, vector<22x562xbf16>, vector<22x6xbf16> -> vector<22x574xbf16>
    %10 = vector.extract_strided_slice %9 {offsets = [0, 0], sizes = [22, 563], strides = [1, 1]} : vector<22x574xbf16> to vector<22x563xbf16>
    %c0_7 = arith.constant 0 : index
    %c0_8 = arith.constant 0 : index
    %11 = vector.load %arg10[%c0_7, %c0_8] : memref<264x563xbf16, #tpu.memory_space<vmem>>, vector<22x563xbf16>
    tpu.vector_store %arg10[%c0_7, %c0_8], %10 {strides = array<i32>} : memref<264x563xbf16, #tpu.memory_space<vmem>>, vector<22x563xbf16>,
    %12 = vector.extract_strided_slice %9 {offsets = [0, 1], sizes = [22, 563], strides = [1, 1]} : vector<22x574xbf16> to vector<22x563xbf16>
    %c22 = arith.constant 22 : index
    %c0_9 = arith.constant 0 : index
    %13 = vector.load %arg10[%c22, %c0_9] : memref<264x563xbf16, #tpu.memory_space<vmem>>, vector<22x563xbf16>
    tpu.vector_store %arg10[%c22, %c0_9], %12 {strides = array<i32>} : memref<264x563xbf16, #tpu.memory_space<vmem>>, vector<22x563xbf16>,
    %14 = vector.extract_strided_slice %9 {offsets = [0, 2], sizes = [22, 563], strides = [1, 1]} : vector<22x574xbf16> to vector<22x563xbf16>
    %c44 = arith.constant 44 : index
    %c0_10 = arith.constant 0 : index
    %15 = vector.load %arg10[%c44, %c0_10] : memref<264x563xbf16, #tpu.memory_space<vmem>>, vector<22x563xbf16>
    tpu.vector_store %arg10[%c44, %c0_10], %14 {strides = array<i32>} : memref<264x563xbf16, #tpu.memory_space<vmem>>, vector<22x563xbf16>,
    %16 = vector.extract_strided_slice %9 {offsets = [0, 3], sizes = [22, 563], strides = [1, 1]} : vector<22x574xbf16> to vector<22x563xbf16>
    %c66 = arith.constant 66 : index
    %c0_11 = arith.constant 0 : index
    %17 = vector.load %arg10[%c66, %c0_11] : memref<264x563xbf16, #tpu.memory_space<vmem>>, vector<22x563xbf16>
    tpu.vector_store %arg10[%c66, %c0_11], %16 {strides = array<i32>} : memref<264x563xbf16, #tpu.memory_space<vmem>>, vector<22x563xbf16>,
    %18 = vector.extract_strided_slice %9 {offsets = [0, 4], sizes = [22, 563], strides = [1, 1]} : vector<22x574xbf16> to vector<22x563xbf16>
    %c88 = arith.constant 88 : index
    %c0_12 = arith.constant 0 : index
    %19 = vector.load %arg10[%c88, %c0_12] : memref<264x563xbf16, #tpu.memory_space<vmem>>, vector<22x563xbf16>
    tpu.vector_store %arg10[%c88, %c0_12], %18 {strides = array<i32>} : memref<264x563xbf16, #tpu.memory_space<vmem>>, vector<22x563xbf16>,
    %20 = vector.extract_strided_slice %9 {offsets = [0, 5], sizes = [22, 563], strides = [1, 1]} : vector<22x574xbf16> to vector<22x563xbf16>
    %c110 = arith.constant 110 : index
    %c0_13 = arith.constant 0 : index
    %21 = vector.load %arg10[%c110, %c0_13] : memref<264x563xbf16, #tpu.memory_space<vmem>>, vector<22x563xbf16>
    tpu.vector_store %arg10[%c110, %c0_13], %20 {strides = array<i32>} : memref<264x563xbf16, #tpu.memory_space<vmem>>, vector<22x563xbf16>,
    %22 = vector.extract_strided_slice %9 {offsets = [0, 6], sizes = [22, 563], strides = [1, 1]} : vector<22x574xbf16> to vector<22x563xbf16>
    %c132 = arith.constant 132 : index
    %c0_14 = arith.constant 0 : index
    %23 = vector.load %arg10[%c132, %c0_14] : memref<264x563xbf16, #tpu.memory_space<vmem>>, vector<22x563xbf16>
    tpu.vector_store %arg10[%c132, %c0_14], %22 {strides = array<i32>} : memref<264x563xbf16, #tpu.memory_space<vmem>>, vector<22x563xbf16>,
    %24 = vector.extract_strided_slice %9 {offsets = [0, 7], sizes = [22, 563], strides = [1, 1]} : vector<22x574xbf16> to vector<22x563xbf16>
    %c154 = arith.constant 154 : index
    %c0_15 = arith.constant 0 : index
    %25 = vector.load %arg10[%c154, %c0_15] : memref<264x563xbf16, #tpu.memory_space<vmem>>, vector<22x563xbf16>
    tpu.vector_store %arg10[%c154, %c0_15], %24 {strides = array<i32>} : memref<264x563xbf16, #tpu.memory_space<vmem>>, vector<22x563xbf16>,
    %26 = vector.extract_strided_slice %9 {offsets = [0, 8], sizes = [22, 563], strides = [1, 1]} : vector<22x574xbf16> to vector<22x563xbf16>
    %c176 = arith.constant 176 : index
    %c0_16 = arith.constant 0 : index
    %27 = vector.load %arg10[%c176, %c0_16] : memref<264x563xbf16, #tpu.memory_space<vmem>>, vector<22x563xbf16>
    tpu.vector_store %arg10[%c176, %c0_16], %26 {strides = array<i32>} : memref<264x563xbf16, #tpu.memory_space<vmem>>, vector<22x563xbf16>,
    %28 = vector.extract_strided_slice %9 {offsets = [0, 9], sizes = [22, 563], strides = [1, 1]} : vector<22x574xbf16> to vector<22x563xbf16>
    %c198 = arith.constant 198 : index
    %c0_17 = arith.constant 0 : index
    %29 = vector.load %arg10[%c198, %c0_17] : memref<264x563xbf16, #tpu.memory_space<vmem>>, vector<22x563xbf16>
    tpu.vector_store %arg10[%c198, %c0_17], %28 {strides = array<i32>} : memref<264x563xbf16, #tpu.memory_space<vmem>>, vector<22x563xbf16>,
    %30 = vector.extract_strided_slice %9 {offsets = [0, 10], sizes = [22, 563], strides = [1, 1]} : vector<22x574xbf16> to vector<22x563xbf16>
    %c220 = arith.constant 220 : index
    %c0_18 = arith.constant 0 : index
    %31 = vector.load %arg10[%c220, %c0_18] : memref<264x563xbf16, #tpu.memory_space<vmem>>, vector<22x563xbf16>
    tpu.vector_store %arg10[%c220, %c0_18], %30 {strides = array<i32>} : memref<264x563xbf16, #tpu.memory_space<vmem>>, vector<22x563xbf16>,
    %32 = vector.extract_strided_slice %9 {offsets = [0, 11], sizes = [22, 563], strides = [1, 1]} : vector<22x574xbf16> to vector<22x563xbf16>
    %c242 = arith.constant 242 : index
    %c0_19 = arith.constant 0 : index
    %33 = vector.load %arg10[%c242, %c0_19] : memref<264x563xbf16, #tpu.memory_space<vmem>>, vector<22x563xbf16>
    tpu.vector_store %arg10[%c242, %c0_19], %32 {strides = array<i32>} : memref<264x563xbf16, #tpu.memory_space<vmem>>, vector<22x563xbf16>,
    %c0_20 = arith.constant 0 : index
    %c0_21 = arith.constant 0 : index
    %34 = vector.load %arg4[%c0_20, %c0_21] : memref<20x264xbf16, #tpu.memory_space<vmem>>, vector<20x264xbf16>
    %c0_22 = arith.constant 0 : index
    %c0_23 = arith.constant 0 : index
    %35 = vector.load %arg10[%c0_22, %c0_23] : memref<264x563xbf16, #tpu.memory_space<vmem>>, vector<264x563xbf16>
    %cst_24 = arith.constant dense<0.000000e+00> : vector<20x563xf32>
    %36 = tpu.matmul %34, %35, %cst_24 {dimension_numbers = #tpu.dot_dimension_numbers<[1], [0], [0], [1], [0, 0, 1, 1], [], []>} : vector<20x264xbf16>, vector<264x563xbf16>, vector<20x563xf32> -> vector<20x563xf32>
    %c0_25 = arith.constant 0 : index
    %c0_26 = arith.constant 0 : index
    %37 = vector.load %arg5[%c0_25, %c0_26] : memref<20x1xf32, #tpu.memory_space<vmem>>, vector<20x1xf32>
    %38 = vector.broadcast %37 : vector<20x1xf32> to vector<20x563xf32>
    %39 = arith.addf %36, %38 : vector<20x563xf32>
    %40 = arith.mulf %39, %39 : vector<20x563xf32>
    %c0_27 = arith.constant 0 : index
    %c0_28 = arith.constant 0 : index
    %41 = vector.load %arg6[%c0_27, %c0_28] : memref<563x42xf32, #tpu.memory_space<vmem>>, vector<563x42xf32>
    %cst_29 = arith.constant dense<0.000000e+00> : vector<20x42xf32>
    %42 = tpu.matmul %40, %41, %cst_29 {dimension_numbers = #tpu.dot_dimension_numbers<[1], [0], [0], [1], [0, 0, 1, 1], [], []>} : vector<20x563xf32>, vector<563x42xf32>, vector<20x42xf32> -> vector<20x42xf32>
    %43 = math.log %42 : vector<20x42xf32>
    %c0_30 = arith.constant 0 : index
    %c0_31 = arith.constant 0 : index
    %c0_32 = arith.constant 0 : index
    %44 = vector.load %arg7[%c0_30, %c0_31, %c0_32] : memref<4x20x42xf32, #tpu.memory_space<vmem>>, vector<1x20x42xf32>
    %45 = vector.shape_cast %44 : vector<1x20x42xf32> to vector<20x42xf32>
    %46 = arith.mulf %43, %45 : vector<20x42xf32>
    %cst_33 = arith.constant dense<0.000000e+00> : vector<20xf32>
    %47 = vector.multi_reduction <add>, %46, %cst_33 [1] : vector<20x42xf32> to vector<20xf32>
    %48 = vector.shape_cast %47 : vector<20xf32> to vector<20x1xf32>
    %cst_34 = arith.constant dense<0.000000e+00> : vector<1xf32>
    %49 = vector.multi_reduction <add>, %48, %cst_34 [0] : vector<20x1xf32> to vector<1xf32>
    %50 = vector.shape_cast %49 : vector<1xf32> to vector<1x1xf32>
    %c1 = arith.constant 1 : index
    %c0_35 = arith.constant 0 : index
    %c0_36 = arith.constant 0 : index
    %51 = vector.load %arg7[%c1, %c0_35, %c0_36] : memref<4x20x42xf32, #tpu.memory_space<vmem>>, vector<1x20x42xf32>
    %52 = vector.shape_cast %51 : vector<1x20x42xf32> to vector<20x42xf32>
    %53 = arith.mulf %43, %52 : vector<20x42xf32>
    %cst_37 = arith.constant dense<0.000000e+00> : vector<20xf32>
    %54 = vector.multi_reduction <add>, %53, %cst_37 [1] : vector<20x42xf32> to vector<20xf32>
    %55 = vector.shape_cast %54 : vector<20xf32> to vector<20x1xf32>
    %cst_38 = arith.constant dense<0.000000e+00> : vector<1xf32>
    %56 = vector.multi_reduction <add>, %55, %cst_38 [0] : vector<20x1xf32> to vector<1xf32>
    %57 = vector.shape_cast %56 : vector<1xf32> to vector<1x1xf32>
    %c2 = arith.constant 2 : index
    %c0_39 = arith.constant 0 : index
    %c0_40 = arith.constant 0 : index
    %58 = vector.load %arg7[%c2, %c0_39, %c0_40] : memref<4x20x42xf32, #tpu.memory_space<vmem>>, vector<1x20x42xf32>
    %59 = vector.shape_cast %58 : vector<1x20x42xf32> to vector<20x42xf32>
    %60 = arith.mulf %43, %59 : vector<20x42xf32>
    %cst_41 = arith.constant dense<0.000000e+00> : vector<20xf32>
    %61 = vector.multi_reduction <add>, %60, %cst_41 [1] : vector<20x42xf32> to vector<20xf32>
    %62 = vector.shape_cast %61 : vector<20xf32> to vector<20x1xf32>
    %cst_42 = arith.constant dense<0.000000e+00> : vector<1xf32>
    %63 = vector.multi_reduction <add>, %62, %cst_42 [0] : vector<20x1xf32> to vector<1xf32>
    %64 = vector.shape_cast %63 : vector<1xf32> to vector<1x1xf32>
    %c3 = arith.constant 3 : index
    %c0_43 = arith.constant 0 : index
    %c0_44 = arith.constant 0 : index
    %65 = vector.load %arg7[%c3, %c0_43, %c0_44] : memref<4x20x42xf32, #tpu.memory_space<vmem>>, vector<1x20x42xf32>
    %66 = vector.shape_cast %65 : vector<1x20x42xf32> to vector<20x42xf32>
    %67 = arith.mulf %43, %66 : vector<20x42xf32>
    %cst_45 = arith.constant dense<0.000000e+00> : vector<20xf32>
    %68 = vector.multi_reduction <add>, %67, %cst_45 [1] : vector<20x42xf32> to vector<20xf32>
    %69 = vector.shape_cast %68 : vector<20xf32> to vector<20x1xf32>
    %cst_46 = arith.constant dense<0.000000e+00> : vector<1xf32>
    %70 = vector.multi_reduction <add>, %69, %cst_46 [0] : vector<20x1xf32> to vector<1xf32>
    %71 = vector.shape_cast %70 : vector<1xf32> to vector<1x1xf32>
    %72 = tpu.concatenate %50, %57, %64, %71 in 1 : vector<1x1xf32>, vector<1x1xf32>, vector<1x1xf32>, vector<1x1xf32> -> vector<1x4xf32>
    %c0_47 = arith.constant 0 : index
    %c0_48 = arith.constant 0 : index
    %73 = vector.load %arg2[%c0_47, %c0_48] : memref<22x22xbf16, #tpu.memory_space<vmem>>, vector<22x22xbf16>
    %c1_49 = arith.constant 1 : index
    %c0_50 = arith.constant 0 : index
    %c0_51 = arith.constant 0 : index
    %74 = vector.load %arg1[%c1_49, %c0_50, %c0_51] : memref<2x22x562xbf16, #tpu.memory_space<vmem>>, vector<1x22x562xbf16>
    %75 = vector.shape_cast %74 : vector<1x22x562xbf16> to vector<22x562xbf16>
    %cst_52 = arith.constant dense<0.000000e+00> : vector<22x562xf32>
    %76 = tpu.matmul %73, %75, %cst_52 {dimension_numbers = #tpu.dot_dimension_numbers<[1], [0], [0], [1], [0, 0, 1, 1], [], []>} : vector<22x22xbf16>, vector<22x562xbf16>, vector<22x562xf32> -> vector<22x562xf32>
    %c0_53 = arith.constant 0 : index
    %c0_54 = arith.constant 0 : index
    %77 = vector.load %arg3[%c0_53, %c0_54] : memref<22x1xf32, #tpu.memory_space<vmem>>, vector<22x1xf32>
    %78 = vector.broadcast %77 : vector<22x1xf32> to vector<22x562xf32>
    %79 = arith.addf %76, %78 : vector<22x562xf32>
    %80 = arith.truncf %79 : vector<22x562xf32> to vector<22x562xbf16>
    %81 = tpu.concatenate %0, %80, %0 in 1 : vector<22x6xbf16>, vector<22x562xbf16>, vector<22x6xbf16> -> vector<22x574xbf16>
    %82 = vector.extract_strided_slice %81 {offsets = [0, 0], sizes = [22, 563], strides = [1, 1]} : vector<22x574xbf16> to vector<22x563xbf16>
    %c0_55 = arith.constant 0 : index
    %c0_56 = arith.constant 0 : index
    %83 = vector.load %arg10[%c0_55, %c0_56] : memref<264x563xbf16, #tpu.memory_space<vmem>>, vector<22x563xbf16>
    tpu.vector_store %arg10[%c0_55, %c0_56], %82 {strides = array<i32>} : memref<264x563xbf16, #tpu.memory_space<vmem>>, vector<22x563xbf16>,
    %84 = vector.extract_strided_slice %81 {offsets = [0, 1], sizes = [22, 563], strides = [1, 1]} : vector<22x574xbf16> to vector<22x563xbf16>
    %c22_57 = arith.constant 22 : index
    %c0_58 = arith.constant 0 : index
    %85 = vector.load %arg10[%c22_57, %c0_58] : memref<264x563xbf16, #tpu.memory_space<vmem>>, vector<22x563xbf16>
    tpu.vector_store %arg10[%c22_57, %c0_58], %84 {strides = array<i32>} : memref<264x563xbf16, #tpu.memory_space<vmem>>, vector<22x563xbf16>,
    %86 = vector.extract_strided_slice %81 {offsets = [0, 2], sizes = [22, 563], strides = [1, 1]} : vector<22x574xbf16> to vector<22x563xbf16>
    %c44_59 = arith.constant 44 : index
    %c0_60 = arith.constant 0 : index
    %87 = vector.load %arg10[%c44_59, %c0_60] : memref<264x563xbf16, #tpu.memory_space<vmem>>, vector<22x563xbf16>
    tpu.vector_store %arg10[%c44_59, %c0_60], %86 {strides = array<i32>} : memref<264x563xbf16, #tpu.memory_space<vmem>>, vector<22x563xbf16>,
    %88 = vector.extract_strided_slice %81 {offsets = [0, 3], sizes = [22, 563], strides = [1, 1]} : vector<22x574xbf16> to vector<22x563xbf16>
    %c66_61 = arith.constant 66 : index
    %c0_62 = arith.constant 0 : index
    %89 = vector.load %arg10[%c66_61, %c0_62] : memref<264x563xbf16, #tpu.memory_space<vmem>>, vector<22x563xbf16>
    tpu.vector_store %arg10[%c66_61, %c0_62], %88 {strides = array<i32>} : memref<264x563xbf16, #tpu.memory_space<vmem>>, vector<22x563xbf16>,
    %90 = vector.extract_strided_slice %81 {offsets = [0, 4], sizes = [22, 563], strides = [1, 1]} : vector<22x574xbf16> to vector<22x563xbf16>
    %c88_63 = arith.constant 88 : index
    %c0_64 = arith.constant 0 : index
    %91 = vector.load %arg10[%c88_63, %c0_64] : memref<264x563xbf16, #tpu.memory_space<vmem>>, vector<22x563xbf16>
    tpu.vector_store %arg10[%c88_63, %c0_64], %90 {strides = array<i32>} : memref<264x563xbf16, #tpu.memory_space<vmem>>, vector<22x563xbf16>,
    %92 = vector.extract_strided_slice %81 {offsets = [0, 5], sizes = [22, 563], strides = [1, 1]} : vector<22x574xbf16> to vector<22x563xbf16>
    %c110_65 = arith.constant 110 : index
    %c0_66 = arith.constant 0 : index
    %93 = vector.load %arg10[%c110_65, %c0_66] : memref<264x563xbf16, #tpu.memory_space<vmem>>, vector<22x563xbf16>
    tpu.vector_store %arg10[%c110_65, %c0_66], %92 {strides = array<i32>} : memref<264x563xbf16, #tpu.memory_space<vmem>>, vector<22x563xbf16>,
    %94 = vector.extract_strided_slice %81 {offsets = [0, 6], sizes = [22, 563], strides = [1, 1]} : vector<22x574xbf16> to vector<22x563xbf16>
    %c132_67 = arith.constant 132 : index
    %c0_68 = arith.constant 0 : index
    %95 = vector.load %arg10[%c132_67, %c0_68] : memref<264x563xbf16, #tpu.memory_space<vmem>>, vector<22x563xbf16>
    tpu.vector_store %arg10[%c132_67, %c0_68], %94 {strides = array<i32>} : memref<264x563xbf16, #tpu.memory_space<vmem>>, vector<22x563xbf16>,
    %96 = vector.extract_strided_slice %81 {offsets = [0, 7], sizes = [22, 563], strides = [1, 1]} : vector<22x574xbf16> to vector<22x563xbf16>
    %c154_69 = arith.constant 154 : index
    %c0_70 = arith.constant 0 : index
    %97 = vector.load %arg10[%c154_69, %c0_70] : memref<264x563xbf16, #tpu.memory_space<vmem>>, vector<22x563xbf16>
    tpu.vector_store %arg10[%c154_69, %c0_70], %96 {strides = array<i32>} : memref<264x563xbf16, #tpu.memory_space<vmem>>, vector<22x563xbf16>,
    %98 = vector.extract_strided_slice %81 {offsets = [0, 8], sizes = [22, 563], strides = [1, 1]} : vector<22x574xbf16> to vector<22x563xbf16>
    %c176_71 = arith.constant 176 : index
    %c0_72 = arith.constant 0 : index
    %99 = vector.load %arg10[%c176_71, %c0_72] : memref<264x563xbf16, #tpu.memory_space<vmem>>, vector<22x563xbf16>
    tpu.vector_store %arg10[%c176_71, %c0_72], %98 {strides = array<i32>} : memref<264x563xbf16, #tpu.memory_space<vmem>>, vector<22x563xbf16>,
    %100 = vector.extract_strided_slice %81 {offsets = [0, 9], sizes = [22, 563], strides = [1, 1]} : vector<22x574xbf16> to vector<22x563xbf16>
    %c198_73 = arith.constant 198 : index
    %c0_74 = arith.constant 0 : index
    %101 = vector.load %arg10[%c198_73, %c0_74] : memref<264x563xbf16, #tpu.memory_space<vmem>>, vector<22x563xbf16>
    tpu.vector_store %arg10[%c198_73, %c0_74], %100 {strides = array<i32>} : memref<264x563xbf16, #tpu.memory_space<vmem>>, vector<22x563xbf16>,
    %102 = vector.extract_strided_slice %81 {offsets = [0, 10], sizes = [22, 563], strides = [1, 1]} : vector<22x574xbf16> to vector<22x563xbf16>
    %c220_75 = arith.constant 220 : index
    %c0_76 = arith.constant 0 : index
    %103 = vector.load %arg10[%c220_75, %c0_76] : memref<264x563xbf16, #tpu.memory_space<vmem>>, vector<22x563xbf16>
    tpu.vector_store %arg10[%c220_75, %c0_76], %102 {strides = array<i32>} : memref<264x563xbf16, #tpu.memory_space<vmem>>, vector<22x563xbf16>,
    %104 = vector.extract_strided_slice %81 {offsets = [0, 11], sizes = [22, 563], strides = [1, 1]} : vector<22x574xbf16> to vector<22x563xbf16>
    %c242_77 = arith.constant 242 : index
    %c0_78 = arith.constant 0 : index
    %105 = vector.load %arg10[%c242_77, %c0_78] : memref<264x563xbf16, #tpu.memory_space<vmem>>, vector<22x563xbf16>
    tpu.vector_store %arg10[%c242_77, %c0_78], %104 {strides = array<i32>} : memref<264x563xbf16, #tpu.memory_space<vmem>>, vector<22x563xbf16>,
    %c0_79 = arith.constant 0 : index
    %c0_80 = arith.constant 0 : index
    %106 = vector.load %arg4[%c0_79, %c0_80] : memref<20x264xbf16, #tpu.memory_space<vmem>>, vector<20x264xbf16>
    %c0_81 = arith.constant 0 : index
    %c0_82 = arith.constant 0 : index
    %107 = vector.load %arg10[%c0_81, %c0_82] : memref<264x563xbf16, #tpu.memory_space<vmem>>, vector<264x563xbf16>
    %cst_83 = arith.constant dense<0.000000e+00> : vector<20x563xf32>
    %108 = tpu.matmul %106, %107, %cst_83 {dimension_numbers = #tpu.dot_dimension_numbers<[1], [0], [0], [1], [0, 0, 1, 1], [], []>} : vector<20x264xbf16>, vector<264x563xbf16>, vector<20x563xf32> -> vector<20x563xf32>
    %c0_84 = arith.constant 0 : index
    %c0_85 = arith.constant 0 : index
    %109 = vector.load %arg5[%c0_84, %c0_85] : memref<20x1xf32, #tpu.memory_space<vmem>>, vector<20x1xf32>
    %110 = vector.broadcast %109 : vector<20x1xf32> to vector<20x563xf32>
    %111 = arith.addf %108, %110 : vector<20x563xf32>
    %112 = arith.mulf %111, %111 : vector<20x563xf32>
    %c0_86 = arith.constant 0 : index
    %c0_87 = arith.constant 0 : index
    %113 = vector.load %arg6[%c0_86, %c0_87] : memref<563x42xf32, #tpu.memory_space<vmem>>, vector<563x42xf32>
    %cst_88 = arith.constant dense<0.000000e+00> : vector<20x42xf32>
    %114 = tpu.matmul %112, %113, %cst_88 {dimension_numbers = #tpu.dot_dimension_numbers<[1], [0], [0], [1], [0, 0, 1, 1], [], []>} : vector<20x563xf32>, vector<563x42xf32>, vector<20x42xf32> -> vector<20x42xf32>
    %115 = math.log %114 : vector<20x42xf32>
    %c0_89 = arith.constant 0 : index
    %c0_90 = arith.constant 0 : index
    %c0_91 = arith.constant 0 : index
    %116 = vector.load %arg7[%c0_89, %c0_90, %c0_91] : memref<4x20x42xf32, #tpu.memory_space<vmem>>, vector<1x20x42xf32>
    %117 = vector.shape_cast %116 : vector<1x20x42xf32> to vector<20x42xf32>
    %118 = arith.mulf %115, %117 : vector<20x42xf32>
    %cst_92 = arith.constant dense<0.000000e+00> : vector<20xf32>
    %119 = vector.multi_reduction <add>, %118, %cst_92 [1] : vector<20x42xf32> to vector<20xf32>
    %120 = vector.shape_cast %119 : vector<20xf32> to vector<20x1xf32>
    %cst_93 = arith.constant dense<0.000000e+00> : vector<1xf32>
    %121 = vector.multi_reduction <add>, %120, %cst_93 [0] : vector<20x1xf32> to vector<1xf32>
    %122 = vector.shape_cast %121 : vector<1xf32> to vector<1x1xf32>
    %c1_94 = arith.constant 1 : index
    %c0_95 = arith.constant 0 : index
    %c0_96 = arith.constant 0 : index
    %123 = vector.load %arg7[%c1_94, %c0_95, %c0_96] : memref<4x20x42xf32, #tpu.memory_space<vmem>>, vector<1x20x42xf32>
    %124 = vector.shape_cast %123 : vector<1x20x42xf32> to vector<20x42xf32>
    %125 = arith.mulf %115, %124 : vector<20x42xf32>
    %cst_97 = arith.constant dense<0.000000e+00> : vector<20xf32>
    %126 = vector.multi_reduction <add>, %125, %cst_97 [1] : vector<20x42xf32> to vector<20xf32>
    %127 = vector.shape_cast %126 : vector<20xf32> to vector<20x1xf32>
    %cst_98 = arith.constant dense<0.000000e+00> : vector<1xf32>
    %128 = vector.multi_reduction <add>, %127, %cst_98 [0] : vector<20x1xf32> to vector<1xf32>
    %129 = vector.shape_cast %128 : vector<1xf32> to vector<1x1xf32>
    %c2_99 = arith.constant 2 : index
    %c0_100 = arith.constant 0 : index
    %c0_101 = arith.constant 0 : index
    %130 = vector.load %arg7[%c2_99, %c0_100, %c0_101] : memref<4x20x42xf32, #tpu.memory_space<vmem>>, vector<1x20x42xf32>
    %131 = vector.shape_cast %130 : vector<1x20x42xf32> to vector<20x42xf32>
    %132 = arith.mulf %115, %131 : vector<20x42xf32>
    %cst_102 = arith.constant dense<0.000000e+00> : vector<20xf32>
    %133 = vector.multi_reduction <add>, %132, %cst_102 [1] : vector<20x42xf32> to vector<20xf32>
    %134 = vector.shape_cast %133 : vector<20xf32> to vector<20x1xf32>
    %cst_103 = arith.constant dense<0.000000e+00> : vector<1xf32>
    %135 = vector.multi_reduction <add>, %134, %cst_103 [0] : vector<20x1xf32> to vector<1xf32>
    %136 = vector.shape_cast %135 : vector<1xf32> to vector<1x1xf32>
    %c3_104 = arith.constant 3 : index
    %c0_105 = arith.constant 0 : index
    %c0_106 = arith.constant 0 : index
    %137 = vector.load %arg7[%c3_104, %c0_105, %c0_106] : memref<4x20x42xf32, #tpu.memory_space<vmem>>, vector<1x20x42xf32>
    %138 = vector.shape_cast %137 : vector<1x20x42xf32> to vector<20x42xf32>
    %139 = arith.mulf %115, %138 : vector<20x42xf32>
    %cst_107 = arith.constant dense<0.000000e+00> : vector<20xf32>
    %140 = vector.multi_reduction <add>, %139, %cst_107 [1] : vector<20x42xf32> to vector<20xf32>
    %141 = vector.shape_cast %140 : vector<20xf32> to vector<20x1xf32>
    %cst_108 = arith.constant dense<0.000000e+00> : vector<1xf32>
    %142 = vector.multi_reduction <add>, %141, %cst_108 [0] : vector<20x1xf32> to vector<1xf32>
    %143 = vector.shape_cast %142 : vector<1xf32> to vector<1x1xf32>
    %144 = tpu.concatenate %122, %129, %136, %143 in 1 : vector<1x1xf32>, vector<1x1xf32>, vector<1x1xf32>, vector<1x1xf32> -> vector<1x4xf32>
    %145 = tpu.concatenate %72, %144 in 0 : vector<1x4xf32>, vector<1x4xf32> -> vector<2x4xf32>
    %c0_109 = arith.constant 0 : index
    %c0_110 = arith.constant 0 : index
    %146 = vector.load %arg8[%c0_109, %c0_110] : memref<1x4xf32, #tpu.memory_space<vmem>>, vector<1x4xf32>
    %147 = vector.broadcast %146 : vector<1x4xf32> to vector<2x4xf32>
    %148 = arith.addf %145, %147 : vector<2x4xf32>
    %c0_111 = arith.constant 0 : index
    %c0_112 = arith.constant 0 : index
    %149 = vector.load %arg9[%c0_111, %c0_112] : memref<2x4xf32, #tpu.memory_space<vmem>>, vector<2x4xf32>
    tpu.vector_store %arg9[%c0_111, %c0_112], %148 {strides = array<i32>} : memref<2x4xf32, #tpu.memory_space<vmem>>, vector<2x4xf32>,
    return
  }
  func.func @transform_0(%arg0: i32) -> (i32, i32, i32) {
    %c0_i32 = arith.constant 0 : i32
    %c0_i32_0 = arith.constant 0 : i32
    %c0_i32_1 = arith.constant 0 : i32
    return %arg0, %c0_i32, %c0_i32_0 : i32, i32, i32
  }
  func.func @transform_1(%arg0: i32) -> (i32, i32) {
    %c0_i32 = arith.constant 0 : i32
    %c0_i32_0 = arith.constant 0 : i32
    %c0_i32_1 = arith.constant 0 : i32
    return %c0_i32, %c0_i32_0 : i32, i32
  }
  func.func @transform_2(%arg0: i32) -> (i32, i32) {
    %c0_i32 = arith.constant 0 : i32
    %c0_i32_0 = arith.constant 0 : i32
    %c0_i32_1 = arith.constant 0 : i32
    return %c0_i32, %c0_i32_0 : i32, i32
  }
  func.func @transform_3(%arg0: i32) -> (i32, i32) {
    %c0_i32 = arith.constant 0 : i32
    %c0_i32_0 = arith.constant 0 : i32
    %c0_i32_1 = arith.constant 0 : i32
    return %c0_i32, %c0_i32_0 : i32, i32
  }
  func.func @transform_4(%arg0: i32) -> (i32, i32) {
    %c0_i32 = arith.constant 0 : i32
    %c0_i32_0 = arith.constant 0 : i32
    %c0_i32_1 = arith.constant 0 : i32
    return %c0_i32, %c0_i32_0 : i32, i32
  }
  func.func @transform_5(%arg0: i32) -> (i32, i32) {
    %c0_i32 = arith.constant 0 : i32
    %c0_i32_0 = arith.constant 0 : i32
    %c0_i32_1 = arith.constant 0 : i32
    return %c0_i32, %c0_i32_0 : i32, i32
  }
  func.func @transform_6(%arg0: i32) -> (i32, i32, i32) {
    %c0_i32 = arith.constant 0 : i32
    %c0_i32_0 = arith.constant 0 : i32
    %c0_i32_1 = arith.constant 0 : i32
    %c0_i32_2 = arith.constant 0 : i32
    return %c0_i32, %c0_i32_0, %c0_i32_1 : i32, i32, i32
  }
  func.func @transform_7(%arg0: i32) -> (i32, i32) {
    %c0_i32 = arith.constant 0 : i32
    %c0_i32_0 = arith.constant 0 : i32
    %c0_i32_1 = arith.constant 0 : i32
    return %c0_i32, %c0_i32_0 : i32, i32
  }
  func.func @transform_8(%arg0: i32) -> (i32, i32) {
    %c0_i32 = arith.constant 0 : i32
    %c0_i32_0 = arith.constant 0 : i32
    return %arg0, %c0_i32 : i32, i32
  }
}

</mosaic_0001>

<bundles_post_ra>
// kernel: tpu_custom_call.1
= control target key start
LH: loop header
LB: loop body
LE: loop exit
PB: predicated region body
PF: predicated region fallthrough
CT: control target
= control target key end

     0   :  { %vm9106_vm0 = vcmask 1042432   ;;  %v9110_v2 = vmov 0   ;;  %vm9105_vm1 = vcmask 179200   ;;  %s9093_s0 = inlined_call_operand.vmem [shape: bf16[2,22,562], index: 0, kind: input, shape index: {}]   ;;  %s9094_s1 = inlined_call_operand.vmem [shape: bf16[22,22], index: 1, kind: input, shape index: {}]   ;;  %s9095_s2 = inlined_call_operand.vmem [shape: f32[22,1], index: 2, kind: input, shape index: {}]   ;;  %s9096_s3 = inlined_call_operand.vmem [shape: bf16[20,264], index: 3, kind: input, shape index: {}]   ;;  %s9097_s4 = inlined_call_operand.vmem [shape: f32[20,1], index: 4, kind: input, shape index: {}]   ;;  %s9098_s5 = inlined_call_operand.vmem [shape: f32[563,42], index: 5, kind: input, shape index: {}]   ;;  %s9099_s6 = inlined_call_operand.vmem [shape: f32[4,20,42], index: 6, kind: input, shape index: {}]   ;;  %s9100_s7 = inlined_call_operand.vmem [shape: f32[1,4], index: 7, kind: input, shape index: {}]   ;;  %s9101_s8 = inlined_call_operand.hbm [shape: f32[2,4], index: 8, kind: output, shape index: {}]  }
   0x1   :  { %v5953_v0 = vld [vmem:[%s9093_s0 + $0x4] ss:$20 sps:$4 sm:$0xff]   ;;  %v5955_v1 = vld [vmem:[%s9093_s0 + $0xc] ss:$20 sps:$4 sm:$0xff]   ;;  %163 = vmatprep.mubr.bf16.mxu0 %v9110_v2  ;;  %214 = vmatprep.mubr.bf16.mxu1 %v9110_v2  ;;  %v5958_v4 = vld [vmem:[%s9093_s0 + $0x8] ss:$20 sps:$4 sm:$0xff]  }
   0x2   :  { %131 = vmatprep.subr.bf16.mxu0 %v5953_v0  ;;  %v5957_v3 = vld [vmem:[%s9093_s0] ss:$20 sps:$4 sm:$0xff]   ;;  %v40_v5 = vld [vmem:[%s9093_s0 + $0x28] sm:$0x77]  ;;  %5951 = vset.pattern.permute.xlu0 %v9110_v2  ;;  %v5965_v15 = vld [vmem:[%s9093_s0 + $0x10] ss:$20 sps:$4 sm:$0xff]  }
   0x3   :  { %182 = vmatprep.subr.bf16.mxu1 %v5955_v1  ;;  %v5116_v6 = vcombine.high %v40_v5, %v40_v5  ;;  %v41_v7 = vld [vmem:[%s9093_s0 + $0x30] sm:$0x77]  ;;  %v5115_v8 = vcombine.low %v40_v5, %v40_v5  ;;  %5952 = vset.pattern.permute.xlu1 %v9110_v2  ;;  %v5963_v12 = vld [vmem:[%s9094_s1] sm:$0xff]   ;;  %v44_v16 = vld [vmem:[%s9095_s2 + $0x8] sm:$0xff] }
   0x4   :  { %132 = vmatpush1.bf16.msra.mxu0 %v5957_v3  ;;  %183 = vmatpush1.bf16.msra.mxu1 %v5958_v4  ;;  %v5118_v9 = vcombine.high %v41_v7, %v41_v7  ;;  %v5117_v10 = vcombine.low %v41_v7, %v41_v7  ;;  %v43_v13 = vld [vmem:[%s9095_s2] sm:$0xff]  ;;  %v5966_v17 = vld [vmem:[%s9093_s0 + $0x38] ss:$0 sps:$4 sm:$0x77]   ;;  %v45_v18 = vld [vmem:[%s9095_s2 + $0x10] sm:$0x3f] }
   0x5   :  { %5120 = vmatprep.subr.msk.bf16.mxu0 %vm9106_vm0, %v5116_v6  ;;  %v117_v11 = vsel %vm9106_vm0, %v5115_v8, 0  ;;  %48 = vperm.xlu0 %5951, %v43_v13   ;;  %v129_v19 = vsel %vm9106_vm0, %v5966_v17, 0 }
   0x6   :  { %5123 = vmatprep.subr.msk.bf16.mxu1 %vm9106_vm0, %v5118_v9  ;;  %v123_v14 = vsel %vm9106_vm0, %v5117_v10, 0  ;;  %58 = vperm.xlu1 %5952, %v45_v18  }
   0x8   :  { %134 = vmatpush1.bf16.msra.mxu0 %v117_v11  ;;  %185 = vmatpush1.bf16.msra.mxu1 %v123_v14 }
   0x9   :  { %5654 = vmatprep.subr.bf16.mxu0 %v5965_v15  ;;  %53 = vperm.xlu0 %5951, %v44_v16  }
   0xb   :  { %5121 = vmatmul.mubr.msk.bf16.vlgmr.msra.gmra.mrb[0].mxu0 %vm9105_vm1, %v5963_v12  ;;  %5124 = vmatmul.mubr.msk.bf16.vlgmr.msra.gmra.mrb[0].mxu1 %vm9105_vm1, %v5963_v12 }
   0xc   :  { %173 = vmatprep.mubr.bf16.mxu0 %v9110_v2  ;;  %5655 = vmatpush3.bf16.msra.mxu0 %v5965_v15 }
   0xd   :  { %5930 = vmatprep.subr.msk.bf16.mxu0 %vm9106_vm0, %v5966_v17  ;;  %224 = vmatprep.mubr.bf16.mxu1 %v9110_v2 }
   0xe   :  { %13 = vsyncpa [#allocation4], 0  ;;  %v5964_v20 = vld [vmem:[%s9094_s1 + $0x8] ss:$0 sps:$4 sm:$0x77]   ;;  %s6072_s9 = smov 6  }
   0xf   :  { %vm9104_vm2 = vcmask 48128   ;;  %s6073_s10 = smov 124   ;;  %s6074_s11 = smov 120   ;;  %vm9103_vm4 = vcmask 457728   ;;  %vm9156_vm5 = vcmask 412672   ;;  %vm9154_vm6 = vcmask 411648  }
  0x10   :  { %5657 = vmatpush3.bf16.msra.mxu0 %v129_v19  ;;  %vm6210_vm3 = vmneg %vm9104_vm2  ;;  %v9195_v19 = vmov 0  ;;  %s6075_s12 = smov 127   ;;  %s6076_s13 = smov 126   ;;  %vm390_vm7 = vcmask 1046532   ;;  %vm496_vm9 = vcmask 1041408   ;;  %vm497_vm10 = vcmask 1045508  }
  0x11   :  { %v9196_v19 = vsel %vm6210_vm3, 4294967295, %v9195_v19  ;;  %s6077_s14 = smov 125   ;;  %s6078_s15 = smov 123   ;;  %vm6271_vm8 = vmor %vm9106_vm0, %vm390_vm7  ;;  %vm9102_vm12 = vcmask 1040384   ;;  %vm603_vm13 = vcmask 1044484   ;;  %vm454_vm15 = vcmask 1039360  }
  0x12   :  { %9197 = vst [vmem:[#allocation6_spill] sm:$0xff] %v9196_v19  ;;  %s6079_s16 = smov 122   ;;  %s6080_s17 = smov 121   ;;  %vm6280_vm11 = vmor %vm496_vm9, %vm497_vm10  ;;  %vm452_vm7 = vcmask 1043456   ;;  %vm560_vm9 = vcmask 1031168   ;;  %vm654_vm10 = vcmask 1022976  }
  0x13   :  { %5122 = vmatmul.mubr.msk.bf16.gmra.mrb[4].mxu0 %vm9105_vm1, %v5964_v20  ;;  %5125 = vmatmul.mubr.msk.bf16.gmra.mrb[4].mxu1 %vm9105_vm1, %v5964_v20  ;;  %s6081_s18 = smov 119   ;;  %s6082_s19 = smov 118   ;;  %vm6293_vm14 = vmor %vm9102_vm12, %vm603_vm13  ;;  %vm780_vm13 = vcmask 1006592   ;;  %vm9162_vm12 = vcmask 998400   ;;  %vm9109_vm0 = vcmask 957440  }
  0x14   :  { %5658 = vmatprep.mubr.msk.bf16.mxu0 %vm9105_vm1, %v5963_v12  ;;  %s6083_s20 = smov 117   ;;  %s6087_s23 = smov [#allocation3]  }
  0x1b   :  { %5659 = vmatmul.mubr.msk.bf16.vlgmr.msra.gmra.mrb[8].mxu0 %vm9105_vm1, %v5964_v20  ;;  %vm9153_vm1 = vcmask 965632  }
  0x84   :  { %v49_v21 = vpop.permute.xlu0 %48 }
  0x85   :  { %v59_v43 = vpop.permute.xlu1 %58 }
  0x88   :  { %v54_v22 = vpop.permute.xlu0 %53 }
  0xde   :  { %v165_v23 = vpop.f32.mrb[0].mxu0  ;;  %v216_v24 = vpop.f32.mrb[0].mxu1 }
  0xdf   :  { %v167_v25 = vpop.f32.mrb[1].mxu0  ;;  %v218_v26 = vpop.f32.mrb[1].mxu1  ;;  %v166_v29 = vadd.f32 %v165_v23, %v49_v21  ;;  %v217_v30 = vadd.f32 %v216_v24, %v49_v21 }
  0xe0   :  { %v169_v27 = vpop.f32.mrb[2].mxu0  ;;  %v220_v28 = vpop.f32.mrb[2].mxu1  ;;  %v168_v35 = vadd.f32 %v167_v25, %v49_v21  ;;  %v219_v36 = vadd.f32 %v218_v26, %v49_v21 }
  0xe1   :  { %v170_v31 = vadd.f32 %v169_v27, %v54_v22  ;;  %v221_v32 = vadd.f32 %v220_v28, %v54_v22  ;;  %v171_v33 = vpop.f32.mrb[3].mxu0  ;;  %v222_v34 = vpop.f32.mrb[3].mxu1 }
  0xe2   :  { %v172_v37 = vadd.f32 %v171_v33, %v54_v22  ;;  %v223_v38 = vadd.f32 %v222_v34, %v54_v22 }
  0xe3   :  { %v281_v39 = vpack.c.bf16 %v170_v31, %v166_v29  ;;  %v283_v40 = vpack.c.bf16 %v221_v32, %v217_v30 }
  0xe4   :  { %v282_v41 = vpack.c.bf16 %v172_v37, %v168_v35  ;;  %v284_v42 = vpack.c.bf16 %v223_v38, %v219_v36 }
  0xe5   :  { %301 = vrot.lane.b32.xlu1 %v281_v39, %s6072_s9 }
  0xe6   :  { %303 = vrot.lane.b32.xlu0 %v282_v41, %s6072_s9  ;;  %v175_v44 = vpop.f32.mrb[4].mxu0  ;;  %v226_v45 = vpop.f32.mrb[4].mxu1 }
  0xe7   :  { %v177_v46 = vpop.f32.mrb[5].mxu0  ;;  %v228_v47 = vpop.f32.mrb[5].mxu1  ;;  %v176_v48 = vadd.f32 %v175_v44, %v59_v43  ;;  %v227_v52 = vadd.f32 %v226_v45, %v59_v43  ;;  %v9198_v45 = vmov 0 }
  0xe8   :  { %v178_v49 = vadd.f32 %v177_v46, %v59_v43  ;;  %v179_v50 = vpop.f32.mrb[6].mxu0  ;;  %v230_v51 = vpop.f32.mrb[6].mxu1  ;;  %v229_v57 = vadd.f32 %v228_v47, %v59_v43  ;;  %v9199_v45 = vsel %vm6271_vm8, 4294967295, %v9198_v45 }
  0xe9   :  { %305 = vrot.lane.b32.xlu1 %v283_v40, %s6072_s9  ;;  %v180_v53 = vpop.f32.mrb[7].mxu0  ;;  %v286_v54 = vpack.c.bf16 %v176_v48, %v176_v48  ;;  %v231_v55 = vpop.f32.mrb[7].mxu1  ;;  %v288_v58 = vpack.c.bf16 %v227_v52, %v227_v52  ;;  %9200 = vst [vmem:[#allocation7_spill] sm:$0xff] %v9199_v45  ;;  %v9201_v50 = vmov 0 }
  0xea   :  { %v287_v56 = vpack.c.bf16 %v178_v49, %v178_v49  ;;  %307 = vrot.lane.b32.xlu0 %v284_v42, %s6072_s9  ;;  %v289_v59 = vpack.c.bf16 %v229_v57, %v229_v57  ;;  %v9202_v50 = vsel %vm6280_vm11, 4294967295, %v9201_v50  ;;  %v9204_v57 = vmov 0 }
  0xeb   :  { %9203 = vst [vmem:[#allocation8_spill] sm:$0xff] %v9202_v50  ;;  %v9205_v57 = vsel %vm6293_vm14, 4294967295, %v9204_v57 }
  0xec   :  { %9206 = vst [vmem:[#allocation9_spill] sm:$0xff] %v9205_v57 }
  0xed   :  { %311 = vrot.lane.b32.xlu1 %v286_v54, %s6072_s9 }
  0xee   :  { %v5660_v60 = vpop.f32.mrb[8].mxu0  ;;  %313 = vrot.lane.b32.xlu0 %v287_v56, %s6072_s9 }
  0xef   :  { %v276_v61 = vadd.f32 %v5660_v60, %v59_v43  ;;  %v267_v62 = vpop.f32.mrb[9].mxu0 }
  0xf0   :  { %v5661_v63 = vpop.f32.mrb[10].mxu0  ;;  %v268_v3 = vadd.f32 %v267_v62, %v49_v21 }
  0xf1   :  { %v270_v0 = vpop.f32.mrb[11].mxu0  ;;  %315 = vrot.lane.b32.xlu1 %v288_v58, %s6072_s9  ;;  %v290_v1 = vpack.c.bf16 %v276_v61, %v276_v61 }
  0xf2   :  { %v271_v4 = vadd.f32 %v270_v0, %v54_v22  ;;  %317 = vrot.lane.b32.xlu0 %v289_v59, %s6072_s9 }
  0xf4   :  { %v285_v5 = vpack.c.bf16 %v271_v4, %v268_v3 }
  0xf6   :  { %309 = vrot.lane.b32.xlu1 %v285_v5, %s6072_s9  ;;  %319 = vrot.lane.b32.xlu0 %v290_v1, %s6072_s9 }
 0x157   :  { %v302_v6 = vpop.permute.xlu1 %301 }
 0x158   :  { %v333_v7 = vsel %vm9104_vm2, 0, %v302_v6  ;;  %v304_v8 = vpop.permute.xlu0 %303 }
 0x159   :  { %v322_v9 = vsel %vm9104_vm2, %v302_v6, %v304_v8 }
 0x15a   :  { %v5128_v10 = vcombine.low %v333_v7, %v322_v9  ;;  %v6202_v11 = vcombine.high %v333_v7, %v322_v9  ;;  %1825 = vmatprep.subr.bf16.mxu1 %v322_v9 }
 0x15b   :  { %v306_v12 = vpop.permute.xlu1 %305  ;;  %6044 = vmatpush1.bf16.msk.msra.mxu1 %vm6210_vm3, %v302_v6 }
 0x15c   :  { %v323_v13 = vsel %vm9104_vm2, %v304_v8, %v306_v12  ;;  %v308_v14 = vpop.permute.xlu0 %307  ;;  %685 = vrot.lane.b32.xlu1 %v5128_v10, %s6073_s10  ;;  %v392_v35 = vrot.slane %v5128_v10, 5  ;;  %v499_v39 = vrot.slane %v5128_v10, 6  ;;  %v605_v41 = vrot.slane %v5128_v10, 7 }
 0x15d   :  { %v324_v15 = vsel %vm9104_vm2, %v306_v12, %v308_v14  ;;  %v396_v46 = vrot.slane %v6202_v11, 5  ;;  %v503_v51 = vrot.slane %v6202_v11, 6  ;;  %v609_v58 = vrot.slane %v6202_v11, 7 }
 0x15e   :  { %v5129_v16 = vcombine.low %v323_v13, %v324_v15  ;;  %v6207_v17 = vcombine.high %v323_v13, %v324_v15  ;;  %1927 = vmatprep.subr.bf16.mxu0 %v324_v15  ;;  %v395_v44 = vrot.slane %v392_v35, 4  ;;  %v502_v48 = vrot.slane %v499_v39, 4 }
 0x15f   :  { %v312_v18 = vpop.permute.xlu1 %311  ;;  %1928 = vmatpush1.bf16.msra.mxu0 %v323_v13  ;;  %v608_v55 = vrot.slane %v605_v41, 4  ;;  %v404_v3 = vrot.slane %v396_v46, 4  ;;  %v511_v7 = vrot.slane %v503_v51, 4  ;;  %v617_v13 = vrot.slane %v609_v58, 4 }
 0x160   :  { %v314_v20 = vpop.permute.xlu0 %313  ;;  %691 = vrot.lane.b32.xlu1 %v6202_v11, %s6073_s10  ;;  %687 = vrot.lane.b32.xlu0 %v5129_v16, %s6073_s10  ;;  %v335_v21 = vsel %vm9104_vm2, 0, %v312_v18  ;;  %v393_v40 = vrot.slane %v5129_v16, 5  ;;  %v500_v42 = vrot.slane %v5129_v16, 6  ;;  %v606_v43 = vrot.slane %v5129_v16, 7 }
 0x161   :  { %v326_v22 = vsel %vm9104_vm2, %v312_v18, %v314_v20  ;;  %v397_v47 = vsel %vm6271_vm8, %v395_v44, %v396_v46  ;;  %v399_v52 = vrot.slane %v6207_v17, 5  ;;  %v504_v53 = vsel %vm6280_vm11, %v502_v48, %v503_v51 }
 0x162   :  { %v6221_v23 = vcombine.low %v335_v21, %v326_v22  ;;  %v398_v49 = vrot.slane %v393_v40, 4  ;;  %v505_v56 = vrot.slane %v500_v42, 4  ;;  %v506_v59 = vrot.slane %v6207_v17, 6 }
 0x163   :  { %v316_v24 = vpop.permute.xlu1 %315  ;;  %v6301_v60 = vsel %vm6293_vm14, %v608_v55, %v609_v58  ;;  %v611_v62 = vrot.slane %v606_v43, 4  ;;  %v612_v63 = vrot.slane %v6207_v17, 7  ;;  %v407_v8 = vrot.slane %v399_v52, 4 }
 0x164   :  { %385 = vst [vmem:[#allocation2 + $0x28] sm:$0x77] %v6221_v23  ;;  %v318_v25 = vpop.permute.xlu0 %317  ;;  %957 = vrot.lane.b32.xlu1 %v5129_v16, %s6074_s11  ;;  %693 = vrot.lane.b32.xlu0 %v6207_v17, %s6073_s10  ;;  %v327_v26 = vsel %vm9104_vm2, %v314_v20, %v316_v24  ;;  %v400_v54 = vsel %vm6271_vm8, %v398_v49, %v399_v52  ;;  %v405_v1 = vrot.slane %v6221_v23, 5  ;;  %v512_v5 = vrot.slane %v6221_v23, 6 }
 0x165   :  { %v328_v27 = vsel %vm9104_vm2, %v316_v24, %v318_v25  ;;  %v507_v61 = vsel %vm6280_vm11, %v505_v56, %v506_v59  ;;  %v6311_v0 = vsel %vm6293_vm14, %v611_v62, %v612_v63  ;;  %v620_v18 = vrot.slane %v612_v63, 4 }
 0x166   :  { %v6229_v28 = vcombine.low %v327_v26, %v328_v27  ;;  %v406_v4 = vsel %vm6271_vm8, %v404_v3, %v405_v1  ;;  %v513_v9 = vsel %vm6280_vm11, %v511_v7, %v512_v5  ;;  %v413_v26 = vrot.slane %v405_v1, 4 }
 0x168   :  { %386 = vst [vmem:[#allocation2 + $0x30] sm:$0x77] %v6229_v28  ;;  %963 = vrot.lane.b32.xlu1 %v6207_v17, %s6074_s11  ;;  %955 = vrot.lane.b32.xlu0 %v5128_v10, %s6074_s11  ;;  %v310_v29 = vpop.permute.xlu1 %309  ;;  %v320_v30 = vpop.permute.xlu0 %319  ;;  %v408_v6 = vrot.slane %v6229_v28, 5  ;;  %v515_v12 = vrot.slane %v6229_v28, 6  ;;  %v621_v17 = vrot.slane %v6229_v28, 7 }
 0x169   :  { %v325_v31 = vsel %vm9104_vm2, %v308_v14, %v310_v29  ;;  %v329_v32 = vsel %vm9104_vm2, %v318_v25, %v320_v30  ;;  %v514_v14 = vrot.slane %v506_v59, 4  ;;  %v520_v29 = vrot.slane %v512_v5, 4 }
 0x16a   :  { %v338_v33 = vsel %vm9103_vm4, %v325_v31, 0  ;;  %v340_v34 = vsel %vm9103_vm4, %v329_v32, 0  ;;  %v409_v10 = vsel %vm6271_vm8, %v407_v8, %v408_v6  ;;  %v6361_v20 = vsel %vm6293_vm14, %v620_v18, %v621_v17 }
 0x16b   :  { %v6239_v36 = vcombine.low %v338_v33, %v338_v33  ;;  %v6241_v37 = vcombine.high %v338_v33, %v338_v33  ;;  %v6243_v38 = vcombine.low %v340_v34, %v340_v34  ;;  %v516_v16 = vsel %vm6280_vm11, %v514_v14, %v515_v12 }
 0x16c   :  { %416 = vrot.lane.b32.xlu1 %v392_v35, %s6075_s12  ;;  %961 = vrot.lane.b32.xlu0 %v6202_v11, %s6074_s11  ;;  %v618_v11 = vrot.slane %v6221_v23, 7  ;;  %v414_v30 = vrot.slane %v408_v6, 4  ;;  %v521_v33 = vrot.slane %v515_v12, 4  ;;  %vm9116_vm4 = vcmask 990208  }
 0x16d   :  { %381 = vst.msk [vmem:[#allocation2 + $0x10] sm:$0xf] %vm9156_vm5, %v6239_v36  ;;  %384 = vst.msk [vmem:[#allocation2 + $0x24] sm:$0xf] %vm9156_vm5, %v6241_v37  ;;  %v6438_v5 = vrot.slane %v6239_v36, 5  ;;  %v6454_v12 = vrot.slane %v6239_v36, 6 }
 0x16e   :  { %388 = vst.msk [vmem:[#allocation2 + $0x38] sm:$0x7] %vm9154_vm6, %v6243_v38  ;;  %v6351_v15 = vsel %vm6293_vm14, %v617_v13, %v618_v11  ;;  %vm9150_vm2 = vcmask 973824  }
 0x170   :  { %523 = vrot.lane.b32.xlu1 %v499_v39, %s6076_s13  ;;  %418 = vrot.lane.b32.xlu0 %v393_v40, %s6075_s12 }
 0x174   :  { %626 = vrot.lane.b32.xlu1 %v605_v41, %s6077_s14  ;;  %525 = vrot.lane.b32.xlu0 %v500_v42, %s6076_s13 }
 0x178   :  { %743 = vrot.lane.b32.xlu1 %v392_v35, %s6078_s15  ;;  %628 = vrot.lane.b32.xlu0 %v606_v43, %s6077_s14 }
 0x17c   :  { %822 = vrot.lane.b32.xlu1 %v500_v42, %s6079_s16  ;;  %745 = vrot.lane.b32.xlu0 %v393_v40, %s6078_s15 }
 0x180   :  { %897 = vrot.lane.b32.xlu1 %v605_v41, %s6080_s17  ;;  %820 = vrot.lane.b32.xlu0 %v499_v39, %s6079_s16 }
 0x184   :  { %1015 = vrot.lane.b32.xlu1 %v393_v40, %s6081_s18  ;;  %899 = vrot.lane.b32.xlu0 %v606_v43, %s6080_s17 }
 0x188   :  { %1090 = vrot.lane.b32.xlu1 %v499_v39, %s6082_s19  ;;  %1013 = vrot.lane.b32.xlu0 %v392_v35, %s6081_s18 }
 0x18c   :  { %1169 = vrot.lane.b32.xlu1 %v606_v43, %s6083_s20  ;;  %1092 = vrot.lane.b32.xlu0 %v500_v42, %s6082_s19 }
 0x190   :  { %422 = vrot.lane.b32.xlu1 %v397_v47, %s6075_s12  ;;  %1167 = vrot.lane.b32.xlu0 %v605_v41, %s6083_s20 }
 0x194   :  { %529 = vrot.lane.b32.xlu1 %v504_v53, %s6076_s13  ;;  %424 = vrot.lane.b32.xlu0 %v400_v54, %s6075_s12 }
 0x198   :  { %632 = vrot.lane.b32.xlu1 %v6301_v60, %s6077_s14  ;;  %531 = vrot.lane.b32.xlu0 %v507_v61, %s6076_s13 }
 0x19c   :  { %751 = vrot.lane.b32.xlu1 %v400_v54, %s6078_s15  ;;  %634 = vrot.lane.b32.xlu0 %v6311_v0, %s6077_s14 }
 0x1a0   :  { %828 = vrot.lane.b32.xlu1 %v507_v61, %s6079_s16  ;;  %749 = vrot.lane.b32.xlu0 %v397_v47, %s6078_s15 }
 0x1a4   :  { %903 = vrot.lane.b32.xlu1 %v6301_v60, %s6080_s17  ;;  %826 = vrot.lane.b32.xlu0 %v504_v53, %s6079_s16 }
 0x1a8   :  { %1021 = vrot.lane.b32.xlu1 %v400_v54, %s6081_s18  ;;  %905 = vrot.lane.b32.xlu0 %v6311_v0, %s6080_s17 }
 0x1ac   :  { %1098 = vrot.lane.b32.xlu1 %v507_v61, %s6082_s19  ;;  %1019 = vrot.lane.b32.xlu0 %v397_v47, %s6081_s18 }
 0x1b0   :  { %1096 = vrot.lane.b32.xlu0 %v504_v53, %s6082_s19  ;;  %697 = vrot.lane.b32.xlu1 %v6221_v23, %s6073_s10 }
 0x1b4   :  { %969 = vrot.lane.b32.xlu1 %v6229_v28, %s6074_s11  ;;  %699 = vrot.lane.b32.xlu0 %v6229_v28, %s6073_s10 }
 0x1b8   :  { %428 = vrot.lane.b32.xlu1 %v406_v4, %s6075_s12  ;;  %967 = vrot.lane.b32.xlu0 %v6221_v23, %s6074_s11 }
 0x1bc   :  { %535 = vrot.lane.b32.xlu1 %v513_v9, %s6076_s13  ;;  %430 = vrot.lane.b32.xlu0 %v409_v10, %s6075_s12 }
 0x1c0   :  { %638 = vrot.lane.b32.xlu1 %v6351_v15, %s6077_s14  ;;  %537 = vrot.lane.b32.xlu0 %v516_v16, %s6076_s13 }
 0x1c4   :  { %757 = vrot.lane.b32.xlu1 %v409_v10, %s6078_s15  ;;  %640 = vrot.lane.b32.xlu0 %v6361_v20, %s6077_s14 }
 0x1c8   :  { %832 = vrot.lane.b32.xlu1 %v513_v9, %s6079_s16  ;;  %755 = vrot.lane.b32.xlu0 %v406_v4, %s6078_s15 }
 0x1cc   :  { %909 = vrot.lane.b32.xlu1 %v6351_v15, %s6080_s17  ;;  %834 = vrot.lane.b32.xlu0 %v516_v16, %s6079_s16 }
 0x1ce   :  { %v6371_v21 = vpop.permute.xlu1 %685 }
 0x1d0   :  { %1025 = vrot.lane.b32.xlu1 %v406_v4, %s6081_s18  ;;  %911 = vrot.lane.b32.xlu0 %v6361_v20, %s6080_s17 }
 0x1d2   :  { %v6376_v22 = vpop.permute.xlu0 %687  ;;  %v6378_v23 = vpop.permute.xlu1 %691 }
 0x1d4   :  { %1104 = vrot.lane.b32.xlu1 %v516_v16, %s6082_s19  ;;  %1027 = vrot.lane.b32.xlu0 %v409_v10, %s6081_s18  ;;  %v411_v16 = vrot.slane %v6243_v38, 5 }
 0x1d6   :  { %v6382_v24 = vpop.permute.xlu0 %693  ;;  %v6384_v25 = vpop.permute.xlu1 %957 }
 0x1d8   :  { %434 = vrot.lane.b32.xlu1 %v413_v26, %s6075_s12  ;;  %1102 = vrot.lane.b32.xlu0 %v513_v9, %s6082_s19 }
 0x1da   :  { %v6388_v27 = vpop.permute.xlu0 %955  ;;  %v6390_v28 = vpop.permute.xlu1 %963 }
 0x1dc   :  { %541 = vrot.lane.b32.xlu1 %v520_v29, %s6076_s13  ;;  %436 = vrot.lane.b32.xlu0 %v414_v30, %s6075_s12 }
 0x1de   :  { %v6394_v31 = vpop.permute.xlu0 %961  ;;  %v417_v32 = vpop.permute.xlu1 %416 }
 0x1df   :  { %v440_v39 = vrot.slane %v417_v32, 4 }
 0x1e0   :  { %763 = vrot.lane.b32.xlu1 %v414_v30, %s6078_s15  ;;  %543 = vrot.lane.b32.xlu0 %v521_v33, %s6076_s13 }
 0x1e2   :  { %v6398_v34 = vpop.permute.xlu0 %418  ;;  %v524_v35 = vpop.permute.xlu1 %523 }
 0x1e3   :  { %v9121_v40 = vrot.slane %v6398_v34, 4  ;;  %v547_v46 = vrot.slane %v524_v35, 4 }
 0x1e4   :  { %838 = vrot.lane.b32.xlu1 %v520_v29, %s6079_s16  ;;  %761 = vrot.lane.b32.xlu0 %v413_v26, %s6078_s15 }
 0x1e5   :  { %v453_v41 = vsel %vm452_vm7, %v440_v39, %v9121_v40  ;;  %v518_v39 = vrot.slane %v6243_v38, 6 }
 0x1e6   :  { %v455_v42 = vsel %vm454_vm15, %v417_v32, %v453_v41  ;;  %v6407_v43 = vpop.permute.xlu0 %525  ;;  %v627_v44 = vpop.permute.xlu1 %626  ;;  %v6469_v32 = vrot.slane %v6239_v36, 7 }
 0x1e7   :  { %482 = vst [vmem:[#allocation2 + $0x28] sm:$0x88] %v455_v42  ;;  %v9120_v47 = vrot.slane %v6407_v43, 4  ;;  %v644_v53 = vrot.slane %v627_v44, 4 }
 0x1e8   :  { %1031 = vrot.lane.b32.xlu1 %v413_v26, %s6081_s18  ;;  %840 = vrot.lane.b32.xlu0 %v521_v33, %s6079_s16 }
 0x1e9   :  { %v559_v48 = vsel %vm452_vm7, %v547_v46, %v9120_v47 }
 0x1ea   :  { %v561_v49 = vsel %vm560_vm9, %v524_v35, %v559_v48  ;;  %v6416_v51 = vpop.permute.xlu0 %628  ;;  %v744_v52 = vpop.permute.xlu1 %743  ;;  %v6485_v48 = vrot.slane %v518_v39, 4 }
 0x1eb   :  { %588 = vst [vmem:[#allocation2 + $0x64] sm:$0xcc] %v561_v49  ;;  %v9119_v54 = vrot.slane %v6416_v51, 4  ;;  %v767_v61 = vrot.slane %v744_v52, 4 }
 0x1ec   :  { %1110 = vrot.lane.b32.xlu1 %v521_v33, %s6082_s19  ;;  %1033 = vrot.lane.b32.xlu0 %v414_v30, %s6081_s18  ;;  %v6466_v30 = vrot.slane %v411_v16, 4 }
 0x1ed   :  { %v653_v55 = vsel %vm452_vm7, %v644_v53, %v9119_v54 }
 0x1ee   :  { %v655_v56 = vsel %vm654_vm10, %v627_v44, %v653_v55  ;;  %v6425_v58 = vpop.permute.xlu0 %745  ;;  %v6427_v59 = vpop.permute.xlu1 %822 }
 0x1ef   :  { %675 = vst [vmem:[#allocation2 + $0xa0] sm:$0xee] %v655_v56  ;;  %v9118_v62 = vrot.slane %v6425_v58, 4  ;;  %v9115_v6 = vrot.slane %v6427_v59, 4 }
 0x1f0   :  { %1108 = vrot.lane.b32.xlu0 %v520_v29, %s6082_s19  ;;  %695 = vrot.lane.b32.xlu1 %v6241_v37, %s6073_s10 }
 0x1f1   :  { %v779_v63 = vsel %vm452_vm7, %v767_v61, %v9118_v62  ;;  %v2591_v62 = vld [vmem:[%s9095_s2 + $0x8] sm:$0xff] }
 0x1f2   :  { %v781_v1 = vsel %vm780_vm13, %v744_v52, %v779_v63  ;;  %v821_v3 = vpop.permute.xlu0 %820  ;;  %v898_v4 = vpop.permute.xlu1 %897 }
 0x1f3   :  { %808 = vst [vmem:[#allocation2 + $0x104] sm:$0x88] %v781_v1  ;;  %v844_v7 = vrot.slane %v821_v3, 4  ;;  %v915_v13 = vrot.slane %v898_v4, 4 }
 0x1f4   :  { %701 = vrot.lane.b32.xlu0 %v6243_v38, %s6073_s10  ;;  %420 = vrot.lane.b32.xlu1 %v6438_v5, %s6075_s12 }
 0x1f5   :  { %v856_v8 = vsel %vm452_vm7, %v844_v7, %v9115_v6 }
 0x1f6   :  { %v858_v9 = vsel %vm9162_vm12, %v821_v3, %v856_v8  ;;  %v6449_v10 = vpop.permute.xlu0 %899  ;;  %v6451_v11 = vpop.permute.xlu1 %1015  ;;  %v402_v3 = vrot.slane %v6241_v37, 5 }
 0x1f7   :  { %9207 = vst [vmem:[#allocation10_spill] sm:$0xff] %v6451_v11  ;;  %885 = vst [vmem:[#allocation2 + $0x140] sm:$0xcc] %v858_v9  ;;  %v9114_v14 = vrot.slane %v6449_v10, 4  ;;  %v9112_v33 = vrot.slane %v6451_v11, 4 }
 0x1f8   :  { %689 = vrot.lane.b32.xlu0 %v6239_v36, %s6073_s10  ;;  %527 = vrot.lane.b32.xlu1 %v6454_v12, %s6076_s13 }
 0x1f9   :  { %v924_v17 = vsel %vm452_vm7, %v915_v13, %v9114_v14  ;;  %v401_v13 = vrot.slane %v6438_v5, 4 }
 0x1fa   :  { %v926_v18 = vsel %vm9116_vm4, %v898_v4, %v924_v17  ;;  %v1014_v26 = vpop.permute.xlu0 %1013  ;;  %v1091_v29 = vpop.permute.xlu1 %1090  ;;  %vm9164_vm4 = vcmask 982016  }
 0x1fb   :  { %946 = vst [vmem:[#allocation2 + $0x17c] sm:$0xee] %v926_v18  ;;  %v1037_v35 = vrot.slane %v1014_v26, 4  ;;  %v1114_v49 = vrot.slane %v1091_v29, 4 }
 0x1fc   :  { %438 = vrot.lane.b32.xlu0 %v6466_v30, %s6075_s12  ;;  %630 = vrot.lane.b32.xlu1 %v6469_v32, %s6077_s14 }
 0x1fd   :  { %v1049_v41 = vsel %vm452_vm7, %v1037_v35, %v9112_v33 }
 0x1fe   :  { %v1051_v42 = vsel %vm9150_vm2, %v1014_v26, %v1049_v41  ;;  %v6481_v44 = vpop.permute.xlu0 %1092  ;;  %v6483_v46 = vpop.permute.xlu1 %1169  ;;  %v410_v26 = vrot.slane %v402_v3, 4 }
 0x1ff   :  { %9208 = vst [vmem:[#allocation11_spill] sm:$0xff] %v6481_v44  ;;  %9209 = vst [vmem:[#allocation12_spill] sm:$0xff] %v6483_v46  ;;  %v9108_v52 = vrot.slane %v6481_v44, 4  ;;  %v9107_v63 = vrot.slane %v6483_v46, 4 }
 0x200   :  { %1078 = vst [vmem:[#allocation2 + $0x1e0] sm:$0x88] %v1051_v42  ;;  %545 = vrot.lane.b32.xlu0 %v6485_v48, %s6076_s13  ;;  %747 = vrot.lane.b32.xlu1 %v6438_v5, %s6078_s15 }
 0x201   :  { %v1126_v53 = vsel %vm452_vm7, %v1114_v49, %v9108_v52 }
 0x202   :  { %v1128_v55 = vsel %vm9153_vm1, %v1091_v29, %v1126_v53  ;;  %v1168_v56 = vpop.permute.xlu0 %1167  ;;  %v423_v61 = vpop.permute.xlu1 %422  ;;  %v509_v29 = vrot.slane %v6241_v37, 6  ;;  %v6527_v53 = vsel %vm6271_vm8, %v401_v13, %v402_v3  ;;  %v615_v13 = vrot.slane %v6241_v37, 7 }
 0x203   :  { %1155 = vst [vmem:[#allocation2 + $0x21c] sm:$0xcc] %v1128_v55  ;;  %v1185_v1 = vrot.slane %v1168_v56, 4  ;;  %v443_v17 = vrot.slane %v423_v61, 4  ;;  %v1237_v55 = vld [vmem:[#allocation2 + $0x28] sm:$0xff] }
 0x204   :  { %765 = vrot.lane.b32.xlu0 %v6466_v30, %s6078_s15  ;;  %824 = vrot.lane.b32.xlu1 %v6454_v12, %s6079_s16 }
 0x205   :  { %v1194_v4 = vsel %vm452_vm7, %v1185_v1, %v9107_v63  ;;  %v517_v1 = vrot.slane %v509_v29, 4 }
 0x206   :  { %v1196_v7 = vsel %vm9109_vm0, %v1168_v56, %v1194_v4  ;;  %v6506_v8 = vpop.permute.xlu0 %424  ;;  %v6508_v9 = vpop.permute.xlu1 %529  ;;  %v6531_v56 = vsel %vm6271_vm8, %v410_v26, %v411_v16  ;;  %v508_v16 = vrot.slane %v6454_v12, 4  ;;  %vm9155_vm0 = vcmask 1014784  }
 0x207   :  { %1216 = vst [vmem:[#allocation2 + $0x258] sm:$0xee] %v1196_v7  ;;  %v9113_v18 = vrot.slane %v6506_v8, 4  ;;  %v6543_v3 = vsel %vm6280_vm11, %v517_v1, %v518_v39  ;;  %v623_v39 = vrot.slane %v615_v13, 4  ;;  %v614_v1 = vrot.slane %v6469_v32, 4 }
 0x208   :  { %842 = vrot.lane.b32.xlu0 %v6485_v48, %s6079_s16  ;;  %901 = vrot.lane.b32.xlu1 %v6469_v32, %s6080_s17 }
 0x209   :  { %v458_v35 = vsel %vm452_vm7, %v443_v17, %v9113_v18 }
 0x20a   :  { %v459_v41 = vsel %vm454_vm15, %v423_v61, %v458_v35  ;;  %v6521_v42 = vpop.permute.xlu0 %531  ;;  %v6523_v49 = vpop.permute.xlu1 %632 }
 0x20b   :  { %9210 = vst [vmem:[#allocation13_spill] sm:$0xff] %v6521_v42  ;;  %v5149_v4 = vcombine.high %v1237_v55, %v459_v41  ;;  %v5148_v7 = vcombine.low %v1237_v55, %v459_v41  ;;  %v6557_v41 = vsel %vm6280_vm11, %v508_v16, %v509_v29  ;;  %v624_v55 = vrot.slane %v6243_v38, 7 }
 0x20c   :  { %432 = vrot.lane.b32.xlu1 %v6531_v56, %s6075_s12  ;;  %426 = vrot.lane.b32.xlu0 %v6527_v53, %s6075_s12  ;;  %v616_v29 = vsel %vm6293_vm14, %v614_v1, %v615_v13 }
 0x20d   :  { %1827 = vmatprep.subr.bf16.mxu1 %v5149_v4 }
 0x20e   :  { %v6537_v61 = vpop.permute.xlu0 %634  ;;  %v6539_v17 = vpop.permute.xlu1 %751  ;;  %1828 = vmatpush1.bf16.msra.mxu1 %v5148_v7  ;;  %v625_v7 = vsel %vm6293_vm14, %v623_v39, %v624_v55 }
 0x210   :  { %539 = vrot.lane.b32.xlu1 %v6543_v3, %s6076_s13  ;;  %1173 = vrot.lane.b32.xlu0 %v6301_v60, %s6083_s20 }
 0x212   :  { %v6551_v26 = vpop.permute.xlu0 %749  ;;  %v6553_v35 = vpop.permute.xlu1 %828 }
 0x214   :  { %1175 = vrot.lane.b32.xlu1 %v6311_v0, %s6083_s20  ;;  %533 = vrot.lane.b32.xlu0 %v6557_v41, %s6076_s13 }
 0x216   :  { %v6565_v60 = vpop.permute.xlu0 %826  ;;  %v6567_v4 = vpop.permute.xlu1 %903 }
 0x218   :  { %642 = vrot.lane.b32.xlu1 %v625_v7, %s6077_s14  ;;  %636 = vrot.lane.b32.xlu0 %v616_v29, %s6077_s14 }
 0x21a   :  { %v6575_v16 = vpop.permute.xlu0 %905  ;;  %v6577_v0 = vpop.permute.xlu1 %1021 }
 0x21c   :  { %965 = vrot.lane.b32.xlu1 %v6241_v37, %s6074_s11  ;;  %959 = vrot.lane.b32.xlu0 %v6239_v36, %s6074_s11 }
 0x21e   :  { %v6583_v63 = vpop.permute.xlu0 %1019  ;;  %v6585_v39 = vpop.permute.xlu1 %1098 }
 0x21f   :  { %9211 = vst [vmem:[#allocation14_spill] sm:$0xff] %v6585_v39 }
 0x220   :  { %971 = vrot.lane.b32.xlu0 %v6243_v38, %s6074_s11  ;;  %759 = vrot.lane.b32.xlu1 %v6531_v56, %s6078_s15  ;;  %v5969_v38 = vld [vmem:[%s9096_s3 + $0x4] ss:$12 sps:$4 sm:$0xff]  }
 0x221   :  { %1857 = vmatprep.mubr.bf16.mxu1 %v5969_v38  ;;  %1959 = vmatprep.mubr.bf16.mxu0 %v5969_v38 }
 0x222   :  { %v6591_v13 = vpop.permute.xlu0 %1096  ;;  %v698_v55 = vpop.permute.xlu1 %697 }
 0x223   :  { %v709_v1 = vrot.slane %v698_v55, 4 }
 0x224   :  { %753 = vrot.lane.b32.xlu0 %v6527_v53, %s6078_s15  ;;  %1017 = vrot.lane.b32.xlu1 %v6438_v5, %s6081_s18 }
 0x226   :  { %v6597_v36 = vpop.permute.xlu0 %699  ;;  %v6599_v37 = vpop.permute.xlu1 %969 }
 0x227   :  { %9212 = vst [vmem:[#allocation15_spill] sm:$0xff] %v6599_v37  ;;  %v9122_v52 = vrot.slane %v6597_v36, 4  ;;  %v9117_v14 = vrot.slane %v6599_v37, 4 }
 0x228   :  { %830 = vrot.lane.b32.xlu0 %v6557_v41, %s6079_s16  ;;  %836 = vrot.lane.b32.xlu1 %v6543_v3, %s6079_s16 }
 0x229   :  { %v721_v5 = vsel %vm452_vm7, %v709_v1, %v9122_v52 }
 0x22a   :  { %v722_v2 = vsel %vm9155_vm0, %v698_v55, %v721_v5  ;;  %v968_v33 = vpop.permute.xlu0 %967  ;;  %v6613_v18 = vpop.permute.xlu1 %428 }
 0x22b   :  { %740 = vst [vmem:[#allocation2 + $0x104] sm:$0x77] %v722_v2  ;;  %v979_v6 = vrot.slane %v968_v33, 4 }
 0x22c   :  { %1035 = vrot.lane.b32.xlu0 %v6466_v30, %s6081_s18  ;;  %913 = vrot.lane.b32.xlu1 %v625_v7, %s6080_s17 }
 0x22d   :  { %v991_v1 = vsel %vm452_vm7, %v979_v6, %v9117_v14 }
 0x22e   :  { %v992_v38 = vsel %vm9164_vm4, %v968_v33, %v991_v1  ;;  %v6623_v55 = vpop.permute.xlu0 %430  ;;  %v6625_v5 = vpop.permute.xlu1 %535 }
 0x22f   :  { %9213 = vst [vmem:[#allocation16_spill] sm:$0xff] %v6623_v55  ;;  %1010 = vst [vmem:[#allocation2 + $0x1e0] sm:$0x77] %v992_v38 }
 0x230   :  { %907 = vrot.lane.b32.xlu0 %v616_v29, %s6080_s17  ;;  %1094 = vrot.lane.b32.xlu1 %v6454_v12, %s6082_s19 }
 0x232   :  { %v6630_v2 = vpop.permute.xlu0 %537  ;;  %v6632_v30 = vpop.permute.xlu1 %638 }
 0x233   :  { %9214 = vst [vmem:[#allocation17_spill] sm:$0xff] %v6630_v2 }
 0x234   :  { %1179 = vrot.lane.b32.xlu0 %v6351_v15, %s6083_s20  ;;  %1181 = vrot.lane.b32.xlu1 %v6361_v20, %s6083_s20 }
 0x236   :  { %v6638_v6 = vpop.permute.xlu0 %640  ;;  %v6640_v33 = vpop.permute.xlu1 %757 }
 0x238   :  { %1023 = vrot.lane.b32.xlu0 %v6527_v53, %s6081_s18  ;;  %1029 = vrot.lane.b32.xlu1 %v6531_v56, %s6081_s18 }
 0x23a   :  { %v6646_v12 = vpop.permute.xlu0 %755  ;;  %v6648_v1 = vpop.permute.xlu1 %832 }
 0x23c   :  { %1112 = vrot.lane.b32.xlu0 %v6485_v48, %s6082_s19  ;;  %1106 = vrot.lane.b32.xlu1 %v6543_v3, %s6082_s19  ;;  %v1330_v48 = vld [vmem:[%s9097_s4] sm:$0xff]  ;;  %v1331_v3 = vld [vmem:[%s9097_s4 + $0x8] sm:$0xff] }
 0x23e   :  { %v6654_v15 = vpop.permute.xlu0 %834  ;;  %v6656_v20 = vpop.permute.xlu1 %909 }
 0x240   :  { %1100 = vrot.lane.b32.xlu0 %v6557_v41, %s6082_s19  ;;  %1171 = vrot.lane.b32.xlu1 %v6469_v32, %s6083_s20  ;;  %v1332_v32 = vld [vmem:[%s9097_s4 + $0x10] sm:$0xf] }
 0x242   :  { %v6662_v53 = vpop.permute.xlu0 %911  ;;  %v6664_v56 = vpop.permute.xlu1 %1025 }
 0x244   :  { %1177 = vrot.lane.b32.xlu0 %v616_v29, %s6083_s20  ;;  %1183 = vrot.lane.b32.xlu1 %v625_v7, %s6083_s20  ;;  %v2590_v7 = vld [vmem:[%s9095_s2] sm:$0xff] }
 0x246   :  { %v6674_v41 = vpop.permute.xlu0 %1027  ;;  %v6676_v38 = vpop.permute.xlu1 %1104 }
 0x248   :  { %1335 = vperm.xlu0 %5951, %v1330_v48   ;;  %1340 = vperm.xlu1 %5952, %v1331_v3   ;;  %v2592_v48 = vld [vmem:[%s9095_s2 + $0x10] sm:$0x3f] }
 0x24a   :  { %v6684_v29 = vpop.permute.xlu0 %1102  ;;  %v435_v14 = vpop.permute.xlu1 %434 }
 0x24b   :  { %v449_v47 = vrot.slane %v435_v14, 4 }
 0x24c   :  { %1345 = vperm.xlu0 %5951, %v1332_v32   ;;  %2595 = vperm.xlu1 %5952, %v2590_v7  }
 0x24e   :  { %v6692_v3 = vpop.permute.xlu0 %436  ;;  %v542_v54 = vpop.permute.xlu1 %541 }
 0x24f   :  { %v9132_v40 = vrot.slane %v6692_v3, 4  ;;  %v556_v19 = vrot.slane %v542_v54, 4 }
 0x250   :  { %2600 = vperm.xlu0 %5951, %v2591_v62   ;;  %2605 = vperm.xlu1 %5952, %v2592_v48   ;;  %v446_v48 = vrot.slane %v6613_v18, 4  ;;  %v9216_v62 = vrot.slane %v6630_v2, 4 }
 0x251   :  { %v466_v32 = vsel %vm452_vm7, %v449_v47, %v9132_v40  ;;  %v553_v47 = vrot.slane %v6625_v5, 4 }
 0x252   :  { %v467_v7 = vsel %vm454_vm15, %v435_v14, %v466_v32  ;;  %v6699_v52 = vpop.permute.xlu0 %543  ;;  %v6701_v57 = vpop.permute.xlu1 %763  ;;  %v550_v32 = vrot.slane %v6508_v9, 4 }
 0x253   :  { %492 = vst [vmem:[#allocation2 + $0x64] sm:$0x33] %v467_v7  ;;  %v9140_v46 = vrot.slane %v6699_v52, 4  ;;  %v9215_v7 = vrot.slane %v6623_v55, 4  ;;  %v568_v11 = vsel %vm452_vm7, %v553_v47, %v9216_v62  ;;  %v9147_v37 = vrot.slane %v6701_v57, 4 }
 0x254   :  { %v9149_v62 = vrot.slane %v6638_v6, 4 }
 0x255   :  { %v572_v14 = vsel %vm452_vm7, %v556_v19, %v9140_v46  ;;  %v462_v44 = vsel %vm452_vm7, %v446_v48, %v9215_v7  ;;  %v9217_v19 = vrot.slane %v6521_v42, 4 }
 0x256   :  { %v573_v40 = vsel %vm560_vm9, %v542_v54, %v572_v14  ;;  %v762_v50 = vpop.permute.xlu0 %761  ;;  %v839_v45 = vpop.permute.xlu1 %838  ;;  %v647_v54 = vrot.slane %v6523_v49, 4  ;;  %v463_v7 = vsel %vm454_vm15, %v6613_v18, %v462_v44 }
 0x257   :  { %598 = vst [vmem:[#allocation2 + $0xa0] sm:$0x11] %v573_v40  ;;  %v776_v39 = vrot.slane %v762_v50, 4  ;;  %v564_v46 = vsel %vm452_vm7, %v550_v32, %v9217_v19  ;;  %v569_v40 = vsel %vm560_vm9, %v6625_v5, %v568_v11  ;;  %v853_v14 = vrot.slane %v839_v45, 4 }
 0x258   :  { %v565_v44 = vsel %vm560_vm9, %v6508_v9, %v564_v46  ;;  %v9218_v11 = vrot.slane %v6537_v61, 4  ;;  %v703_v9 = vrot.slane %v6371_v21, 4 }
 0x259   :  { %v792_v48 = vsel %vm452_vm7, %v776_v39, %v9147_v37  ;;  %v704_v37 = vrot.slane %v6376_v22, 4 }
 0x25a   :  { %v793_v47 = vsel %vm780_vm13, %v762_v50, %v792_v48  ;;  %v6735_v42 = vpop.permute.xlu0 %840  ;;  %v1032_v32 = vpop.permute.xlu1 %1031  ;;  %v1246_v19 = vld [vmem:[#allocation2 + $0x64] sm:$0xff]  ;;  %v658_v18 = vsel %vm452_vm7, %v647_v54, %v9218_v11  ;;  %v650_v50 = vrot.slane %v6632_v30, 4  ;;  %v5159_v48 = vcombine.high %v565_v44, %v569_v40 }
 0x25b   :  { %817 = vst [vmem:[#allocation2 + $0x140] sm:$0x33] %v793_v47  ;;  %v9148_v2 = vrot.slane %v6735_v42, 4  ;;  %v5154_v55 = vcombine.high %v463_v7, %v1246_v19  ;;  %v5153_v39 = vcombine.low %v463_v7, %v1246_v19  ;;  %v1046_v11 = vrot.slane %v1032_v32, 4 }
 0x25c   :  { %v662_v54 = vsel %vm452_vm7, %v650_v50, %v9149_v62 }
 0x25d   :  { %v869_v5 = vsel %vm452_vm7, %v853_v14, %v9148_v2  ;;  %1829 = vmatprep.subr.bf16.mxu1 %v5154_v55  ;;  %v5158_v55 = vcombine.low %v565_v44, %v569_v40  ;;  %v706_v40 = vrot.slane %v6378_v23, 4  ;;  %v773_v44 = vrot.slane %v6646_v12, 4 }
 0x25e   :  { %v870_v47 = vsel %vm9162_vm12, %v839_v45, %v869_v5  ;;  %v6749_v7 = vpop.permute.xlu0 %1033  ;;  %1830 = vmatpush1.bf16.msra.mxu1 %v5153_v39  ;;  %v6751_v19 = vpop.permute.xlu1 %1110  ;;  %v1255_v46 = vld [vmem:[#allocation2 + $0xa0] sm:$0xff]  ;;  %v659_v45 = vsel %vm654_vm10, %v6523_v49, %v658_v18  ;;  %v712_v39 = vsel %vm452_vm7, %v703_v9, %v704_v37  ;;  %v9152_v5 = vrot.slane %v6382_v24, 4 }
 0x25f   :  { %894 = vst [vmem:[#allocation2 + $0x17c] sm:$0x11] %v870_v47  ;;  %v9151_v14 = vrot.slane %v6749_v7, 4  ;;  %1831 = vmatprep.subr.bf16.mxu1 %v5159_v48  ;;  %v5164_v50 = vcombine.high %v1255_v46, %v659_v45  ;;  %v663_v47 = vsel %vm654_vm10, %v6632_v30, %v662_v54  ;;  %v1124_v18 = vrot.slane %v6751_v19, 4 }
 0x260   :  { %v714_v30 = vsel %vm9155_vm0, %v6371_v21, %v712_v39  ;;  %v717_v54 = vsel %vm452_vm7, %v706_v40, %v9152_v5 }
 0x261   :  { %v1062_v2 = vsel %vm452_vm7, %v1046_v11, %v9151_v14  ;;  %v774_v11 = vrot.slane %v6640_v33, 4 }
 0x262   :  { %v1063_v48 = vsel %vm9150_vm2, %v1032_v32, %v1062_v2  ;;  %v1109_v62 = vpop.permute.xlu0 %1108  ;;  %1832 = vmatpush1.bf16.msra.mxu1 %v5158_v55  ;;  %v6770_v49 = vpop.permute.xlu1 %695  ;;  %v770_v2 = vrot.slane %v6551_v26, 4  ;;  %v5163_v32 = vcombine.low %v1255_v46, %v659_v45  ;;  %vm9157_vm2 = vcmask 412675   ;;  %v1270_v46 = vld [vmem:[#allocation2 + $0x104] sm:$0xff] }
 0x263   :  { %1087 = vst [vmem:[#allocation2 + $0x21c] sm:$0x33] %v1063_v48  ;;  %v1123_v9 = vrot.slane %v1109_v62, 4  ;;  %739 = vst.msk [vmem:[#allocation2 + $0x100] sm:$0xf] %vm9156_vm5, %v6770_v49  ;;  %1833 = vmatprep.subr.bf16.mxu1 %v5164_v50  ;;  %v5169_v48 = vcombine.high %v663_v47, %v714_v30  ;;  %v771_v50 = vrot.slane %v6539_v17, 4  ;;  %v788_v45 = vsel %vm452_vm7, %v773_v44, %v774_v11 }
 0x265   :  { %v1139_v55 = vsel %vm452_vm7, %v1123_v9, %v1124_v18  ;;  %v718_v9 = vsel %vm9155_vm0, %v6378_v23, %v717_v54  ;;  %v789_v23 = vsel %vm780_vm13, %v6646_v12, %v788_v45  ;;  %v851_v45 = vrot.slane %v6654_v15, 4 }
 0x266   :  { %v1140_v14 = vsel %vm9153_vm1, %v1109_v62, %v1139_v55  ;;  %v702_v21 = vpop.permute.xlu0 %701  ;;  %1834 = vmatpush1.bf16.msra.mxu1 %v5163_v32  ;;  %v421_v39 = vpop.permute.xlu1 %420  ;;  %v784_v62 = vsel %vm452_vm7, %v770_v2, %v771_v50  ;;  %v5168_v32 = vcombine.low %v663_v47, %v714_v30  ;;  %vm9161_vm1 = vcmask 412674  }
 0x267   :  { %1164 = vst [vmem:[#allocation2 + $0x258] sm:$0x11] %v1140_v14  ;;  %v711_v40 = vrot.slane %v702_v21, 4  ;;  %742 = vst.msk [vmem:[#allocation2 + $0x114] sm:$0x7] %vm9154_vm6, %v702_v21  ;;  %v442_v5 = vrot.slane %v421_v39, 4  ;;  %1835 = vmatprep.subr.bf16.mxu1 %v5169_v48  ;;  %v5174_v48 = vcombine.high %v718_v9, %v1270_v46 }
 0x268   :  { %485 = vst.msk [vmem:[#allocation2 + $0x38] sm:$0x8] %vm9157_vm2, %v421_v39  ;;  %v847_v55 = vrot.slane %v6565_v60, 4  ;;  %v9219_v14 = vrot.slane %v6597_v36, 4  ;;  %v9220_v21 = vrot.slane %v6398_v34, 4  ;;  %vm9160_vm6 = vcmask 410624  }
 0x26a   :  { %v723_v44 = vsel %vm452_vm7, %v9219_v14, %v711_v40  ;;  %v456_v39 = vsel %vm452_vm7, %v9220_v21, %v442_v5  ;;  %v6812_v30 = vpop.permute.xlu0 %689  ;;  %1836 = vmatpush1.bf16.msra.mxu1 %v5168_v32  ;;  %v528_v2 = vpop.permute.xlu1 %527  ;;  %v848_v40 = vrot.slane %v6553_v35, 4  ;;  %v9221_v32 = vrot.slane %v6407_v43, 4 }
 0x26b   :  { %v724_v54 = vsel %vm9155_vm0, %v6597_v36, %v723_v44  ;;  %v457_v47 = vsel %vm454_vm15, %v6398_v34, %v456_v39  ;;  %736 = vst.msk [vmem:[#allocation2 + $0xec] sm:$0xf] %vm9156_vm5, %v6812_v30  ;;  %v549_v5 = vrot.slane %v528_v2, 4  ;;  %1837 = vmatprep.subr.bf16.mxu1 %v5174_v48  ;;  %v785_v36 = vsel %vm780_vm13, %v6551_v26, %v784_v62 }
 0x26c   :  { %741 = vst [vmem:[#allocation2 + $0x10c] sm:$0x77] %v724_v54  ;;  %483 = vst [vmem:[#allocation2 + $0x30] sm:$0x88] %v457_v47  ;;  %v5173_v34 = vcombine.low %v718_v9, %v1270_v46  ;;  %vm9158_vm0 = vcmask 412673   ;;  %v861_v12 = vsel %vm452_vm7, %v847_v55, %v848_v40  ;;  %v5179_v44 = vcombine.high %v785_v36, %v789_v23  ;;  %v1279_v46 = vld [vmem:[#allocation2 + $0x140] sm:$0xff] }
 0x26d   :  { %591 = vst.msk [vmem:[#allocation2 + $0x74] sm:$0xc] %vm9161_vm1, %v528_v2  ;;  %v562_v14 = vsel %vm452_vm7, %v9221_v32, %v549_v5  ;;  %vm9159_vm5 = vcmask 409600   ;;  %v850_v9 = vrot.slane %v6648_v1, 4  ;;  %v922_v62 = vrot.slane %v6662_v53, 4 }
 0x26e   :  { %v563_v21 = vsel %vm560_vm9, %v6407_v43, %v562_v14  ;;  %v439_v39 = vpop.permute.xlu0 %438  ;;  %1838 = vmatpush1.bf16.msra.mxu1 %v5173_v34  ;;  %v631_v26 = vpop.permute.xlu1 %630  ;;  %v862_v43 = vsel %vm9162_vm12, %v6565_v60, %v861_v12  ;;  %v919_v54 = vrot.slane %v6575_v16, 4  ;;  %v921_v47 = vrot.slane %v6656_v20, 4 }
 0x26f   :  { %589 = vst [vmem:[#allocation2 + $0x6c] sm:$0xcc] %v563_v21  ;;  %v451_v55 = vrot.slane %v439_v39, 4  ;;  %495 = vst.msk [vmem:[#allocation2 + $0x74] sm:$0x3] %vm9160_vm6, %v439_v39  ;;  %v646_v48 = vrot.slane %v631_v26, 4  ;;  %1839 = vmatprep.subr.bf16.mxu1 %v5179_v44  ;;  %v5178_v2 = vcombine.low %v785_v36, %v789_v23  ;;  %v865_v5 = vsel %vm452_vm7, %v850_v9, %v851_v45 }
 0x270   :  { %678 = vst.msk [vmem:[#allocation2 + $0xb0] sm:$0xe] %vm9158_vm0, %v631_v26  ;;  %v9222_v34 = vrot.slane %v6692_v3, 4  ;;  %v9223_v14 = vrot.slane %v6416_v51, 4  ;;  %v5184_v21 = vcombine.high %v1279_v46, %v862_v43  ;;  %v976_v60 = vrot.slane %v6394_v31, 4  ;;  %v1288_v26 = vld [vmem:[#allocation2 + $0x17c] sm:$0xff] }
 0x271   :  { %v918_v9 = vrot.slane %v6567_v4, 4 }
 0x272   :  { %v468_v32 = vsel %vm452_vm7, %v9222_v34, %v451_v55  ;;  %v656_v44 = vsel %vm452_vm7, %v9223_v14, %v646_v48  ;;  %v546_v36 = vpop.permute.xlu0 %545  ;;  %1840 = vmatpush1.bf16.msra.mxu1 %v5178_v2  ;;  %v748_v39 = vpop.permute.xlu1 %747  ;;  %v933_v55 = vsel %vm452_vm7, %v921_v47, %v922_v62  ;;  %v866_v2 = vsel %vm9162_vm12, %v6648_v1, %v865_v5 }
 0x273   :  { %v469_v12 = vsel %vm454_vm15, %v6692_v3, %v468_v32  ;;  %v657_v23 = vsel %vm654_vm10, %v6416_v51, %v656_v44  ;;  %v558_v48 = vrot.slane %v546_v36, 4  ;;  %601 = vst.msk [vmem:[#allocation2 + $0xb0] sm:$0x1] %vm9159_vm5, %v546_v36  ;;  %v769_v34 = vrot.slane %v748_v39, 4  ;;  %1841 = vmatprep.subr.bf16.mxu1 %v5184_v21 }
 0x274   :  { %493 = vst [vmem:[#allocation2 + $0x6c] sm:$0x33] %v469_v12  ;;  %676 = vst [vmem:[#allocation2 + $0xa8] sm:$0xee] %v657_v23  ;;  %v973_v51 = vrot.slane %v6388_v27, 4  ;;  %v977_v3 = vrot.slane %v6390_v28, 4  ;;  %v5183_v32 = vcombine.low %v1279_v46, %v862_v43  ;;  %v929_v47 = vsel %vm452_vm7, %v918_v9, %v919_v54 }
 0x275   :  { %810 = vst.msk [vmem:[#allocation2 + $0x114] sm:$0x8] %vm9157_vm2, %v748_v39  ;;  %v9224_v14 = vrot.slane %v6699_v52, 4  ;;  %v9225_v12 = vrot.slane %v6425_v58, 4  ;;  %v5189_v23 = vcombine.high %v866_v2, %v1288_v26  ;;  %v974_v36 = vrot.slane %v6384_v25, 4 }
 0x276   :  { %vm9226_vm2 = vcmask 990208   ;;  %v766_v43 = vpop.permute.xlu0 %765  ;;  %1842 = vmatpush1.bf16.msra.mxu1 %v5183_v32  ;;  %v825_v5 = vpop.permute.xlu1 %824  ;;  %v987_v9 = vsel %vm452_vm7, %v976_v60, %v977_v3  ;;  %v1041_v60 = vrot.slane %v6577_v0, 4  ;;  %v9227_v32 = vrot.slane %v6701_v57, 4 }
 0x277   :  { %v574_v44 = vsel %vm452_vm7, %v9224_v14, %v558_v48  ;;  %v782_v21 = vsel %vm452_vm7, %v9225_v12, %v769_v34  ;;  %v934_v39 = vsel %vm9226_vm2, %v6656_v20, %v933_v55  ;;  %v1040_v48 = vrot.slane %v6583_v63, 4  ;;  %819 = vst.msk [vmem:[#allocation2 + $0x150] sm:$0x3] %vm9160_vm6, %v766_v43  ;;  %1843 = vmatprep.subr.bf16.mxu1 %v5189_v23 }
 0x278   :  { %v575_v1 = vsel %vm560_vm9, %v6699_v52, %v574_v44  ;;  %v783_v46 = vsel %vm780_vm13, %v6425_v58, %v782_v21  ;;  %v778_v34 = vrot.slane %v766_v43, 4  ;;  %v846_v20 = vrot.slane %v825_v5, 4  ;;  %887 = vst.msk [vmem:[#allocation2 + $0x150] sm:$0xc] %vm9161_vm1, %v825_v5 }
 0x279   :  { %599 = vst [vmem:[#allocation2 + $0xa8] sm:$0x11] %v575_v1  ;;  %809 = vst [vmem:[#allocation2 + $0x10c] sm:$0x88] %v783_v46  ;;  %v982_v58 = vsel %vm452_vm7, %v973_v51, %v974_v36  ;;  %v930_v52 = vsel %vm9226_vm2, %v6567_v4, %v929_v47  ;;  %v5188_v55 = vcombine.low %v866_v2, %v1288_v26  ;;  %v9228_v44 = vrot.slane %v6427_v59, 4 }
 0x27a   :  { %v794_v14 = vsel %vm452_vm7, %v9227_v32, %v778_v34  ;;  %v5194_v21 = vcombine.high %v930_v52, %v934_v39  ;;  %v988_v23 = vsel %vm9164_vm4, %v6394_v31, %v987_v9  ;;  %v843_v26 = vpop.permute.xlu0 %842  ;;  %v902_v2 = vpop.permute.xlu1 %901  ;;  %v1054_v47 = vsel %vm452_vm7, %v1040_v48, %v1041_v60 }
 0x27b   :  { %v859_v12 = vsel %vm452_vm7, %v9228_v44, %v846_v20  ;;  %v795_v51 = vsel %vm780_vm13, %v6701_v57, %v794_v14  ;;  %1844 = vmatpush1.bf16.msra.mxu1 %v5188_v55  ;;  %v855_v1 = vrot.slane %v843_v26, 4  ;;  %896 = vst.msk [vmem:[#allocation2 + $0x18c] sm:$0x1] %vm9159_vm5, %v843_v26  ;;  %v917_v46 = vrot.slane %v902_v2, 4  ;;  %v1303_v20 = vld [vmem:[#allocation2 + $0x1e0] sm:$0xff] }
 0x27c   :  { %v860_v4 = vsel %vm9162_vm12, %v6427_v59, %v859_v12  ;;  %818 = vst [vmem:[#allocation2 + $0x148] sm:$0x33] %v795_v51  ;;  %948 = vst.msk [vmem:[#allocation2 + $0x18c] sm:$0xe] %vm9158_vm0, %v902_v2  ;;  %1845 = vmatprep.subr.bf16.mxu1 %v5194_v21  ;;  %v984_v57 = vsel %vm9164_vm4, %v6388_v27, %v982_v58  ;;  %v5193_v31 = vcombine.low %v930_v52, %v934_v39  ;;  %vm9231_vm2 = vcmask 973824   ;;  %v9236_v2 = vld [vmem:[#allocation16_spill] sm:$0xff] }
 0x27d   :  { %886 = vst [vmem:[#allocation2 + $0x148] sm:$0xcc] %v860_v4  ;;  %v1044_v59 = vrot.slane %v6674_v41, 4  ;;  %v9229_v43 = vrot.slane %v6735_v42, 4  ;;  %v9230_v9 = vrot.slane %v6449_v10, 4  ;;  %v5199_v34 = vcombine.high %v984_v57, %v988_v23 }
 0x27e   :  { %v1055_v55 = vsel %vm9231_vm2, %v6583_v63, %v1054_v47  ;;  %vm9232_vm0 = vcmask 990208   ;;  %v427_v39 = vpop.permute.xlu0 %426  ;;  %v433_v58 = vpop.permute.xlu1 %432  ;;  %v1043_v52 = vrot.slane %v6664_v56, 4  ;;  %v1120_v14 = vrot.slane %v6684_v29, 4 }
 0x27f   :  { %v871_v5 = vsel %vm452_vm7, %v9229_v43, %v855_v1  ;;  %v927_v48 = vsel %vm452_vm7, %v9230_v9, %v917_v46  ;;  %1846 = vmatpush1.bf16.msra.mxu1 %v5193_v31  ;;  %v445_v44 = vrot.slane %v427_v39, 4  ;;  %vm9233_vm5 = vcmask 412672   ;;  %v9238_v46 = vld [vmem:[#allocation14_spill] sm:$0xff] }
 0x280   :  { %v872_v32 = vsel %vm9162_vm12, %v6735_v42, %v871_v5  ;;  %v928_v27 = vsel %vm9232_vm0, %v6449_v10, %v927_v48  ;;  %488 = vst.msk [vmem:[#allocation2 + $0x4c] sm:$0xf] %vm9233_vm5, %v427_v39  ;;  %v448_v12 = vrot.slane %v433_v58, 4  ;;  %vm9234_vm2 = vmmov %vm9233_vm5  ;;  %1847 = vmatprep.subr.bf16.mxu1 %v5199_v34  ;;  %v1117_v63 = vrot.slane %v6591_v13, 4  ;;  %v1312_v9 = vld [vmem:[#allocation2 + $0x21c] sm:$0xff]  ;;  %v1238_v48 = vld [vmem:[#allocation2 + $0x30] sm:$0xff] }
 0x281   :  { %895 = vst [vmem:[#allocation2 + $0x184] sm:$0x11] %v872_v32  ;;  %947 = vst [vmem:[#allocation2 + $0x184] sm:$0xee] %v928_v27  ;;  %v5198_v42 = vcombine.low %v984_v57, %v988_v23  ;;  %v5204_v10 = vcombine.high %v1303_v20, %v1055_v55  ;;  %v1058_v21 = vsel %vm452_vm7, %v1043_v52, %v1044_v59  ;;  %v1121_v51 = vrot.slane %v6676_v38, 4  ;;  %v1247_v52 = vld [vmem:[#allocation2 + $0x6c] sm:$0xff] }
 0x282   :  { %491 = vst.msk [vmem:[#allocation2 + $0x60] sm:$0xf] %vm9234_vm2, %v433_v58  ;;  %v9235_v4 = vrot.slane %v6506_v8, 4  ;;  %v9237_v47 = vrot.slane %v9236_v2, 4  ;;  %v1118_v31 = vrot.slane %v9238_v46, 4  ;;  %v1174_v43 = vpop.permute.xlu0 %1173  ;;  %v540_v5 = vpop.permute.xlu1 %539  ;;  %vm9239_vm0 = vmmov %vm9234_vm2  ;;  %vm9240_vm5 = vcmask 973824  }
 0x283   :  { %1848 = vmatpush1.bf16.msra.mxu1 %v5198_v42  ;;  %v1135_v34 = vsel %vm452_vm7, %v1120_v14, %v1121_v51  ;;  %v555_v32 = vrot.slane %v540_v5, 4  ;;  %597 = vst.msk [vmem:[#allocation2 + $0x9c] sm:$0xf] %vm9239_vm0, %v540_v5  ;;  %v5203_v58 = vcombine.low %v1303_v20, %v1055_v55  ;;  %vm9241_vm2 = vcmask 965632  }
 0x284   :  { %v460_v26 = vsel %vm452_vm7, %v9235_v4, %v445_v44  ;;  %v464_v1 = vsel %vm452_vm7, %v9237_v47, %v448_v12  ;;  %1849 = vmatprep.subr.bf16.mxu1 %v5204_v10  ;;  %v1131_v44 = vsel %vm452_vm7, %v1117_v63, %v1118_v31  ;;  %v1136_v14 = vsel %vm9241_vm2, %v6684_v29, %v1135_v34 }
 0x285   :  { %v461_v23 = vsel %vm454_vm15, %v6506_v8, %v460_v26  ;;  %v465_v57 = vsel %vm454_vm15, %v9236_v2, %v464_v1  ;;  %v1059_v8 = vsel %vm9240_vm5, %v6664_v56, %v1058_v21  ;;  %v1188_v26 = vrot.slane %v1174_v43, 4  ;;  %v9242_v2 = vld [vmem:[#allocation17_spill] sm:$0xff]  ;;  %vm9244_vm5 = vmmov %vm9241_vm2 }
 0x286   :  { %v5151_v27 = vcombine.high %v1238_v48, %v461_v23  ;;  %v5150_v39 = vcombine.low %v1238_v48, %v461_v23  ;;  %v5209_v12 = vcombine.high %v1059_v8, %v1312_v9  ;;  %v5156_v42 = vcombine.high %v465_v57, %v1247_v52  ;;  %v534_v4 = vpop.permute.xlu0 %533  ;;  %v6952_v10 = vpop.permute.xlu1 %1175  ;;  %v9245_v23 = vld [vmem:[#allocation13_spill] sm:$0xff] }
 0x287   :  { %1850 = vmatpush1.bf16.msra.mxu1 %v5203_v58  ;;  %v9243_v56 = vrot.slane %v9242_v2, 4  ;;  %v552_v55 = vrot.slane %v534_v4, 4  ;;  %594 = vst.msk [vmem:[#allocation2 + $0x88] sm:$0xf] %vm9239_vm0, %v534_v4  ;;  %v1189_v63 = vrot.slane %v6952_v10, 4  ;;  %v1132_v29 = vsel %vm9244_vm5, %v6591_v13, %v1131_v44  ;;  %vm9248_vm5 = vmmov %vm9239_vm0 }
 0x288   :  { %1929 = vmatprep.subr.bf16.mxu0 %v5151_v27  ;;  %1851 = vmatprep.subr.bf16.mxu1 %v5209_v12  ;;  %v5208_v21 = vcombine.low %v1059_v8, %v1312_v9  ;;  %v5155_v47 = vcombine.low %v465_v57, %v1247_v52  ;;  %v705_v1 = vrot.slane %v6812_v30, 4  ;;  %v9246_v5 = vrot.slane %v9245_v23, 4  ;;  %v1321_v12 = vld [vmem:[#allocation2 + $0x258] sm:$0xff] }
 0x289   :  { %1930 = vmatpush1.bf16.msra.mxu0 %v5150_v39  ;;  %v570_v20 = vsel %vm452_vm7, %v9243_v56, %v555_v32  ;;  %v1199_v34 = vsel %vm452_vm7, %v1188_v26, %v1189_v63  ;;  %v5214_v32 = vcombine.high %v1132_v29, %v1136_v14  ;;  %vm9247_vm2 = vcmask 957440  }
 0x28a   :  { %1931 = vmatprep.subr.bf16.mxu0 %v5156_v42  ;;  %v566_v48 = vsel %vm452_vm7, %v9246_v5, %v552_v55  ;;  %v571_v27 = vsel %vm560_vm9, %v9242_v2, %v570_v20  ;;  %v1200_v13 = vsel %vm9247_vm2, %v1174_v43, %v1199_v34  ;;  %v637_v57 = vpop.permute.xlu0 %636  ;;  %v643_v30 = vpop.permute.xlu1 %642  ;;  %v708_v52 = vrot.slane %v6770_v49, 4  ;;  %vm9251_vm2 = vmmov %vm9239_vm0  ;;  %v7008_v34 = vld [vmem:[%s9096_s3] ss:$12 sps:$4 sm:$0xff]  }
 0x28b   :  { %v567_v39 = vsel %vm560_vm9, %v9245_v23, %v566_v48  ;;  %1852 = vmatpush1.bf16.msra.mxu1 %v5208_v21  ;;  %v649_v9 = vrot.slane %v637_v57, 4  ;;  %681 = vst.msk [vmem:[#allocation2 + $0xc4] sm:$0xf] %vm9239_vm0, %v637_v57  ;;  %v652_v8 = vrot.slane %v643_v30, 4  ;;  %v5213_v44 = vcombine.low %v1132_v29, %v1136_v14  ;;  %v1256_v29 = vld [vmem:[#allocation2 + $0xa8] sm:$0xff] }
 0x28c   :  { %684 = vst.msk [vmem:[#allocation2 + $0xd8] sm:$0xf] %vm9248_vm5, %v643_v30  ;;  %1853 = vmatprep.subr.bf16.mxu1 %v5214_v32  ;;  %v5161_v58 = vcombine.high %v567_v39, %v571_v27  ;;  %v5160_v42 = vcombine.low %v567_v39, %v571_v27  ;;  %v715_v43 = vsel %vm452_vm7, %v704_v37, %v705_v1  ;;  %v9249_v4 = vrot.slane %v6537_v61, 4  ;;  %v1271_v39 = vld [vmem:[#allocation2 + $0x10c] sm:$0xff] }
 0x28d   :  { %1932 = vmatpush1.bf16.msra.mxu0 %v5155_v47  ;;  %v9250_v2 = vrot.slane %v6638_v6, 4  ;;  %v5219_v20 = vcombine.high %v1321_v12, %v1200_v13  ;;  %vm9252_vm5 = vcmask 1014784   ;;  %v5218_v1 = vcombine.low %v1321_v12, %v1200_v13 }
 0x28e   :  { %v660_v26 = vsel %vm452_vm7, %v9249_v4, %v649_v9  ;;  %1933 = vmatprep.subr.bf16.mxu0 %v5161_v58  ;;  %v6989_v55 = vpop.permute.xlu0 %959  ;;  %v6991_v37 = vpop.permute.xlu1 %965  ;;  %v9253_v23 = vrot.slane %v6382_v24, 4 }
 0x28f   :  { %v664_v56 = vsel %vm452_vm7, %v9250_v2, %v652_v8  ;;  %v661_v49 = vsel %vm654_vm10, %v6537_v61, %v660_v26  ;;  %1854 = vmatpush1.bf16.msra.mxu1 %v5213_v44  ;;  %1006 = vst.msk [vmem:[#allocation2 + $0x1c8] sm:$0xf] %vm9251_vm2, %v6989_v55  ;;  %v1229_v61 = vld [vmem:[%s9096_s3 + $0x18] sm:$0x33]  ;;  %vm9254_vm2 = vcmask 411648   ;;  %v9255_v8 = vld [vmem:[#allocation15_spill] sm:$0xff] }
 0x290   :  { %v665_v14 = vsel %vm654_vm10, %v6638_v6, %v664_v56  ;;  %1009 = vst.msk [vmem:[#allocation2 + $0x1dc] sm:$0xf] %vm9239_vm0, %v6991_v37  ;;  %1855 = vmatprep.subr.bf16.mxu1 %v5219_v20  ;;  %v5166_v21 = vcombine.high %v1256_v29, %v661_v49  ;;  %v5165_v47 = vcombine.low %v1256_v29, %v661_v49  ;;  %v9256_v58 = vrot.slane %v9255_v8, 4  ;;  %v9259_v20 = vld [vmem:[#allocation10_spill] sm:$0xff] }
 0x291   :  { %1934 = vmatpush1.bf16.msra.mxu0 %v5160_v42  ;;  %v716_v6 = vsel %vm9252_vm5, %v6376_v22, %v715_v43  ;;  %v719_v5 = vsel %vm452_vm7, %v9253_v23, %v708_v52  ;;  %v7010_v57 = vcombine.high %v1229_v61, %v1229_v61  ;;  %v9260_v49 = vrot.slane %v9259_v20, 4 }
 0x292   :  { %1935 = vmatprep.subr.bf16.mxu0 %v5166_v21  ;;  %v5171_v48 = vcombine.high %v665_v14, %v716_v6  ;;  %v972_v32 = vpop.permute.xlu0 %971  ;;  %v760_v27 = vpop.permute.xlu1 %759  ;;  %v720_v30 = vsel %vm9252_vm5, %v6382_v24, %v719_v5  ;;  %v5170_v9 = vcombine.low %v665_v14, %v716_v6  ;;  %v7034_v29 = vcombine.low %v1229_v61, %v1229_v61 }
 0x293   :  { %1856 = vmatpush1.bf16.msra.mxu1 %v5218_v1  ;;  %v981_v22 = vrot.slane %v972_v32, 4  ;;  %1012 = vst.msk [vmem:[#allocation2 + $0x1f0] sm:$0x7] %vm9254_vm2, %v972_v32  ;;  %v775_v13 = vrot.slane %v760_v27, 4  ;;  %v5176_v44 = vcombine.high %v720_v30, %v1271_v39  ;;  %vm9257_vm2 = vmmov %vm9239_vm0  ;;  %v5175_v2 = vcombine.low %v720_v30, %v1271_v39 }
 0x294   :  { %816 = vst.msk [vmem:[#allocation2 + $0x13c] sm:$0xf] %vm9239_vm0, %v760_v27  ;;  %vm9258_vm0 = vcmask 412675   ;;  %vm9261_vm5 = vcmask 973824   ;;  %v975_v32 = vrot.slane %v6989_v55, 4  ;;  %v978_v27 = vrot.slane %v6991_v37, 4 }
 0x295   :  { %1936 = vmatpush1.bf16.msra.mxu0 %v5165_v47  ;;  %v993_v52 = vsel %vm452_vm7, %v9256_v58, %v981_v22  ;;  %v790_v24 = vsel %vm452_vm7, %v774_v11, %v775_v13  ;;  %v9263_v30 = vmov 0   ;;  %v1289_v37 = vld [vmem:[#allocation2 + $0x184] sm:$0xff]  ;;  %v9265_v58 = vrot.slane %v6749_v7, 4 }
 0x296   :  { %1937 = vmatprep.subr.bf16.mxu0 %v5171_v48  ;;  %1858 = vmatmul.mubr.bf16.vlgmr.msra.gmra.mrb[8].mxu1 %v7008_v34  ;;  %v994_v12 = vsel %vm9164_vm4, %v9255_v8, %v993_v52  ;;  %v754_v42 = vpop.permute.xlu0 %753  ;;  %v1018_v43 = vpop.permute.xlu1 %1017  ;;  %v791_v11 = vsel %vm780_vm13, %v6640_v33, %v790_v24  ;;  %v1280_v48 = vld [vmem:[#allocation2 + $0x148] sm:$0xff]  ;;  %v985_v52 = vsel %vm452_vm7, %v974_v36, %v975_v32 }
 0x297   :  { %1867 = vmatprep.mubr.bf16.mxu1 %v7010_v57  ;;  %1011 = vst [vmem:[#allocation2 + $0x1e8] sm:$0x77] %v994_v12  ;;  %v772_v4 = vrot.slane %v754_v42, 4  ;;  %813 = vst.msk [vmem:[#allocation2 + $0x128] sm:$0xf] %vm9257_vm2, %v754_v42  ;;  %v1039_v26 = vrot.slane %v1018_v43, 4  ;;  %v986_v36 = vsel %vm9164_vm4, %v6384_v25, %v985_v52 }
 0x298   :  { %1080 = vst.msk [vmem:[#allocation2 + $0x1f0] sm:$0x8] %vm9258_vm0, %v1018_v43  ;;  %vm9262_vm0 = vmmov %vm9257_vm2  ;;  %v989_v43 = vsel %vm452_vm7, %v977_v3, %v978_v27 }
 0x299   :  { %1938 = vmatpush1.bf16.msra.mxu0 %v5170_v9  ;;  %v786_v56 = vsel %vm452_vm7, %v771_v50, %v772_v4  ;;  %v1052_v14 = vsel %vm452_vm7, %v9260_v49, %v1039_v26 }
 0x29a   :  { %1939 = vmatprep.subr.bf16.mxu0 %v5176_v44  ;;  %v787_v21 = vsel %vm780_vm13, %v6539_v17, %v786_v56  ;;  %v1053_v47 = vsel %vm9261_vm5, %v9259_v20, %v1052_v14  ;;  %v831_v6 = vpop.permute.xlu0 %830  ;;  %v837_v1 = vpop.permute.xlu1 %836  ;;  %vm9264_vm5 = vmmov %vm9262_vm0 }
 0x29b   :  { %1079 = vst [vmem:[#allocation2 + $0x1e8] sm:$0x88] %v1053_v47  ;;  %v849_v50 = vrot.slane %v831_v6, 4  ;;  %890 = vst.msk [vmem:[#allocation2 + $0x164] sm:$0xf] %vm9257_vm2, %v831_v6  ;;  %v852_v23 = vrot.slane %v837_v1, 4  ;;  %v5181_v61 = vcombine.high %v787_v21, %v791_v11  ;;  %v5180_v5 = vcombine.low %v787_v21, %v791_v11 }
 0x29c   :  { %893 = vst.msk [vmem:[#allocation2 + $0x178] sm:$0xf] %vm9262_vm0, %v837_v1  ;;  %vm9266_vm2 = vcmask 973824  }
 0x29d   :  { %1940 = vmatpush1.bf16.msra.mxu0 %v5175_v2  ;;  %v863_v33 = vsel %vm452_vm7, %v848_v40, %v849_v50  ;;  %v867_v17 = vsel %vm452_vm7, %v851_v45, %v852_v23  ;;  %v9267_v2 = vld [vmem:[#allocation11_spill] sm:$0xff] }
 0x29e   :  { %1941 = vmatprep.subr.bf16.mxu0 %v5181_v61  ;;  %1868 = vmatmul.mubr.bf16.gmra.mrb[12].mxu1 %v7034_v29  ;;  %v864_v39 = vsel %vm9162_vm12, %v6553_v35, %v863_v33  ;;  %v868_v22 = vsel %vm9162_vm12, %v6654_v15, %v867_v17  ;;  %v1036_v13 = vpop.permute.xlu0 %1035  ;;  %v914_v40 = vpop.permute.xlu1 %913  ;;  %v9268_v56 = vrot.slane %v9267_v2, 4 }
 0x29f   :  { %1908 = vmatprep.mubr.bf16.mxu1 %v9263_v30  ;;  %v1048_v45 = vrot.slane %v1036_v13, 4  ;;  %1089 = vst.msk [vmem:[#allocation2 + $0x22c] sm:$0x3] %vm9160_vm6, %v1036_v13  ;;  %v923_v9 = vrot.slane %v914_v40, 4  ;;  %v5186_v55 = vcombine.high %v1280_v48, %v864_v39  ;;  %v5185_v8 = vcombine.low %v1280_v48, %v864_v39  ;;  %v7112_v13 = vld [vmem:[%s9096_s3 + $0x8] ss:$12 sps:$4 sm:$0xff]  }
 0x2a0   :  { %954 = vst.msk [vmem:[#allocation2 + $0x1b4] sm:$0xf] %vm9264_vm5, %v914_v40  ;;  %v5191_v15 = vcombine.high %v868_v22, %v1289_v37  ;;  %vm9269_vm5 = vcmask 990208   ;;  %vm9277_vm6 = vcmask 409600  }
 0x2a1   :  { %1942 = vmatpush1.bf16.msra.mxu0 %v5180_v5  ;;  %v1064_v35 = vsel %vm452_vm7, %v9265_v58, %v1048_v45  ;;  %v935_v24 = vsel %vm452_vm7, %v922_v62, %v923_v9  ;;  %v990_v62 = vsel %vm9164_vm4, %v6390_v28, %v989_v43 }
 0x2a2   :  { %1943 = vmatprep.subr.bf16.mxu0 %v5186_v55  ;;  %v1065_v44 = vsel %vm9266_vm2, %v6749_v7, %v1064_v35  ;;  %v908_v12 = vpop.permute.xlu0 %907  ;;  %v1095_v42 = vpop.permute.xlu1 %1094  ;;  %v5190_v7 = vcombine.low %v868_v22, %v1289_v37  ;;  %v936_v49 = vsel %vm9269_vm5, %v6662_v53, %v935_v24  ;;  %vm9270_vm2 = vmmov %vm9269_vm5  ;;  %v5201_v53 = vcombine.high %v986_v36, %v990_v62  ;;  %v5972_v22 = vld [vmem:[#allocation2 + $0x150] ss:$20 sps:$4 sm:$0xff]  }
 0x2a3   :  { %1088 = vst [vmem:[#allocation2 + $0x224] sm:$0x33] %v1065_v44  ;;  %v920_v4 = vrot.slane %v908_v12, 4  ;;  %951 = vst.msk [vmem:[#allocation2 + $0x1a0] sm:$0xf] %vm9262_vm0, %v908_v12  ;;  %v1116_v26 = vrot.slane %v1095_v42, 4  ;;  %v5200_v48 = vcombine.low %v986_v36, %v990_v62 }
 0x2a4   :  { %1157 = vst.msk [vmem:[#allocation2 + $0x22c] sm:$0xc] %vm9161_vm1, %v1095_v42  ;;  %vm9271_vm0 = vcmask 965632   ;;  %vm9272_vm5 = vcmask 957440   ;;  %vm9278_vm1 = vcmask 412672  }
 0x2a5   :  { %1944 = vmatpush1.bf16.msra.mxu0 %v5185_v8  ;;  %v931_v3 = vsel %vm452_vm7, %v919_v54, %v920_v4  ;;  %v1129_v20 = vsel %vm452_vm7, %v9268_v56, %v1116_v26  ;;  %v5975_v52 = vld [vmem:[#allocation2 + $0x178] ss:$20 sps:$4 sm:$0xff]  }
 0x2a6   :  { %1945 = vmatprep.subr.bf16.mxu0 %v5191_v15  ;;  %v932_v14 = vsel %vm9270_vm2, %v6575_v16, %v931_v3  ;;  %v1130_v25 = vsel %vm9271_vm0, %v9267_v2, %v1129_v20  ;;  %v1180_v11 = vpop.permute.xlu0 %1179  ;;  %v7092_v21 = vpop.permute.xlu1 %1181  ;;  %vm9273_vm2 = vcmask 412672   ;;  %v5976_v26 = vld [vmem:[#allocation2 + $0x38] ss:$20 sps:$4 sm:$0xff]   ;;  %v7142_v2 = vld [vmem:[%s9096_s3 + $0x20] ss:$0 sps:$4 sm:$0x33]  }
 0x2a7   :  { %1156 = vst [vmem:[#allocation2 + $0x224] sm:$0xcc] %v1130_v25  ;;  %v1191_v54 = vrot.slane %v1180_v11, 4  ;;  %v1192_v47 = vrot.slane %v7092_v21, 4  ;;  %v5196_v6 = vcombine.high %v932_v14, %v936_v49  ;;  %v5195_v1 = vcombine.low %v932_v14, %v936_v49  ;;  %vm9274_vm0 = vmmov %vm9273_vm2 }
 0x2a9   :  { %1946 = vmatpush1.bf16.msra.mxu0 %v5190_v7  ;;  %v1203_v28 = vsel %vm452_vm7, %v1191_v54, %v1192_v47  ;;  %v9281_v7 = vld [vmem:[#allocation12_spill] sm:$0xff]  ;;  %v5979_v54 = vld [vmem:[#allocation2 + $0x60] ss:$20 sps:$4 sm:$0xff]  }
 0x2aa   :  { %1947 = vmatprep.subr.bf16.mxu0 %v5196_v6  ;;  %v1204_v16 = vsel %vm9272_vm5, %v1180_v11, %v1203_v28  ;;  %v1024_v50 = vpop.permute.xlu0 %1023  ;;  %v1030_v23 = vpop.permute.xlu1 %1029  ;;  %vm9275_vm5 = vcmask 973824   ;;  %v9282_v36 = vrot.slane %v9281_v7, 4  ;;  %v5977_v3 = vld [vmem:[#allocation2 + $0x1a0] ss:$20 sps:$4 sm:$0xff]   ;;  %v6041_v28 = vld [vmem:[%s9096_s3 + $0x4] ss:$12 sps:$4 sm:$0xff]  }
 0x2ab   :  { %v1042_v61 = vrot.slane %v1024_v50, 4  ;;  %1083 = vst.msk [vmem:[#allocation2 + $0x204] sm:$0xf] %vm9273_vm2, %v1024_v50  ;;  %v1045_v5 = vrot.slane %v1030_v23, 4  ;;  %v5224_v33 = vcombine.high %v1204_v16, %v1204_v16  ;;  %v5223_v17 = vcombine.low %v1204_v16, %v1204_v16  ;;  %vm9276_vm2 = vmmov %vm9275_vm5 }
 0x2ac   :  { %1086 = vst.msk [vmem:[#allocation2 + $0x218] sm:$0xf] %vm9274_vm0, %v1030_v23  ;;  %vm9163_vm0 = vcmask 64512  }
 0x2ad   :  { %1948 = vmatpush1.bf16.msra.mxu0 %v5195_v1  ;;  %v1056_v32 = vsel %vm452_vm7, %v1041_v60, %v1042_v61  ;;  %v1060_v27 = vsel %vm452_vm7, %v1044_v59, %v1045_v5  ;;  %5228 = vmatprep.subr.msk.bf16.mxu1 %vm452_vm7, %v5224_v33  ;;  %v1811_v39 = vsel %vm452_vm7, %v5223_v17, 0  ;;  %v1304_v59 = vld [vmem:[#allocation2 + $0x1e8] sm:$0xff] }
 0x2ae   :  { %1949 = vmatprep.subr.bf16.mxu0 %v5201_v53  ;;  %v1057_v40 = vsel %vm9275_vm5, %v6577_v0, %v1056_v32  ;;  %v1061_v60 = vsel %vm9276_vm2, %v6674_v41, %v1060_v27  ;;  %v1113_v45 = vpop.permute.xlu0 %1112  ;;  %v1107_v9 = vpop.permute.xlu1 %1106  ;;  %1877 = vmatpush1.bf16.msra.mxu1 %v1811_v39  ;;  %v1313_v55 = vld [vmem:[#allocation2 + $0x224] sm:$0xff]  ;;  %vm9279_vm5 = vcmask 965632   ;;  %v5986_v32 = vld [vmem:[#allocation2 + $0xd8] ss:$20 sps:$4 sm:$0xff]   ;;  %v5988_v39 = vld [vmem:[#allocation2 + $0x100] ss:$20 sps:$4 sm:$0xff]  }
 0x2af   :  { %v1125_v8 = vrot.slane %v1113_v45, 4  ;;  %1166 = vst.msk [vmem:[#allocation2 + $0x268] sm:$0x1] %vm9277_vm6, %v1113_v45  ;;  %v1122_v37 = vrot.slane %v1107_v9, 4  ;;  %5404 = vmatprep.subr.bf16.mxu1 %v5972_v22  ;;  %v5206_v58 = vcombine.high %v1304_v59, %v1057_v40  ;;  %v5205_v35 = vcombine.low %v1304_v59, %v1057_v40  ;;  %v5974_v0 = vld [vmem:[#allocation2 + $0x10] ss:$20 sps:$4 sm:$0xff]   ;;  %vm9283_vm2 = vmmov %vm9279_vm5 }
 0x2b0   :  { %1163 = vst.msk [vmem:[#allocation2 + $0x254] sm:$0xf] %vm9278_vm1, %v1107_v9  ;;  %v5211_v15 = vcombine.high %v1061_v60, %v1313_v55  ;;  %vm9280_vm6 = vcmask 412673   ;;  %v5210_v4 = vcombine.low %v1061_v60, %v1313_v55  ;;  %v5981_v53 = vld [vmem:[#allocation2 + $0x88] ss:$20 sps:$4 sm:$0xff]   ;;  %v2156_v60 = vld [vmem:[%s9098_s5 + $0x80] sm:$0xff] }
 0x2b1   :  { %1950 = vmatpush1.bf16.msra.mxu0 %v5200_v48  ;;  %v1141_v41 = vsel %vm452_vm7, %v1124_v18, %v1125_v8  ;;  %5229 = vmatmul.mubr.msk.bf16.vlgmr.msra.gmra.mrb[8].mxu1 %vm9163_vm0, %v7112_v13  ;;  %v1137_v43 = vsel %vm452_vm7, %v1121_v51, %v1122_v37  ;;  %v5990_v40 = vld [vmem:[#allocation2 + $0x128] ss:$20 sps:$4 sm:$0xff]   ;;  %v2158_v55 = vld [vmem:[%s9098_s5 + $0x90] sm:$0xff] }
 0x2b2   :  { %1951 = vmatprep.subr.bf16.mxu0 %v5206_v58  ;;  %v1142_v44 = vsel %vm9279_vm5, %v6751_v19, %v1141_v41  ;;  %v1101_v12 = vpop.permute.xlu0 %1100  ;;  %v1172_v42 = vpop.permute.xlu1 %1171  ;;  %5405 = vmatpush3.bf16.msra.mxu1 %v5974_v0  ;;  %v1138_v56 = vsel %vm9283_vm2, %v6676_v38, %v1137_v43  ;;  %vm9284_vm5 = vmmov %vm9283_vm2  ;;  %v5982_v16 = vld [vmem:[#allocation2 + $0x1f0] ss:$20 sps:$4 sm:$0xff]   ;;  %v2157_v45 = vld [vmem:[%s9098_s5 + $0x88] sm:$0xff] }
 0x2b3   :  { %1165 = vst [vmem:[#allocation2 + $0x260] sm:$0x11] %v1142_v44  ;;  %v1119_v24 = vrot.slane %v1101_v12, 4  ;;  %1160 = vst.msk [vmem:[#allocation2 + $0x240] sm:$0xf] %vm9278_vm1, %v1101_v12  ;;  %v1187_v18 = vrot.slane %v1172_v42, 4  ;;  %5406 = vmatprep.subr.bf16.mxu1 %v5975_v52  ;;  %1918 = vmatprep.mubr.bf16.mxu1 %v9263_v30  ;;  %v5728_v9 = vpack.c.bf16 %v2157_v45, %v2156_v60 }
 0x2b4   :  { %1218 = vst.msk [vmem:[#allocation2 + $0x268] sm:$0xe] %vm9280_vm6, %v1172_v42  ;;  %vm9285_vm1 = vcmask 957440   ;;  %vm9286_vm6 = vcmask 412672   ;;  %v5984_v48 = vld [vmem:[#allocation2 + $0x218] ss:$20 sps:$4 sm:$0xff]  }
 0x2b5   :  { %1952 = vmatpush1.bf16.msra.mxu0 %v5205_v35  ;;  %v1133_v19 = vsel %vm452_vm7, %v1118_v31, %v1119_v24  ;;  %v1197_v51 = vsel %vm452_vm7, %v9282_v36, %v1187_v18  ;;  %vm9287_vm12 = vmmov %vm9286_vm6  ;;  %v2143_v58 = vld [vmem:[%s9098_s5 + $0x18] sm:$0xff]  ;;  %v2160_v35 = vld [vmem:[%s9098_s5 + $0xa0] sm:$0xff] }
 0x2b6   :  { %1953 = vmatprep.subr.bf16.mxu0 %v5211_v15  ;;  %v1134_v20 = vsel %vm9284_vm5, %v9238_v46, %v1133_v19  ;;  %v1198_v62 = vsel %vm9285_vm1, %v9281_v7, %v1197_v51  ;;  %v1178_v31 = vpop.permute.xlu0 %1177  ;;  %v1184_v49 = vpop.permute.xlu1 %1183  ;;  %5407 = vmatpush3.bf16.msra.mxu1 %v5976_v26  ;;  %v5980_v46 = vld [vmem:[#allocation2 + $0x1c8] ss:$20 sps:$4 sm:$0xff]   ;;  %vm9289_vm2 = vmmov %vm9285_vm1  ;;  %v2144_v52 = vld [vmem:[%s9098_s5 + $0x20] sm:$0xff]  ;;  %vm6085_vm5 = vmmov 0  }
 0x2b7   :  { %1217 = vst [vmem:[#allocation2 + $0x260] sm:$0xee] %v1198_v62  ;;  %v1190_v14 = vrot.slane %v1178_v31, 4  ;;  %1221 = vst.msk [vmem:[#allocation2 + $0x27c] sm:$0xf] %vm9286_vm6, %v1178_v31  ;;  %v1193_v25 = vrot.slane %v1184_v49, 4  ;;  %5408 = vmatprep.subr.bf16.mxu1 %v5977_v3  ;;  %v5216_v11 = vcombine.high %v1134_v20, %v1138_v56  ;;  %v5215_v38 = vcombine.low %v1134_v20, %v1138_v56 }
 0x2b8   :  { %1224 = vst.msk [vmem:[#allocation2 + $0x290] sm:$0xf] %vm9287_vm12, %v1184_v49  ;;  %vm9288_vm12 = vmmov %vm9285_vm1  ;;  %v2161_v0 = vld [vmem:[%s9098_s5 + $0xa8] sm:$0xff]  ;;  %v2162_v12 = vld [vmem:[%s9098_s5 + $0xb0] sm:$0xff]  ;;  %vm9290_vm1 = vcmask 1042432  }
 0x2b9   :  { %1954 = vmatpush1.bf16.msra.mxu0 %v5210_v4  ;;  %5230 = vmatmul.mubr.msk.bf16.gmra.mrb[12].mxu1 %vm9163_vm0, %v7142_v2  ;;  %v1201_v6 = vsel %vm452_vm7, %v1189_v63, %v1190_v14  ;;  %v1205_v1 = vsel %vm452_vm7, %v1192_v47, %v1193_v25  ;;  %v5983_v47 = vld [vmem:[#allocation2 + $0xb0] ss:$20 sps:$4 sm:$0xff]   ;;  %v5736_v15 = vpack.c.bf16 %v2161_v0, %v2160_v35  ;;  %v2145_v44 = vld [vmem:[%s9098_s5 + $0x28] sm:$0xff]  ;;  %v2163_v42 = vld [vmem:[%s9098_s5 + $0xb8] sm:$0xff] }
 0x2ba   :  { %1955 = vmatprep.subr.bf16.mxu0 %v5216_v11  ;;  %5409 = vmatpush3.bf16.msra.mxu1 %v5979_v54  ;;  %v1202_v50 = vsel %vm9288_vm12, %v6952_v10, %v1201_v6  ;;  %v1206_v23 = vsel %vm9289_vm2, %v7092_v21, %v1205_v1  ;;  %v5987_v27 = vld [vmem:[#allocation2 + $0x240] ss:$20 sps:$4 sm:$0xff]   ;;  %v5738_v43 = vpack.c.bf16 %v2145_v44, %v2144_v52  ;;  %v2147_v4 = vld [vmem:[%s9098_s5 + $0x38] sm:$0xff]  ;;  %v2165_v19 = vld [vmem:[%s9098_s5 + $0xc8] sm:$0xff]  ;;  %vm9293_vm2 = vcmask 179200  }
 0x2bb   :  { %5410 = vmatprep.subr.bf16.mxu1 %v5980_v46  ;;  %2061 = vmatprep.mubr.bf16.mxu1 %v6041_v28  ;;  %v5226_v33 = vcombine.high %v1206_v23, %v1206_v23  ;;  %v5225_v17 = vcombine.low %v1206_v23, %v1206_v23  ;;  %v5740_v24 = vpack.c.bf16 %v2163_v42, %v2162_v12  ;;  %v2146_v18 = vld [vmem:[%s9098_s5 + $0x30] sm:$0xff]  ;;  %v2164_v26 = vld [vmem:[%s9098_s5 + $0xc0] sm:$0xff]  ;;  %v2149_v3 = vld [vmem:[%s9098_s5 + $0x48] sm:$0xff] }
 0x2bc   :  { %v5742_v7 = vpack.c.bf16 %v2147_v4, %v2146_v18  ;;  %v5744_v36 = vpack.c.bf16 %v2165_v19, %v2164_v26  ;;  %v2148_v51 = vld [vmem:[%s9098_s5 + $0x40] sm:$0xff]  ;;  %v2167_v56 = vld [vmem:[%s9098_s5 + $0xd8] sm:$0xff]  ;;  %v2150_v31 = vld [vmem:[%s9098_s5 + $0x50] sm:$0xff] }
 0x2bd   :  { %1956 = vmatpush1.bf16.msra.mxu0 %v5215_v38  ;;  %v1817_v10 = vsel %vm452_vm7, %v5225_v17, 0  ;;  %v5746_v20 = vpack.c.bf16 %v2149_v3, %v2148_v51  ;;  %v2151_v49 = vld [vmem:[%s9098_s5 + $0x58] sm:$0xff]  ;;  %v2168_v14 = vld [vmem:[%s9098_s5 + $0xe0] sm:$0xff]  ;;  %v2169_v25 = vld [vmem:[%s9098_s5 + $0xe8] sm:$0xff] }
 0x2be   :  { %v1322_v61 = vld [vmem:[#allocation2 + $0x260] sm:$0xff]  ;;  %5411 = vmatpush3.bf16.msra.mxu1 %v5981_v53  ;;  %v5989_v22 = vld [vmem:[#allocation2 + $0x268] ss:$20 sps:$4 sm:$0xff]   ;;  %v5750_v11 = vpack.c.bf16 %v2151_v49, %v2150_v31  ;;  %v5752_v38 = vpack.c.bf16 %v2169_v25, %v2168_v14  ;;  %v2170_v1 = vld [vmem:[%s9098_s5 + $0xf0] sm:$0xff]  ;;  %v9167_v31 = vmov 0.0|0.0  }
 0x2bf   :  { %v5221_v63 = vcombine.high %v1322_v61, %v1202_v50  ;;  %v5220_v5 = vcombine.low %v1322_v61, %v1202_v50  ;;  %5412 = vmatprep.subr.bf16.mxu1 %v5982_v16  ;;  %v5985_v21 = vld [vmem:[#allocation2 + $0x290] ss:$0 sps:$4 sm:$0xff]   ;;  %v2152_v54 = vld [vmem:[%s9098_s5 + $0x60] sm:$0xff]  ;;  %v2153_v46 = vld [vmem:[%s9098_s5 + $0x68] sm:$0xff] }
 0x2c0   :  { %v1823_v59 = vsel %vm452_vm7, %v5985_v21, 0  ;;  %v5754_v6 = vpack.c.bf16 %v2153_v46, %v2152_v54  ;;  %v2171_v28 = vld [vmem:[%s9098_s5 + $0xf8] sm:$0xff]  ;;  %v2154_v53 = vld [vmem:[%s9098_s5 + $0x70] sm:$0xff]  ;;  %v2188_v23 = vld [vmem:[%s9098_s5 + $0x180] sm:$0xff] }
 0x2c1   :  { %1957 = vmatprep.subr.bf16.mxu0 %v5221_v63  ;;  %v5756_v16 = vpack.c.bf16 %v2171_v28, %v2170_v1  ;;  %v2155_v50 = vld [vmem:[%s9098_s5 + $0x78] sm:$0xff]  ;;  %v2189_v61 = vld [vmem:[%s9098_s5 + $0x188] sm:$0xff]  ;;  %v2176_v60 = vld [vmem:[%s9098_s5 + $0x120] sm:$0xff] }
 0x2c2   :  { %1958 = vmatpush1.bf16.msra.mxu0 %v5220_v5  ;;  %5413 = vmatpush3.bf16.msra.mxu1 %v5983_v47  ;;  %v5758_v63 = vpack.c.bf16 %v2155_v50, %v2154_v53  ;;  %v5760_v5 = vpack.c.bf16 %v2189_v61, %v2188_v23  ;;  %v2172_v47 = vld [vmem:[%s9098_s5 + $0x100] sm:$0xff]  ;;  %v2199_v52 = vld [vmem:[%s9098_s5 + $0x1d8] sm:$0xff]  ;;  %v2182_v42 = vld [vmem:[%s9098_s5 + $0x150] sm:$0xff] }
 0x2c3   :  { %5231 = vmatprep.subr.msk.bf16.mxu0 %vm452_vm7, %v5226_v33  ;;  %5414 = vmatprep.subr.bf16.mxu1 %v5984_v48  ;;  %v2173_v33 = vld [vmem:[%s9098_s5 + $0x108] sm:$0xff]  ;;  %v2190_v48 = vld [vmem:[%s9098_s5 + $0x190] sm:$0xff]  ;;  %v2180_v0 = vld [vmem:[%s9098_s5 + $0x140] sm:$0xff] }
 0x2c4   :  { %v5762_v17 = vpack.c.bf16 %v2173_v33, %v2172_v47  ;;  %v2201_v18 = vld [vmem:[%s9098_s5 + $0x1e8] sm:$0xff]  ;;  %v2184_v19 = vld [vmem:[%s9098_s5 + $0x160] sm:$0xff]  ;;  %v2202_v51 = vld [vmem:[%s9098_s5 + $0x1f0] sm:$0xff] }
 0x2c5   :  { %1960 = vmatmul.mubr.bf16.vlgmr.msra.gmra.mrb[12].mxu0 %v7008_v34  ;;  %v2203_v3 = vld [vmem:[%s9098_s5 + $0x1f8] sm:$0xff]  ;;  %v5993_v49 = vld [vmem:[%s9093_s0 + $0x40] ss:$20 sps:$4 sm:$0xff]   ;;  %v2205_v46 = vld [vmem:[%s9098_s5 + $0x208] sm:$0xff] }
 0x2c6   :  { %1979 = vmatpush1.bf16.msra.mxu0 %v1817_v10  ;;  %5415 = vmatpush3.bf16.msra.mxu1 %v5986_v32  ;;  %v2191_v32 = vld [vmem:[%s9098_s5 + $0x198] sm:$0xff]  ;;  %v2174_v10 = vld [vmem:[%s9098_s5 + $0x110] sm:$0xff]  ;;  %v2204_v54 = vld [vmem:[%s9098_s5 + $0x200] sm:$0xff] }
 0x2c7   :  { %5931 = vmatprep.subr.msk.bf16.mxu0 %vm452_vm7, %v5985_v21  ;;  %5416 = vmatprep.subr.bf16.mxu1 %v5987_v27  ;;  %v5764_v21 = vpack.c.bf16 %v2191_v32, %v2190_v48  ;;  %v2175_v27 = vld [vmem:[%s9098_s5 + $0x118] sm:$0xff]  ;;  %v7383_v14 = vpop.permute.xlu0 %1335  ;;  %v7393_v28 = vpop.permute.xlu1 %1340  ;;  %v5793_v23 = vpack.c.bf16 %v2205_v46, %v2204_v54  ;;  %vm9291_vm6 = vmmov %vm9290_vm1  ;;  %v6001_v46 = vld [vmem:[%s9093_s0 + $0x4c] ss:$20 sps:$4 sm:$0xff]  }
 0x2c8   :  { %1969 = vmatprep.mubr.bf16.mxu0 %v7010_v57  ;;  %v2207_v47 = vld [vmem:[%s9098_s5 + $0x218] sm:$0xff]  ;;  %vm9292_vm12 = vmmov %vm9290_vm1 }
 0x2ca   :  { %5417 = vmatpush3.bf16.msra.mxu1 %v5988_v39  ;;  %v5766_v39 = vpack.c.bf16 %v2175_v27, %v2174_v10 }
 0x2cb   :  { %5418 = vmatprep.subr.bf16.mxu1 %v5989_v22  ;;  %v2192_v22 = vld [vmem:[%s9098_s5 + $0x1a0] sm:$0xff] }
 0x2cd   :  { %1970 = vmatmul.mubr.bf16.gmra.mrb[16].mxu0 %v7034_v29 }
 0x2ce   :  { %5419 = vmatpush3.bf16.msra.mxu1 %v5990_v40  ;;  %2010 = vmatprep.mubr.bf16.mxu0 %v9263_v30  ;;  %v2193_v40 = vld [vmem:[%s9098_s5 + $0x1a8] sm:$0xff] }
 0x2cf   :  { %5761 = vmatprep.subr.bf16.mxu1 %v5760_v5  ;;  %v5768_v45 = vpack.c.bf16 %v2193_v40, %v2192_v22  ;;  %v2206_v5 = vld [vmem:[%s9098_s5 + $0x210] sm:$0xff]  ;;  %v2209_v22 = vld [vmem:[%s9098_s5 + $0x228] sm:$0xff] }
 0x2d0   :  { %v5796_v32 = vpack.c.bf16 %v2207_v47, %v2206_v5 }
 0x2d1   :  { %2062 = vmatmul.mubr.bf16.vlgmr.msra.gmra.mrb[16].mxu1 %v7008_v34  ;;  %v2140_v34 = vld [vmem:[%s9098_s5] sm:$0xff] }
 0x2d2   :  { %2069 = vmatprep.mubr.bf16.mxu1 %v7010_v57  ;;  %v2141_v57 = vld [vmem:[%s9098_s5 + $0x8] sm:$0xff]  ;;  %5763 = vmatpush3.bf16.msra.mxu1 %v5762_v17  ;;  %v7403_v17 = vpop.permute.xlu0 %1345 }
 0x2d3   :  { %v5730_v8 = vpack.c.bf16 %v2141_v57, %v2140_v34  ;;  %5765 = vmatprep.subr.bf16.mxu1 %v5764_v21  ;;  %v2195_v34 = vld [vmem:[%s9098_s5 + $0x1b8] sm:$0xff] }
 0x2d5   :  { %5232 = vmatmul.mubr.msk.bf16.vlgmr.msra.gmra.mrb[12].mxu0 %vm9163_vm0, %v7112_v13 }
 0x2d6   :  { %5663 = vmatpush3.bf16.msra.mxu0 %v1823_v59  ;;  %2020 = vmatprep.mubr.bf16.mxu0 %v9263_v30  ;;  %v2194_v59 = vld [vmem:[%s9098_s5 + $0x1b0] sm:$0xff] }
 0x2d7   :  { %5729 = vmatprep.subr.bf16.mxu0 %v5728_v9  ;;  %v2177_v9 = vld [vmem:[%s9098_s5 + $0x128] sm:$0xff]  ;;  %5767 = vmatpush3.bf16.msra.mxu1 %v5766_v39  ;;  %v2208_v39 = vld [vmem:[%s9098_s5 + $0x220] sm:$0xff] }
 0x2d8   :  { %v5770_v57 = vpack.c.bf16 %v2177_v9, %v2176_v60  ;;  %5769 = vmatprep.subr.bf16.mxu1 %v5768_v45 }
 0x2d9   :  { %2070 = vmatmul.mubr.bf16.gmra.mrb[20].mxu1 %v7034_v29  ;;  %v2159_v29 = vld [vmem:[%s9098_s5 + $0x98] sm:$0xff] }
 0x2da   :  { %v5732_v37 = vpack.c.bf16 %v2159_v29, %v2158_v55  ;;  %v5772_v55 = vpack.c.bf16 %v2195_v34, %v2194_v59  ;;  %v2178_v29 = vld [vmem:[%s9098_s5 + $0x130] sm:$0xff]  ;;  %v5799_v59 = vpack.c.bf16 %v2209_v22, %v2208_v39 }
 0x2db   :  { %5771 = vmatpush3.bf16.msra.mxu1 %v5770_v57  ;;  %v9165_v57 = vmov 0.0  }
 0x2dc   :  { %5773 = vmatprep.subr.bf16.mxu1 %v5772_v55  ;;  %v2210_v55 = vld [vmem:[%s9098_s5 + $0x230] sm:$0x7] }
 0x2dd   :  { %5233 = vmatmul.mubr.msk.bf16.gmra.mrb[16].mxu0 %vm9163_vm0, %v7142_v2 }
 0x2de   :  { %5664 = vmatprep.mubr.msk.bf16.mxu0 %vm9163_vm0, %v7112_v13  ;;  %v2142_v13 = vld [vmem:[%s9098_s5 + $0x10] sm:$0xff] }
 0x2df   :  { %v5734_v41 = vpack.c.bf16 %v2143_v58, %v2142_v13  ;;  %v2197_v13 = vld [vmem:[%s9098_s5 + $0x1c8] sm:$0xff] }
 0x2e5   :  { %5665 = vmatmul.mubr.msk.bf16.vlgmr.msra.gmra.mrb[20].mxu0 %vm9163_vm0, %v7142_v2  ;;  %v2166_v2 = vld [vmem:[%s9098_s5 + $0xd0] sm:$0xff] }
 0x2e6   :  { %5731 = vmatpush3.bf16.msra.mxu0 %v5730_v8  ;;  %v5748_v62 = vpack.c.bf16 %v2167_v56, %v2166_v2  ;;  %v2179_v8 = vld [vmem:[%s9098_s5 + $0x138] sm:$0xff]  ;;  %v2186_v2 = vld [vmem:[%s9098_s5 + $0x170] sm:$0xff]  ;;  %v5788_v56 = vpack.c.bf16 %v2203_v3, %v2202_v51 }
 0x2e7   :  { %5733 = vmatprep.subr.bf16.mxu0 %v5732_v37  ;;  %v2196_v37 = vld [vmem:[%s9098_s5 + $0x1c0] sm:$0xff]  ;;  %v5774_v58 = vpack.c.bf16 %v2179_v8, %v2178_v29  ;;  %v5999_v29 = vld [vmem:[%s9093_s0 + $0x48] ss:$20 sps:$4 sm:$0xff]  }
 0x2e8   :  { %v5776_v35 = vpack.c.bf16 %v2197_v13, %v2196_v37 }
 0x2e9   :  { %5775 = vmatpush3.bf16.msra.mxu1 %v5774_v58 }
 0x2ea   :  { %5735 = vmatpush3.bf16.msra.mxu0 %v5734_v41  ;;  %v2181_v41 = vld [vmem:[%s9098_s5 + $0x148] sm:$0xff]  ;;  %5777 = vmatprep.subr.bf16.mxu1 %v5776_v35 }
 0x2eb   :  { %5737 = vmatprep.subr.bf16.mxu0 %v5736_v15  ;;  %v2198_v15 = vld [vmem:[%s9098_s5 + $0x1d0] sm:$0xff]  ;;  %v5778_v44 = vpack.c.bf16 %v2181_v41, %v2180_v0 }
 0x2ec   :  { %v5780_v12 = vpack.c.bf16 %v2199_v52, %v2198_v15 }
 0x2ed   :  { %5779 = vmatpush3.bf16.msra.mxu1 %v5778_v44 }
 0x2ee   :  { %5739 = vmatpush3.bf16.msra.mxu0 %v5738_v43  ;;  %v2183_v43 = vld [vmem:[%s9098_s5 + $0x158] sm:$0xff]  ;;  %5781 = vmatprep.subr.bf16.mxu1 %v5780_v12 }
 0x2ef   :  { %5741 = vmatprep.subr.bf16.mxu0 %v5740_v24  ;;  %v2200_v24 = vld [vmem:[%s9098_s5 + $0x1e0] sm:$0xff]  ;;  %v5782_v4 = vpack.c.bf16 %v2183_v43, %v2182_v42 }
 0x2f0   :  { %v5784_v26 = vpack.c.bf16 %v2201_v18, %v2200_v24  ;;  %v5255_v42 = vld [vmem:[%s9093_s0 + $0x64] sm:$0x77] }
 0x2f1   :  { %5783 = vmatpush3.bf16.msra.mxu1 %v5782_v4  ;;  %v5266_v51 = vcombine.high %v5255_v42, %v5255_v42  ;;  %v5265_v3 = vcombine.low %v5255_v42, %v5255_v42 }
 0x2f2   :  { %5743 = vmatpush3.bf16.msra.mxu0 %v5742_v7  ;;  %5785 = vmatprep.subr.bf16.mxu1 %v5784_v26  ;;  %v2185_v7 = vld [vmem:[%s9098_s5 + $0x168] sm:$0xff]  ;;  %v5991_v26 = vld [vmem:[%s9093_s0 + $0x3c] ss:$20 sps:$4 sm:$0xff]  }
 0x2f3   :  { %5745 = vmatprep.subr.bf16.mxu0 %v5744_v36  ;;  %v5786_v36 = vpack.c.bf16 %v2185_v7, %v2184_v19  ;;  %v2662_v54 = vsel %vm9292_vm12, %v5265_v3, 0  ;;  %vm9294_vm12 = vmmov %vm9291_vm6 }
 0x2f5   :  { %5787 = vmatpush3.bf16.msra.mxu1 %v5786_v36 }
 0x2f6   :  { %5747 = vmatpush3.bf16.msra.mxu0 %v5746_v20  ;;  %v2187_v20 = vld [vmem:[%s9098_s5 + $0x178] sm:$0xff]  ;;  %5789 = vmatprep.subr.bf16.mxu1 %v5788_v56 }
 0x2f7   :  { %5749 = vmatprep.subr.bf16.mxu0 %v5748_v62  ;;  %v5790_v62 = vpack.c.bf16 %v2187_v20, %v2186_v2 }
 0x2f9   :  { %5791 = vmatpush3.bf16.msra.mxu1 %v5790_v62 }
 0x2fa   :  { %5751 = vmatpush3.bf16.msra.mxu0 %v5750_v11  ;;  %2676 = vmatprep.subr.bf16.mxu1 %v5993_v49 }
 0x2fb   :  { %5753 = vmatprep.subr.bf16.mxu0 %v5752_v38 }
 0x2fe   :  { %5755 = vmatpush3.bf16.msra.mxu0 %v5754_v6 }
 0x2ff   :  { %5757 = vmatprep.subr.bf16.mxu0 %v5756_v16 }
 0x302   :  { %5759 = vmatpush3.bf16.msra.mxu0 %v5758_v63 }
 0x303   :  { %5792 = vmatprep.subr.bf16.mxu0 %v9167_v31 }
 0x384   :  { %v1910_v25 = vpop.f32.mrb[8].mxu1 }
 0x385   :  { %v5874_v11 = vadd.f32 %v1910_v25, %v7383_v14  ;;  %v1912_v38 = vpop.f32.mrb[9].mxu1 }
 0x386   :  { %v5875_v6 = vadd.f32 %v1912_v38, %v7383_v14  ;;  %v1914_v1 = vpop.f32.mrb[10].mxu1 }
 0x387   :  { %v1916_v53 = vpop.f32.mrb[11].mxu1  ;;  %v2125_v61 = vmul.f32 %v5874_v11, %v5874_v11  ;;  %v5876_v63 = vadd.f32 %v1914_v1, %v7393_v28 }
 0x388   :  { %v2126_v16 = vmul.f32 %v5875_v6, %v5875_v6  ;;  %v5877_v50 = vadd.f32 %v1916_v53, %v7393_v28 }
 0x389   :  { %v2130_v10 = vmul.f32 %v5876_v63, %v5876_v63 }
 0x38a   :  { %v2131_v33 = vmul.f32 %v5877_v50, %v5877_v50  ;;  %2288 = vmatprep.mubr.f32.mxu0 %v2126_v16 }
 0x38b   :  { %2289 = vmatmul.mubr.f32.vlgmr.msra.gmra.mrb[24].mxu0 %v2125_v61  ;;  %v5996_v61 = vld [vmem:[%s9094_s1] sm:$0xff]  }
 0x38c   :  { %v1920_v48 = vpop.f32.mrb[12].mxu1  ;;  %2293 = vmatprep.mubr.f32.mxu0 %v2131_v33  ;;  %5794 = vmatpush3.bf16.msra.mxu0 %v5793_v23 }
 0x38d   :  { %v5878_v21 = vadd.f32 %v1920_v48, %v7403_v17  ;;  %v1922_v27 = vpop.f32.mrb[13].mxu1  ;;  %5795 = vmatprep.subr.bf16.mxu0 %v9167_v31  ;;  %v5256_v48 = vld [vmem:[%s9093_s0 + $0x6c] sm:$0x77] }
 0x38e   :  { %v5879_v40 = vadd.f32 %v1922_v27, %v7403_v17  ;;  %v1924_v60 = vpop.f32.mrb[14].mxu1 }
 0x38f   :  { %2294 = vmatmul.mubr.f32.gmra.mrb[26].mxu0 %v2130_v10  ;;  %v1925_v45 = vpop.f32.mrb[15].mxu1  ;;  %v2135_v34 = vmul.f32 %v5878_v21, %v5878_v21  ;;  %v5267_v60 = vcombine.low %v5256_v48, %v5256_v48 }
 0x390   :  { %v2136_v9 = vmul.f32 %v5879_v40, %v5879_v40  ;;  %5797 = vmatpush3.bf16.msra.mxu0 %v5796_v32  ;;  %v6004_v32 = vld [vmem:[%s9093_s0 + $0x74] ss:$0 sps:$4 sm:$0x77]   ;;  %v5268_v40 = vcombine.high %v5256_v48, %v5256_v48 }
 0x391   :  { %5798 = vmatprep.subr.bf16.mxu0 %v9167_v31  ;;  %v2674_v45 = vsel %vm9294_vm12, %v6004_v32, 0 }
 0x392   :  { %2298 = vmatprep.mubr.f32.mxu0 %v2136_v9 }
 0x393   :  { %2299 = vmatmul.mubr.f32.gmra.mrb[28].mxu0 %v2135_v34 }
 0x394   :  { %5800 = vmatpush3.bf16.msra.mxu0 %v5799_v59  ;;  %5682 = vmatprep.mubr.msk.f32.mxu0 %vm6085_vm5, %v9165_v57 }
 0x395   :  { %5680 = vmatprep.subr.mxu0 %v9165_v57 }
 0x398   :  { %5681 = vmatpush3.msk.msra.mxu0 %vm9290_vm1, %v2210_v55  ;;  %vm2211_vm1 = vcmask 416768  }
 0x399   :  { %2727 = vmatprep.subr.bf16.mxu0 %v5999_v29 }
 0x3a4   :  { %v5420_v8 = vpop.f32.mrb[16].mxu1 }
 0x3a5   :  { %v5421_v37 = vpop.f32.mrb[17].mxu1 }
 0x3a6   :  { %v5422_v13 = vadd.f32 %v5421_v37, %v5420_v8  ;;  %v5423_v58 = vpop.f32.mrb[18].mxu1 }
 0x3a7   :  { %v5424_v35 = vpop.f32.mrb[19].mxu1 }
 0x3a8   :  { %v2012_v0 = vpop.f32.mrb[12].mxu0  ;;  %v5425_v41 = vadd.f32 %v5424_v35, %v5423_v58  ;;  %v2064_v5 = vadd.f32 %v5422_v13, %v7383_v14 }
 0x3a9   :  { %v5880_v15 = vadd.f32 %v2012_v0, %v7383_v14  ;;  %v2014_v52 = vpop.f32.mrb[13].mxu0 }
 0x3aa   :  { %v5881_v44 = vadd.f32 %v2014_v52, %v7383_v14  ;;  %v2016_v12 = vpop.f32.mrb[14].mxu0  ;;  %v2067_v21 = vadd.f32 %v5425_v41, %v7393_v28  ;;  %v5997_v14 = vld [vmem:[%s9093_s0 + $0x44] ss:$20 sps:$4 sm:$0xff]  }
 0x3ab   :  { %v2018_v43 = vpop.f32.mrb[15].mxu0  ;;  %v2127_v19 = vmul.f32 %v5880_v15, %v5880_v15  ;;  %v5882_v7 = vadd.f32 %v2016_v12, %v7393_v28 }
 0x3ac   :  { %v2128_v24 = vmul.f32 %v5881_v44, %v5881_v44  ;;  %v5883_v18 = vadd.f32 %v2018_v43, %v7393_v28  ;;  %v5426_v4 = vpop.f32.mrb[20].mxu1  ;;  %v6000_v28 = vld [vmem:[%s9094_s1 + $0x8] ss:$0 sps:$4 sm:$0x77]  }
 0x3ad   :  { %v5427_v36 = vpop.f32.mrb[21].mxu1  ;;  %v2132_v25 = vmul.f32 %v5882_v7, %v5882_v7 }
 0x3ae   :  { %v2133_v2 = vmul.f32 %v5883_v18, %v5883_v18  ;;  %2368 = vmatprep.mubr.f32.mxu1 %v2128_v24  ;;  %v5428_v56 = vadd.f32 %v5427_v36, %v5426_v4  ;;  %v5429_v20 = vpop.f32.mrb[22].mxu1 }
 0x3af   :  { %2369 = vmatmul.mubr.f32.vlgmr.msra.gmra.mrb[24].mxu1 %v2127_v19  ;;  %v5430_v62 = vpop.f32.mrb[23].mxu1 }
 0x3b0   :  { %v2022_v49 = vpop.f32.mrb[16].mxu0  ;;  %2373 = vmatprep.mubr.f32.mxu1 %v2133_v2  ;;  %2677 = vmatpush1.bf16.msra.mxu1 %v5991_v26  ;;  %v2072_v23 = vadd.f32 %v5428_v56, %v7403_v17  ;;  %v2601_v2 = vpop.permute.xlu0 %2600 }
 0x3b1   :  { %v5884_v11 = vadd.f32 %v2022_v49, %v7403_v17  ;;  %v2024_v38 = vpop.f32.mrb[17].mxu0  ;;  %5270 = vmatprep.subr.msk.bf16.mxu1 %vm9291_vm6, %v5266_v51  ;;  %v2596_v51 = vpop.permute.xlu1 %2595 }
 0x3b2   :  { %v5885_v6 = vadd.f32 %v2024_v38, %v7403_v17  ;;  %v2026_v1 = vpop.f32.mrb[18].mxu0 }
 0x3b3   :  { %v2027_v53 = vpop.f32.mrb[19].mxu0  ;;  %2374 = vmatmul.mubr.f32.gmra.mrb[26].mxu1 %v2132_v25  ;;  %v2137_v50 = vmul.f32 %v5884_v11, %v5884_v11 }
 0x3b4   :  { %v2138_v16 = vmul.f32 %v5885_v6, %v5885_v6  ;;  %2679 = vmatpush1.bf16.msra.mxu1 %v2662_v54 }
 0x3b5   :  { %5691 = vmatprep.subr.bf16.mxu1 %v6001_v46  ;;  %v2606_v53 = vpop.permute.xlu1 %2605 }
 0x3b6   :  { %2378 = vmatprep.mubr.f32.mxu1 %v2138_v16 }
 0x3b7   :  { %2379 = vmatmul.mubr.f32.gmra.mrb[28].mxu1 %v2137_v50 }
 0x3b8   :  { %v5666_v63 = vpop.f32.mrb[20].mxu0  ;;  %2708 = vmatprep.mubr.bf16.mxu1 %v9263_v30 }
 0x3b9   :  { %v2120_v47 = vadd.f32 %v5666_v63, %v2072_v23  ;;  %v2111_v33 = vpop.f32.mrb[21].mxu0 }
 0x3ba   :  { %v2112_v17 = vadd.f32 %v2111_v33, %v2064_v5  ;;  %v5667_v10 = vpop.f32.mrb[22].mxu0 }
 0x3bb   :  { %v2114_v27 = vpop.f32.mrb[23].mxu0  ;;  %5271 = vmatmul.mubr.msk.bf16.vlgmr.msra.gmra.mrb[32].mxu1 %vm9293_vm2, %v5996_v61  ;;  %vm9295_vm2 = vmmov %vm9291_vm6  ;;  %v2139_v34 = vmul.f32 %v2120_v47, %v2120_v47 }
 0x3bc   :  { %v2129_v39 = vmul.f32 %v2112_v17, %v2112_v17  ;;  %v2115_v22 = vadd.f32 %v2114_v27, %v2067_v21  ;;  %2718 = vmatprep.mubr.bf16.mxu1 %v9263_v30  ;;  %5692 = vmatpush3.bf16.msra.mxu1 %v6001_v46  ;;  %vm9296_vm0 = vmmov %vm9295_vm2 }
 0x3bd   :  { %5932 = vmatprep.subr.msk.bf16.mxu1 %vm9291_vm6, %v6004_v32  ;;  %v2668_v59 = vsel %vm9296_vm0, %v5267_v60, 0  ;;  %vm9297_vm6 = vcmask 179200  }
 0x3be   :  { %5683 = vmatmul.mubr.msk.f32.vlgmr.msra.gmra.mrb[30].mxu0 %vm2211_vm1, %v2129_v39  ;;  %v2134_v9 = vmul.f32 %v2115_v22, %v2115_v22  ;;  %vm9298_vm12 = vmmov %vm9297_vm6 }
 0x3bf   :  { %5685 = vmatprep.mubr.msk.f32.mxu0 %vm6085_vm5, %v9165_v57  ;;  %2728 = vmatpush1.bf16.msra.mxu0 %v5997_v14  ;;  %vm9299_vm4 = vmmov %vm9297_vm6 }
 0x3c0   :  { %5273 = vmatprep.subr.msk.bf16.mxu0 %vm9295_vm2, %v5268_v40  ;;  %5694 = vmatpush3.bf16.msra.mxu1 %v2674_v45  ;;  %vm9300_vm2 = vmmov %vm9299_vm4 }
 0x3c1   :  { %vm9301_vm0 = vmmov %vm9300_vm2 }
 0x3c2   :  { %5686 = vmatmul.mubr.msk.f32.gmra.mrb[32].mxu0 %vm2211_vm1, %v2134_v9 }
 0x3c3   :  { %5272 = vmatmul.mubr.msk.bf16.gmra.mrb[36].mxu1 %vm9297_vm6, %v6000_v28  ;;  %5688 = vmatprep.mubr.msk.f32.mxu0 %vm6085_vm5, %v9165_v57 }
 0x3c4   :  { %2730 = vmatpush1.bf16.msra.mxu0 %v2668_v59  ;;  %5695 = vmatprep.mubr.msk.bf16.mxu1 %vm9298_vm12, %v5996_v61 }
 0x3c6   :  { %5689 = vmatmul.mubr.msk.f32.gmra.mrb[34].mxu0 %vm2211_vm1, %v2139_v34 }
 0x3c7   :  { %2759 = vmatprep.mubr.bf16.mxu0 %v9263_v30 }
 0x3ca   :  { %5274 = vmatmul.mubr.msk.bf16.vlgmr.msra.gmra.mrb[36].mxu0 %vm9299_vm4, %v5996_v61  ;;  %vm9302_vm4 = vcmask 48128  }
 0x3cb   :  { %5696 = vmatmul.mubr.msk.bf16.vlgmr.msra.gmra.mrb[40].mxu1 %vm9300_vm2, %v6000_v28  ;;  %2769 = vmatprep.mubr.bf16.mxu0 %v9263_v30  ;;  %vm9303_vm6 = vmmov %vm9302_vm4 }
 0x3cc   :  { %vm9304_vm12 = vmmov %vm9302_vm4 }
 0x3cd   :  { %vm9305_vm2 = vmmov %vm9302_vm4 }
 0x3d2   :  { %5275 = vmatmul.mubr.msk.bf16.gmra.mrb[40].mxu0 %vm9301_vm0, %v6000_v28  ;;  %vm9308_vm0 = vcmask 457728  }
 0x45e   :  { %v5467_v55 = vpop.f32.mrb[24].mxu0 }
 0x45f   :  { %v5468_v29 = vpop.f32.mrb[25].mxu0 }
 0x460   :  { %v5469_v8 = vadd.f32 %v5468_v29, %v5467_v55 }
 0x462   :  { %v5470_v37 = vpop.f32.mrb[26].mxu0 }
 0x463   :  { %v5471_v13 = vpop.f32.mrb[27].mxu0 }
 0x464   :  { %v5472_v58 = vadd.f32 %v5471_v13, %v5470_v37 }
 0x466   :  { %v5473_v35 = vpop.f32.mrb[28].mxu0 }
 0x467   :  { %v5474_v0 = vpop.f32.mrb[29].mxu0 }
 0x468   :  { %v5475_v41 = vadd.f32 %v5474_v0, %v5473_v35 }
 0x482   :  { %v5508_v15 = vpop.f32.mrb[24].mxu1 }
 0x483   :  { %v5509_v52 = vpop.f32.mrb[25].mxu1 }
 0x484   :  { %v5510_v44 = vadd.f32 %v5509_v52, %v5508_v15 }
 0x486   :  { %v5511_v12 = vpop.f32.mrb[26].mxu1  ;;  %v2371_v42 = vadd.f32 %v5510_v44, %v5469_v8 }
 0x487   :  { %v5512_v43 = vpop.f32.mrb[27].mxu1 }
 0x488   :  { %v5513_v24 = vadd.f32 %v5512_v43, %v5511_v12 }
 0x48a   :  { %v5514_v18 = vpop.f32.mrb[28].mxu1  ;;  %v2376_v4 = vadd.f32 %v5513_v24, %v5472_v58 }
 0x48b   :  { %v5515_v26 = vpop.f32.mrb[29].mxu1 }
 0x48c   :  { %v5516_v19 = vadd.f32 %v5515_v26, %v5514_v18 }
 0x48e   :  { %v2710_v7 = vpop.f32.mrb[32].mxu1  ;;  %v2381_v36 = vadd.f32 %v5516_v19, %v5475_v41 }
 0x48f   :  { %v2712_v3 = vpop.f32.mrb[33].mxu1  ;;  %v2711_v20 = vadd.f32 %v2710_v7, %v2596_v51 }
 0x490   :  { %v2714_v56 = vpop.f32.mrb[34].mxu1  ;;  %v2713_v11 = vadd.f32 %v2712_v3, %v2596_v51 }
 0x491   :  { %v2715_v62 = vadd.f32 %v2714_v56, %v2601_v2  ;;  %v2450_v49 = vpop.f32.mrb[30].mxu0  ;;  %v2716_v25 = vpop.f32.mrb[35].mxu1 }
 0x492   :  { %v7481_v38 = vadd.f32 %v2450_v49, %v2371_v42  ;;  %v2717_v54 = vadd.f32 %v2716_v25, %v2601_v2  ;;  %v5684_v46 = vpop.f32.mrb[31].mxu0 }
 0x493   :  { %v2826_v6 = vpack.c.bf16 %v2715_v62, %v2711_v20 }
 0x494   :  { %v2827_v1 = vpack.c.bf16 %v2717_v54, %v2713_v11 }
 0x495   :  { %v2455_v16 = vpop.f32.mrb[32].mxu0  ;;  %2846 = vrot.lane.b32.xlu0 %v2826_v6, %s6072_s9 }
 0x496   :  { %v7484_v50 = vadd.f32 %v2455_v16, %v2376_v4  ;;  %v5687_v23 = vpop.f32.mrb[33].mxu0  ;;  %v2720_v61 = vpop.f32.mrb[36].mxu1  ;;  %2848 = vrot.lane.b32.xlu1 %v2827_v1, %s6072_s9 }
 0x497   :  { %v2721_v63 = vadd.f32 %v2720_v61, %v2606_v53  ;;  %v2722_v5 = vpop.f32.mrb[37].mxu1 }
 0x498   :  { %v2723_v47 = vadd.f32 %v2722_v5, %v2606_v53  ;;  %v2724_v33 = vpop.f32.mrb[38].mxu1  ;;  %6029 = vlog2.f32 %v7484_v50 }
 0x499   :  { %v2831_v48 = vpack.c.bf16 %v2721_v63, %v2721_v63  ;;  %v2460_v32 = vpop.f32.mrb[34].mxu0  ;;  %v2725_v17 = vpop.f32.mrb[39].mxu1  ;;  %6031 = vlog2.f32 %v7481_v38 }
 0x49a   :  { %v2832_v10 = vpack.c.bf16 %v2723_v47, %v2723_v47  ;;  %v7487_v21 = vadd.f32 %v2460_v32, %v2381_v36  ;;  %v5690_v27 = vpop.f32.mrb[35].mxu0 }
 0x49b   :  { %2856 = vrot.lane.b32.xlu0 %v2831_v48, %s6072_s9 }
 0x49c   :  { %2858 = vrot.lane.b32.xlu1 %v2832_v10, %s6072_s9  ;;  %6033 = vlog2.f32 %v7487_v21 }
 0x49d   :  { %v2761_v14 = vpop.f32.mrb[36].mxu0 }
 0x49e   :  { %v2763_v39 = vpop.f32.mrb[37].mxu0  ;;  %v5697_v22 = vpop.f32.mrb[40].mxu1  ;;  %v2762_v28 = vadd.f32 %v2761_v14, %v2596_v51 }
 0x49f   :  { %v2821_v40 = vadd.f32 %v5697_v22, %v2606_v53  ;;  %v2765_v60 = vpop.f32.mrb[38].mxu0  ;;  %v2812_v45 = vpop.f32.mrb[41].mxu1  ;;  %v2764_v55 = vadd.f32 %v2763_v39, %v2596_v51 }
 0x4a0   :  { %v2766_v9 = vadd.f32 %v2765_v60, %v2601_v2  ;;  %v2767_v59 = vpop.f32.mrb[39].mxu0  ;;  %v5698_v34 = vpop.f32.mrb[42].mxu1  ;;  %v2813_v58 = vadd.f32 %v2812_v45, %v2596_v51 }
 0x4a1   :  { %v2835_v29 = vpack.c.bf16 %v2821_v40, %v2821_v40  ;;  %v2768_v8 = vadd.f32 %v2767_v59, %v2601_v2  ;;  %v2815_v37 = vpop.f32.mrb[43].mxu1 }
 0x4a2   :  { %v2828_v13 = vpack.c.bf16 %v2766_v9, %v2762_v28  ;;  %v2816_v35 = vadd.f32 %v2815_v37, %v2601_v2 }
 0x4a3   :  { %v2829_v0 = vpack.c.bf16 %v2768_v8, %v2764_v55  ;;  %2864 = vrot.lane.b32.xlu1 %v2835_v29, %s6072_s9 }
 0x4a4   :  { %v2830_v41 = vpack.c.bf16 %v2816_v35, %v2813_v58 }
 0x4a5   :  { %v2771_v15 = vpop.f32.mrb[40].mxu0 }
 0x4a6   :  { %v2773_v52 = vpop.f32.mrb[41].mxu0  ;;  %2854 = vrot.lane.b32.xlu0 %v2830_v41, %s6072_s9  ;;  %v2772_v42 = vadd.f32 %v2771_v15, %v2606_v53 }
 0x4a7   :  { %v2774_v44 = vadd.f32 %v2773_v52, %v2606_v53  ;;  %2852 = vrot.lane.b32.xlu1 %v2829_v0, %s6072_s9  ;;  %v2775_v12 = vpop.f32.mrb[42].mxu0 }
 0x4a8   :  { %v2776_v43 = vpop.f32.mrb[43].mxu0  ;;  %v2833_v18 = vpack.c.bf16 %v2772_v42, %v2772_v42 }
 0x4a9   :  { %v2834_v24 = vpack.c.bf16 %v2774_v44, %v2774_v44 }
 0x4aa   :  { %2850 = vrot.lane.b32.xlu0 %v2828_v13, %s6072_s9 }
 0x4ab   :  { %2862 = vrot.lane.b32.xlu1 %v2834_v24, %s6072_s9 }
 0x4ae   :  { %2860 = vrot.lane.b32.xlu0 %v2833_v18, %s6072_s9 }
 0x507   :  { %v2847_v4 = vpop.permute.xlu0 %2846 }
 0x508   :  { %v2875_v26 = vsel %vm9302_vm4, 0, %v2847_v4  ;;  %v2849_v19 = vpop.permute.xlu1 %2848  ;;  %vm9310_vm4 = vmmov %vm9305_vm2 }
 0x509   :  { %v2866_v7 = vsel %vm9303_vm6, %v2847_v4, %v2849_v19  ;;  %vm9311_vm6 = vmmov %vm9305_vm2 }
 0x50a   :  { %v5278_v36 = vcombine.low %v2875_v26, %v2866_v7  ;;  %v7499_v51 = vcombine.high %v2875_v26, %v2866_v7  ;;  %4336 = vmatprep.subr.bf16.mxu0 %v2866_v7 }
 0x50b   :  { %6046 = vmatpush1.bf16.msk.msra.mxu0 %vm6210_vm3, %v2847_v4  ;;  %vm9307_vm3 = vmmov %vm9305_vm2 }
 0x50c   :  { %3472 = vrot.lane.b32.xlu1 %v5278_v36, %s6074_s11  ;;  %3206 = vrot.lane.b32.xlu0 %v5278_v36, %s6073_s10  ;;  %v3028_v25 = vrot.slane %v5278_v36, 6  ;;  %v2928_v11 = vrot.slane %v5278_v36, 5  ;;  %v2932_v53 = vrot.slane %v7499_v51, 5  ;;  %v7520_v23 = vrot.slane %v5278_v36, 7 }
 0x50d   :  { %v2857_v3 = vpop.permute.xlu0 %2856  ;;  %v3032_v14 = vrot.slane %v7499_v51, 6  ;;  %v3132_v0 = vrot.slane %v7499_v51, 7 }
 0x50e   :  { %v2877_v2 = vsel %vm9304_vm12, 0, %v2857_v3  ;;  %v2859_v56 = vpop.permute.xlu1 %2858  ;;  %v2931_v46 = vrot.slane %v2928_v11, 4  ;;  %v3031_v47 = vrot.slane %v3028_v25, 4  ;;  %vm9312_vm12 = vcmask 412672  }
 0x50f   :  { %v2870_v20 = vsel %vm9305_vm2, %v2857_v3, %v2859_v56  ;;  %vm9313_vm2 = vmmov %vm9312_vm12  ;;  %v2940_v37 = vrot.slane %v2932_v53, 4  ;;  %v3131_v58 = vrot.slane %v7520_v23, 4  ;;  %v3040_v41 = vrot.slane %v3032_v14, 4 }
 0x510   :  { %v7507_v49 = vcombine.low %v2877_v2, %v2870_v20  ;;  %3478 = vrot.lane.b32.xlu1 %v7499_v51, %s6074_s11  ;;  %3212 = vrot.lane.b32.xlu0 %v7499_v51, %s6073_s10  ;;  %v2933_v5 = vsel %vm6271_vm8, %v2931_v46, %v2932_v53  ;;  %v3033_v28 = vsel %vm6280_vm11, %v3031_v47, %v3032_v14  ;;  %v3140_v43 = vrot.slane %v3132_v0, 4 }
 0x511   :  { %v7576_v52 = vsel %vm6293_vm14, %v3131_v58, %v3132_v0 }
 0x512   :  { %2925 = vst [vmem:[#allocation2 + $0x28] sm:$0x77] %v7507_v49  ;;  %v2941_v8 = vrot.slane %v7507_v49, 5  ;;  %v3041_v35 = vrot.slane %v7507_v49, 6  ;;  %v3141_v42 = vrot.slane %v7507_v49, 7 }
 0x514   :  { %3339 = vrot.lane.b32.xlu1 %v3028_v25, %s6079_s16  ;;  %2952 = vrot.lane.b32.xlu0 %v2928_v11, %s6075_s12  ;;  %v2942_v13 = vsel %vm6271_vm8, %v2940_v37, %v2941_v8  ;;  %v3042_v44 = vsel %vm6280_vm11, %v3040_v41, %v3041_v35  ;;  %v2949_v12 = vrot.slane %v2941_v8, 4  ;;  %v7600_v18 = vsel %vm6293_vm14, %v3140_v43, %v3141_v42 }
 0x515   :  { %v2865_v54 = vpop.permute.xlu1 %2864 }
 0x518   :  { %v2855_v6 = vpop.permute.xlu0 %2854  ;;  %3529 = vrot.lane.b32.xlu1 %v2928_v11, %s6081_s18  ;;  %3052 = vrot.lane.b32.xlu0 %v3028_v25, %s6076_s13 }
 0x519   :  { %v2853_v1 = vpop.permute.xlu1 %2852 }
 0x51a   :  { %v2869_v16 = vsel %vm9307_vm3, %v2853_v1, %v2855_v6 }
 0x51b   :  { %v2879_v61 = vsel %vm9308_vm0, %v2869_v16, 0 }
 0x51c   :  { %v7525_v33 = vcombine.low %v2879_v61, %v2879_v61  ;;  %v7527_v48 = vcombine.high %v2879_v61, %v2879_v61  ;;  %v2851_v32 = vpop.permute.xlu0 %2850  ;;  %3149 = vrot.lane.b32.xlu0 %v7520_v23, %s6077_s14  ;;  %3269 = vrot.lane.b32.xlu1 %v2933_v5, %s6078_s15 }
 0x51d   :  { %v2867_v17 = vsel %vm9310_vm4, %v2849_v19, %v2851_v32  ;;  %v2868_v10 = vsel %vm9311_vm6, %v2851_v32, %v2853_v1  ;;  %v2863_v27 = vpop.permute.xlu1 %2862  ;;  %vm9315_vm4 = vmmov %vm9307_vm3  ;;  %v7620_v19 = vrot.slane %v3041_v35, 4 }
 0x51e   :  { %2921 = vst.msk [vmem:[#allocation2 + $0x10] sm:$0xf] %vm9312_vm12, %v7525_v33  ;;  %v7539_v39 = vcombine.low %v2867_v17, %v2868_v10  ;;  %v7541_v22 = vcombine.high %v2867_v17, %v2868_v10  ;;  %v2873_v40 = vsel %vm9307_vm3, %v2863_v27, %v2865_v54  ;;  %vm9316_vm6 = vmmov %vm9307_vm3  ;;  %vm9317_vm12 = vcmask 411648   ;;  %4438 = vmatprep.subr.bf16.mxu1 %v2868_v10 }
 0x51f   :  { %2924 = vst.msk [vmem:[#allocation2 + $0x24] sm:$0xf] %vm9313_vm2, %v7527_v48  ;;  %v2881_v60 = vsel %vm9308_vm0, %v2873_v40, 0  ;;  %4439 = vmatpush1.bf16.msra.mxu1 %v2867_v17  ;;  %v2938_v54 = vrot.slane %v7527_v48, 5  ;;  %v7668_v6 = vrot.slane %v7525_v33, 6  ;;  %v7676_v53 = vrot.slane %v7525_v33, 7 }
 0x520   :  { %v7547_v9 = vcombine.low %v2881_v60, %v2881_v60  ;;  %v2861_v59 = vpop.permute.xlu0 %2860  ;;  %3263 = vrot.lane.b32.xlu0 %v2928_v11, %s6078_s15  ;;  %3345 = vrot.lane.b32.xlu1 %v3033_v28, %s6079_s16  ;;  %v2929_v24 = vrot.slane %v7539_v39, 5  ;;  %v3029_v4 = vrot.slane %v7539_v39, 6  ;;  %v7609_v26 = vrot.slane %v7539_v39, 7 }
 0x521   :  { %v2871_v34 = vsel %vm9315_vm4, %v2859_v56, %v2861_v59  ;;  %v2872_v55 = vsel %vm9316_vm6, %v2861_v59, %v2863_v27  ;;  %v2935_v36 = vrot.slane %v7541_v22, 5  ;;  %v3035_v2 = vrot.slane %v7541_v22, 6 }
 0x522   :  { %2927 = vst.msk [vmem:[#allocation2 + $0x38] sm:$0x7] %vm9317_vm12, %v7547_v9  ;;  %v7555_v29 = vcombine.low %v2871_v34, %v2872_v55  ;;  %v2934_v7 = vrot.slane %v2929_v24, 4  ;;  %v3034_v3 = vrot.slane %v3029_v4, 4  ;;  %v3134_v20 = vrot.slane %v7609_v26, 4 }
 0x523   :  { %v3135_v62 = vrot.slane %v7541_v22, 7  ;;  %v3037_v1 = vrot.slane %v7668_v6, 4  ;;  %v3038_v16 = vrot.slane %v7527_v48, 6  ;;  %v9169_v47 = vrot.slane %v7527_v48, 7 }
 0x524   :  { %2926 = vst [vmem:[#allocation2 + $0x30] sm:$0x77] %v7555_v29  ;;  %3415 = vrot.lane.b32.xlu0 %v7520_v23, %s6080_s17  ;;  %3535 = vrot.lane.b32.xlu1 %v2933_v5, %s6081_s18  ;;  %v7628_v51 = vsel %vm6271_vm8, %v2934_v7, %v2935_v36  ;;  %v7637_v56 = vsel %vm6280_vm11, %v3034_v3, %v3035_v2  ;;  %v2943_v59 = vrot.slane %v2935_v36, 4  ;;  %v3044_v37 = vrot.slane %v7555_v29, 6 }
 0x525   :  { %v7686_v61 = vsel %vm6280_vm11, %v3037_v1, %v3038_v16  ;;  %v3144_v41 = vrot.slane %v7555_v29, 7  ;;  %v2947_v1 = vrot.slane %v7547_v9, 5  ;;  %vm9319_vm2 = vcmask 1014784  }
 0x526   :  { %vm9325_vm3 = vmmov %vm9319_vm2  ;;  %vm9327_vm0 = vcmask 965632   ;;  %vm9328_vm4 = vcmask 982016  }
 0x527   :  { %vm9329_vm6 = vmmov %vm9328_vm4 }
 0x528   :  { %3605 = vrot.lane.b32.xlu0 %v3028_v25, %s6082_s19  ;;  %3611 = vrot.lane.b32.xlu1 %v3033_v28, %s6082_s19  ;;  %v7649_v25 = vrot.slane %v7525_v33, 5 }
 0x52a   :  { %v2937_v11 = vrot.slane %v7649_v25, 4 }
 0x52c   :  { %2958 = vrot.lane.b32.xlu0 %v2933_v5, %s6075_s12  ;;  %3484 = vrot.lane.b32.xlu1 %v7507_v49, %s6074_s11  ;;  %v7665_v46 = vsel %vm6271_vm8, %v2937_v11, %v2938_v54  ;;  %v3137_v5 = vrot.slane %v7676_v53, 4 }
 0x52e   :  { %v7697_v32 = vsel %vm6293_vm14, %v3137_v5, %v9169_v47 }
 0x530   :  { %3058 = vrot.lane.b32.xlu0 %v3033_v28, %s6076_s13  ;;  %3275 = vrot.lane.b32.xlu1 %v2942_v13, %s6078_s15  ;;  %v2944_v28 = vrot.slane %v7555_v29, 5 }
 0x532   :  { %v2945_v8 = vsel %vm6271_vm8, %v2943_v59, %v2944_v28  ;;  %v7808_v59 = vrot.slane %v3044_v37, 4 }
 0x534   :  { %3155 = vrot.lane.b32.xlu0 %v7576_v52, %s6077_s14  ;;  %3617 = vrot.lane.b32.xlu1 %v3042_v44, %s6082_s19 }
 0x538   :  { %3421 = vrot.lane.b32.xlu0 %v7576_v52, %s6080_s17  ;;  %3281 = vrot.lane.b32.xlu1 %v2949_v12, %s6078_s15 }
 0x53c   :  { %3218 = vrot.lane.b32.xlu0 %v7507_v49, %s6073_s10  ;;  %3208 = vrot.lane.b32.xlu1 %v7539_v39, %s6073_s10  ;;  %v7646_v49 = vsel %vm6293_vm14, %v3134_v20, %v3135_v62 }
 0x540   :  { %2964 = vrot.lane.b32.xlu0 %v2942_v13, %s6075_s12  ;;  %3214 = vrot.lane.b32.xlu1 %v7541_v22, %s6073_s10 }
 0x544   :  { %3064 = vrot.lane.b32.xlu0 %v3042_v44, %s6076_s13  ;;  %3210 = vrot.lane.b32.xlu1 %v7525_v33, %s6073_s10 }
 0x548   :  { %3161 = vrot.lane.b32.xlu0 %v7600_v18, %s6077_s14  ;;  %2954 = vrot.lane.b32.xlu1 %v2929_v24, %s6075_s12 }
 0x54c   :  { %3351 = vrot.lane.b32.xlu0 %v3042_v44, %s6079_s16  ;;  %3054 = vrot.lane.b32.xlu1 %v3029_v4, %s6076_s13  ;;  %v3143_v44 = vrot.slane %v3135_v62, 4  ;;  %v2950_v62 = vrot.slane %v2944_v28, 4 }
 0x54e   :  { %v7762_v43 = vsel %vm6293_vm14, %v3143_v44, %v3144_v41 }
 0x550   :  { %3427 = vrot.lane.b32.xlu0 %v7600_v18, %s6080_s17  ;;  %3151 = vrot.lane.b32.xlu1 %v7609_v26, %s6077_s14 }
 0x554   :  { %3541 = vrot.lane.b32.xlu0 %v2942_v13, %s6081_s18  ;;  %3265 = vrot.lane.b32.xlu1 %v2929_v24, %s6078_s15  ;;  %v3043_v13 = vrot.slane %v3035_v2, 4 }
 0x556   :  { %v3045_v0 = vsel %vm6280_vm11, %v3043_v13, %v3044_v37 }
 0x558   :  { %2970 = vrot.lane.b32.xlu0 %v2949_v12, %s6075_s12  ;;  %3417 = vrot.lane.b32.xlu1 %v7609_v26, %s6080_s17 }
 0x55c   :  { %3070 = vrot.lane.b32.xlu0 %v7620_v19, %s6076_s13  ;;  %3607 = vrot.lane.b32.xlu1 %v3029_v4, %s6082_s19 }
 0x560   :  { %3357 = vrot.lane.b32.xlu0 %v7620_v19, %s6079_s16  ;;  %2960 = vrot.lane.b32.xlu1 %v7628_v51, %s6075_s12 }
 0x564   :  { %3547 = vrot.lane.b32.xlu0 %v2949_v12, %s6081_s18  ;;  %3060 = vrot.lane.b32.xlu1 %v7637_v56, %s6076_s13 }
 0x568   :  { %3474 = vrot.lane.b32.xlu0 %v7539_v39, %s6074_s11  ;;  %3157 = vrot.lane.b32.xlu1 %v7646_v49, %s6077_s14 }
 0x56c   :  { %3480 = vrot.lane.b32.xlu0 %v7541_v22, %s6074_s11  ;;  %3423 = vrot.lane.b32.xlu1 %v7646_v49, %s6080_s17 }
 0x570   :  { %3216 = vrot.lane.b32.xlu0 %v7527_v48, %s6073_s10  ;;  %2962 = vrot.lane.b32.xlu1 %v7665_v46, %s6075_s12 }
 0x574   :  { %3341 = vrot.lane.b32.xlu0 %v3029_v4, %s6079_s16  ;;  %3220 = vrot.lane.b32.xlu1 %v7555_v29, %s6073_s10 }
 0x578   :  { %3531 = vrot.lane.b32.xlu0 %v2929_v24, %s6081_s18  ;;  %3062 = vrot.lane.b32.xlu1 %v7686_v61, %s6076_s13 }
 0x57c   :  { %2956 = vrot.lane.b32.xlu0 %v7649_v25, %s6075_s12  ;;  %3159 = vrot.lane.b32.xlu1 %v7697_v32, %s6077_s14 }
 0x57e   :  { %v7703_v17 = vpop.permute.xlu0 %3206  ;;  %v7705_v10 = vpop.permute.xlu1 %3472 }
 0x580   :  { %3056 = vrot.lane.b32.xlu0 %v7668_v6, %s6076_s13  ;;  %3273 = vrot.lane.b32.xlu1 %v7665_v46, %s6078_s15 }
 0x582   :  { %v7711_v27 = vpop.permute.xlu0 %3212  ;;  %v7713_v14 = vpop.permute.xlu1 %3478 }
 0x584   :  { %3153 = vrot.lane.b32.xlu0 %v7676_v53, %s6077_s14  ;;  %3349 = vrot.lane.b32.xlu1 %v7686_v61, %s6079_s16 }
 0x586   :  { %v7719_v39 = vpop.permute.xlu0 %2952  ;;  %v7721_v22 = vpop.permute.xlu1 %3339 }
 0x588   :  { %3267 = vrot.lane.b32.xlu0 %v7649_v25, %s6078_s15  ;;  %3425 = vrot.lane.b32.xlu1 %v7697_v32, %s6080_s17 }
 0x58a   :  { %v7727_v40 = vpop.permute.xlu0 %3052  ;;  %v7729_v60 = vpop.permute.xlu1 %3529 }
 0x58c   :  { %3343 = vrot.lane.b32.xlu0 %v7668_v6, %s6079_s16  ;;  %3222 = vrot.lane.b32.xlu1 %v7547_v9, %s6073_s10 }
 0x58e   :  { %v7736_v34 = vpop.permute.xlu0 %3149  ;;  %v7738_v55 = vpop.permute.xlu1 %3269 }
 0x590   :  { %3419 = vrot.lane.b32.xlu0 %v7676_v53, %s6080_s17  ;;  %2966 = vrot.lane.b32.xlu1 %v2945_v8, %s6075_s12 }
 0x592   :  { %v7746_v58 = vpop.permute.xlu0 %3263  ;;  %v7748_v35 = vpop.permute.xlu1 %3345 }
 0x594   :  { %3271 = vrot.lane.b32.xlu0 %v7628_v51, %s6078_s15  ;;  %3066 = vrot.lane.b32.xlu1 %v3045_v0, %s6076_s13 }
 0x596   :  { %v7756_v12 = vpop.permute.xlu0 %3415  ;;  %v7758_v42 = vpop.permute.xlu1 %3535 }
 0x598   :  { %3347 = vrot.lane.b32.xlu0 %v7637_v56, %s6079_s16  ;;  %3163 = vrot.lane.b32.xlu1 %v7762_v43, %s6077_s14 }
 0x59a   :  { %v7768_v24 = vpop.permute.xlu0 %3605  ;;  %v7770_v4 = vpop.permute.xlu1 %3611 }
 0x59c   :  { %3537 = vrot.lane.b32.xlu0 %v7628_v51, %s6081_s18  ;;  %3353 = vrot.lane.b32.xlu1 %v3045_v0, %s6079_s16 }
 0x59e   :  { %v7775_v7 = vpop.permute.xlu0 %2958  ;;  %v7777_v36 = vpop.permute.xlu1 %3484 }
 0x5a0   :  { %3613 = vrot.lane.b32.xlu0 %v7637_v56, %s6082_s19  ;;  %3429 = vrot.lane.b32.xlu1 %v7762_v43, %s6080_s17 }
 0x5a2   :  { %v7783_v3 = vpop.permute.xlu0 %3058  ;;  %v7785_v2 = vpop.permute.xlu1 %3275 }
 0x5a4   :  { %3486 = vrot.lane.b32.xlu0 %v7555_v29, %s6074_s11  ;;  %3543 = vrot.lane.b32.xlu1 %v2945_v8, %s6081_s18  ;;  %v2946_v29 = vrot.slane %v2938_v54, 4  ;;  %v3046_v54 = vrot.slane %v3038_v16, 4 }
 0x5a6   :  { %v7790_v51 = vpop.permute.xlu0 %3155  ;;  %v7792_v20 = vpop.permute.xlu1 %3617  ;;  %v7813_v41 = vsel %vm6271_vm8, %v2946_v29, %v2947_v1  ;;  %v3227_v29 = vrot.slane %v7711_v27, 4  ;;  %vm9321_vm8 = vmmov %vm9319_vm2 }
 0x5a8   :  { %3277 = vrot.lane.b32.xlu0 %v2945_v8, %s6078_s15  ;;  %2972 = vrot.lane.b32.xlu1 %v2950_v62, %s6075_s12  ;;  %v3224_v8 = vrot.slane %v7703_v17, 4 }
 0x5aa   :  { %v7796_v56 = vpop.permute.xlu0 %3421  ;;  %v7798_v11 = vpop.permute.xlu1 %3281 }
 0x5ac   :  { %3619 = vrot.lane.b32.xlu0 %v3045_v0, %s6082_s19  ;;  %3623 = vrot.lane.b32.xlu1 %v7620_v19, %s6082_s19  ;;  %v3047_v0 = vrot.slane %v7547_v9, 6 }
 0x5ae   :  { %v7806_v5 = vpop.permute.xlu0 %3218  ;;  %v3209_v28 = vpop.permute.xlu1 %3208  ;;  %v7835_v31 = vsel %vm6280_vm11, %v3046_v54, %v3047_v0  ;;  %vm9323_vm11 = vcmask 412672   ;;  %v3147_v54 = vrot.slane %v7547_v9, 7 }
 0x5af   :  { %v3225_v13 = vrot.slane %v3209_v28, 4 }
 0x5b0   :  { %2968 = vrot.lane.b32.xlu0 %v7813_v41, %s6075_s12  ;;  %3072 = vrot.lane.b32.xlu1 %v7808_v59, %s6076_s13 }
 0x5b1   :  { %v3233_v19 = vsel %vm452_vm7, %v3224_v8, %v3225_v13 }
 0x5b2   :  { %v7825_v37 = vsel %vm9319_vm2, %v7703_v17, %v3233_v19  ;;  %v7827_v63 = vpop.permute.xlu0 %2964  ;;  %v7829_v44 = vpop.permute.xlu1 %3214  ;;  %vm9331_vm2 = vmmov %vm9323_vm11 }
 0x5b3   :  { %9320 = vst [vmem:[#allocation16_spill] sm:$0xff] %v7825_v37  ;;  %v9170_v57 = vrot.slane %v7829_v44, 4 }
 0x5b4   :  { %3068 = vrot.lane.b32.xlu0 %v7835_v31, %s6076_s13  ;;  %3359 = vrot.lane.b32.xlu1 %v7808_v59, %s6079_s16 }
 0x5b5   :  { %v3237_v16 = vsel %vm452_vm7, %v3227_v29, %v9170_v57  ;;  %v9324_v29 = vrot.slane %v7527_v48, 7 }
 0x5b6   :  { %v7846_v17 = vsel %vm9321_vm8, %v7711_v27, %v3237_v16  ;;  %v7848_v8 = vpop.permute.xlu0 %3064  ;;  %v3211_v19 = vpop.permute.xlu1 %3210  ;;  %vm9332_vm8 = vmmov %vm9331_vm2 }
 0x5b7   :  { %9322 = vst [vmem:[#allocation14_spill] sm:$0xff] %v7846_v17  ;;  %v3226_v45 = vrot.slane %v3211_v19, 4  ;;  %3256 = vst.msk [vmem:[#allocation2 + $0xec] sm:$0xf] %vm9323_vm11, %v3211_v19  ;;  %v3146_v57 = vrot.slane %v9324_v29, 4  ;;  %v7862_v17 = vrot.slane %v2947_v1, 4 }
 0x5b8   :  { %3283 = vrot.lane.b32.xlu0 %v2950_v62, %s6078_s15  ;;  %3549 = vrot.lane.b32.xlu1 %v2950_v62, %s6081_s18  ;;  %v2976_v19 = vrot.slane %v7719_v39, 4  ;;  %vm9334_vm11 = vmmov %vm9325_vm3  ;;  %v3082_v38 = vrot.slane %v7848_v8, 4 }
 0x5b9   :  { %v3235_v47 = vsel %vm452_vm7, %v3225_v13, %v3226_v45  ;;  %v7868_v62 = vsel %vm6293_vm14, %v3146_v57, %v3147_v54  ;;  %v3076_v57 = vrot.slane %v7727_v40, 4  ;;  %vm9326_vm14 = vcmask 990208  }
 0x5ba   :  { %v3236_v27 = vsel %vm9325_vm3, %v3209_v28, %v3235_v47  ;;  %v7858_v16 = vpop.permute.xlu0 %3161  ;;  %v7860_v30 = vpop.permute.xlu1 %2954  ;;  %vm9330_vm12 = vmmov %vm9326_vm14  ;;  %vm9335_vm3 = vcmask 998400  }
 0x5bb   :  { %3255 = vst [vmem:[#allocation2 + $0xe4] sm:$0xff] %v3236_v27  ;;  %v9179_v37 = vrot.slane %v7860_v30, 4  ;;  %v7898_v27 = vrot.slane %v3047_v0, 4 }
 0x5bc   :  { %3165 = vrot.lane.b32.xlu0 %v7868_v62, %s6077_s14  ;;  %2974 = vrot.lane.b32.xlu1 %v7862_v17, %s6075_s12 }
 0x5bd   :  { %v2988_v47 = vsel %vm452_vm7, %v2976_v19, %v9179_v37  ;;  %v3167_v19 = vrot.slane %v7736_v34, 4 }
 0x5be   :  { %v2989_v1 = vsel %vm454_vm15, %v7719_v39, %v2988_v47  ;;  %v7879_v28 = vpop.permute.xlu0 %3351  ;;  %v7881_v13 = vpop.permute.xlu1 %3054 }
 0x5bf   :  { %3016 = vst [vmem:[#allocation2 + $0x28] sm:$0x88] %v2989_v1  ;;  %v9178_v15 = vrot.slane %v7881_v13, 4 }
 0x5c0   :  { %3279 = vrot.lane.b32.xlu0 %v7813_v41, %s6078_s15  ;;  %3681 = vrot.lane.b32.xlu1 %v7520_v23, %s6083_s20 }
 0x5c1   :  { %v3088_v45 = vsel %vm452_vm7, %v3076_v57, %v9178_v15  ;;  %v3287_v57 = vrot.slane %v7746_v58, 4 }
 0x5c2   :  { %v3089_v39 = vsel %vm560_vm9, %v7727_v40, %v3088_v45  ;;  %v7894_v54 = vpop.permute.xlu0 %3427  ;;  %v7896_v29 = vpop.permute.xlu1 %3151 }
 0x5c3   :  { %3116 = vst [vmem:[#allocation2 + $0x64] sm:$0xcc] %v3089_v39  ;;  %v9174_v47 = vrot.slane %v7896_v29, 4 }
 0x5c4   :  { %3355 = vrot.lane.b32.xlu0 %v7835_v31, %s6079_s16  ;;  %3074 = vrot.lane.b32.xlu1 %v7898_v27, %s6076_s13 }
 0x5c5   :  { %v3176_v23 = vsel %vm452_vm7, %v3167_v19, %v9174_v47 }
 0x5c6   :  { %v3177_v40 = vsel %vm654_vm10, %v7736_v34, %v3176_v23  ;;  %v7911_v0 = vpop.permute.xlu0 %3541  ;;  %v7913_v1 = vpop.permute.xlu1 %3265 }
 0x5c7   :  { %3197 = vst [vmem:[#allocation2 + $0xa0] sm:$0xee] %v3177_v40  ;;  %v9175_v45 = vrot.slane %v7913_v1, 4  ;;  %v3433_v40 = vrot.slane %v7756_v12, 4 }
 0x5c8   :  { %3431 = vrot.lane.b32.xlu0 %v7868_v62, %s6080_s17  ;;  %3687 = vrot.lane.b32.xlu1 %v7576_v52, %s6083_s20 }
 0x5c9   :  { %v3299_v39 = vsel %vm452_vm7, %v3287_v57, %v9175_v45 }
 0x5ca   :  { %v3300_v34 = vsel %vm780_vm13, %v7746_v58, %v3299_v39  ;;  %v7926_v19 = vpop.permute.xlu0 %2970  ;;  %v7928_v23 = vpop.permute.xlu1 %3417 }
 0x5cb   :  { %3327 = vst [vmem:[#allocation2 + $0x104] sm:$0x88] %v3300_v34  ;;  %v9177_v47 = vrot.slane %v7928_v23, 4  ;;  %v3629_v34 = vrot.slane %v7768_v24, 4 }
 0x5cc   :  { %3625 = vrot.lane.b32.xlu0 %v7808_v59, %s6082_s19  ;;  %3476 = vrot.lane.b32.xlu1 %v7525_v33, %s6074_s11 }
 0x5cd   :  { %v3442_v52 = vsel %vm452_vm7, %v3433_v40, %v9177_v47 }
 0x5ce   :  { %v3443_v58 = vsel %vm9326_vm14, %v7756_v12, %v3442_v52  ;;  %v7941_v57 = vpop.permute.xlu0 %3070  ;;  %v7943_v39 = vpop.permute.xlu1 %3607  ;;  %v2979_v52 = vrot.slane %v7775_v7, 4  ;;  %vm9336_vm14 = vmmov %vm9334_vm11 }
 0x5cf   :  { %3463 = vst [vmem:[#allocation2 + $0x17c] sm:$0xee] %v3443_v58  ;;  %v9176_v45 = vrot.slane %v7943_v39, 4 }
 0x5d0   :  { %3683 = vrot.lane.b32.xlu0 %v7609_v26, %s6083_s20  ;;  %3488 = vrot.lane.b32.xlu1 %v7547_v9, %s6074_s11 }
 0x5d1   :  { %v3641_v33 = vsel %vm452_vm7, %v3629_v34, %v9176_v45  ;;  %v3079_v45 = vrot.slane %v7783_v3, 4 }
 0x5d2   :  { %v3642_v12 = vsel %vm9327_vm0, %v7768_v24, %v3641_v33  ;;  %v7956_v59 = vpop.permute.xlu0 %3357  ;;  %v2961_v40 = vpop.permute.xlu1 %2960  ;;  %v3750_v33 = vld [vmem:[#allocation2 + $0x28] sm:$0xff]  ;;  %vm9337_vm0 = vmmov %vm9331_vm2 }
 0x5d3   :  { %3669 = vst [vmem:[#allocation2 + $0x21c] sm:$0xcc] %v3642_v12  ;;  %v2980_v58 = vrot.slane %v2961_v40, 4 }
 0x5d4   :  { %3689 = vrot.lane.b32.xlu0 %v7646_v49, %s6083_s20  ;;  %3285 = vrot.lane.b32.xlu1 %v7862_v17, %s6078_s15 }
 0x5d5   :  { %v2992_v9 = vsel %vm452_vm7, %v2979_v52, %v2980_v58 }
 0x5d6   :  { %v2993_v26 = vsel %vm454_vm15, %v7775_v7, %v2992_v9  ;;  %v7966_v34 = vpop.permute.xlu0 %3547  ;;  %v7968_v24 = vpop.permute.xlu1 %3060 }
 0x5d7   :  { %v9182_v12 = vrot.slane %v7968_v24, 4  ;;  %v5298_v47 = vcombine.low %v3750_v33, %v2993_v26  ;;  %v5299_v15 = vcombine.high %v3750_v33, %v2993_v26  ;;  %v3490_v26 = vrot.slane %v7705_v10, 4 }
 0x5d8   :  { %3482 = vrot.lane.b32.xlu0 %v7527_v48, %s6074_s11  ;;  %3361 = vrot.lane.b32.xlu1 %v7898_v27, %s6079_s16  ;;  %v3170_v48 = vrot.slane %v7790_v51, 4 }
 0x5d9   :  { %v3092_v49 = vsel %vm452_vm7, %v3079_v45, %v9182_v12  ;;  %4338 = vmatprep.subr.bf16.mxu0 %v5299_v15 }
 0x5da   :  { %v7981_v7 = vsel %vm560_vm9, %v7783_v3, %v3092_v49  ;;  %v7983_v52 = vpop.permute.xlu0 %3474  ;;  %v7985_v9 = vpop.permute.xlu1 %3157  ;;  %4339 = vmatpush1.bf16.msra.mxu0 %v5298_v47 }
 0x5db   :  { %v9180_v33 = vrot.slane %v7983_v52, 4  ;;  %v9181_v37 = vrot.slane %v7985_v9, 4 }
 0x5dc   :  { %3533 = vrot.lane.b32.xlu0 %v7649_v25, %s6081_s18  ;;  %3539 = vrot.lane.b32.xlu1 %v7665_v46, %s6081_s18  ;;  %v3493_v46 = vrot.slane %v7713_v14, 4 }
 0x5dd   :  { %v3499_v3 = vsel %vm452_vm7, %v3490_v26, %v9180_v33  ;;  %v3180_v15 = vsel %vm452_vm7, %v3170_v48, %v9181_v37  ;;  %v3436_v26 = vrot.slane %v7796_v56, 4 }
 0x5de   :  { %v8003_v47 = vsel %vm9328_vm4, %v7705_v10, %v3499_v3  ;;  %v8007_v45 = vsel %vm654_vm10, %v7790_v51, %v3180_v15  ;;  %v8009_v25 = vpop.permute.xlu0 %3480  ;;  %v8011_v49 = vpop.permute.xlu1 %3423  ;;  %vm9339_vm4 = vcmask 973824  }
 0x5df   :  { %v9183_v33 = vrot.slane %v8009_v25, 4  ;;  %v3437_v48 = vrot.slane %v8011_v49, 4 }
 0x5e0   :  { %3545 = vrot.lane.b32.xlu0 %v7813_v41, %s6081_s18  ;;  %3615 = vrot.lane.b32.xlu1 %v7686_v61, %s6082_s19 }
 0x5e1   :  { %v3503_v10 = vsel %vm452_vm7, %v3493_v46, %v9183_v33  ;;  %v3446_v51 = vsel %vm452_vm7, %v3436_v26, %v3437_v48  ;;  %v3230_v33 = vrot.slane %v7806_v5, 4 }
 0x5e2   :  { %v8029_v3 = vsel %vm9329_vm6, %v7713_v14, %v3503_v10  ;;  %v8033_v15 = vsel %vm9330_vm12, %v7796_v56, %v3446_v51  ;;  %v3217_v41 = vpop.permute.xlu0 %3216  ;;  %v2963_v37 = vpop.permute.xlu1 %2962  ;;  %v6007_v14 = vld [vmem:[%s9096_s3 + $0x4] ss:$12 sps:$4 sm:$0xff]   ;;  %v9333_v56 = vrot.slane %v7829_v44, 4  ;;  %vm9340_vm6 = vcmask 412675   ;;  %vm9341_vm12 = vmmov %vm9337_vm0 }
 0x5e3   :  { %v3229_v12 = vrot.slane %v3217_v41, 4  ;;  %3259 = vst.msk [vmem:[#allocation2 + $0x100] sm:$0xf] %vm9331_vm2, %v3217_v41  ;;  %v2981_v61 = vrot.slane %v2963_v37, 4  ;;  %4368 = vmatprep.mubr.bf16.mxu0 %v6007_v14  ;;  %4470 = vmatprep.mubr.bf16.mxu1 %v6007_v14  ;;  %vm9344_vm2 = vcmask 412674  }
 0x5e4   :  { %3021 = vst.msk [vmem:[#allocation2 + $0x4c] sm:$0xf] %vm9332_vm8, %v2963_v37  ;;  %3609 = vrot.lane.b32.xlu0 %v7668_v6, %s6082_s19  ;;  %3693 = vrot.lane.b32.xlu1 %v7600_v18, %s6083_s20  ;;  %v3363_v18 = vrot.slane %v7721_v22, 4  ;;  %vm9345_vm8 = vmmov %vm9337_vm0 }
 0x5e5   :  { %v3239_v37 = vsel %vm452_vm7, %v9333_v56, %v3229_v12  ;;  %v2994_v10 = vsel %vm452_vm7, %v2980_v58, %v2981_v61 }
 0x5e6   :  { %v8054_v51 = vsel %vm9334_vm11, %v7829_v44, %v3239_v37  ;;  %v8057_v41 = vsel %vm454_vm15, %v2961_v40, %v2994_v10  ;;  %v8059_v46 = vpop.permute.xlu0 %3341  ;;  %v8061_v6 = vpop.permute.xlu1 %3220  ;;  %v3553_v37 = vrot.slane %v7729_v60, 4  ;;  %vm9347_vm11 = vcmask 412673  }
 0x5e7   :  { %v3364_v12 = vrot.slane %v8059_v46, 4  ;;  %v3231_v58 = vrot.slane %v8061_v6, 4 }
 0x5e8   :  { %3621 = vrot.lane.b32.xlu0 %v7835_v31, %s6082_s19  ;;  %3551 = vrot.lane.b32.xlu1 %v7862_v17, %s6081_s18 }
 0x5e9   :  { %v3375_v44 = vsel %vm452_vm7, %v3363_v18, %v3364_v12  ;;  %v3241_v40 = vsel %vm452_vm7, %v3230_v33, %v3231_v58 }
 0x5ea   :  { %v3376_v61 = vsel %vm9335_vm3, %v7721_v22, %v3375_v44  ;;  %v3242_v14 = vsel %vm9336_vm14, %v7806_v5, %v3241_v40  ;;  %v8081_v56 = vpop.permute.xlu0 %3531  ;;  %v3063_v31 = vpop.permute.xlu1 %3062  ;;  %v9338_v5 = vrot.slane %v7968_v24, 4  ;;  %vm9348_vm3 = vmmov %vm9337_vm0 }
 0x5eb   :  { %3403 = vst [vmem:[#allocation2 + $0x140] sm:$0xcc] %v3376_v61  ;;  %3260 = vst [vmem:[#allocation2 + $0x104] sm:$0x77] %v3242_v14  ;;  %v9186_v17 = vrot.slane %v8081_v56, 4  ;;  %v3081_v10 = vrot.slane %v3063_v31, 4 }
 0x5ec   :  { %3121 = vst.msk [vmem:[#allocation2 + $0x88] sm:$0xf] %vm9337_vm0, %v3063_v31  ;;  %3695 = vrot.lane.b32.xlu0 %v7762_v43, %s6083_s20  ;;  %3627 = vrot.lane.b32.xlu1 %v7898_v27, %s6082_s19  ;;  %v9343_v14 = vrot.slane %v7985_v9, 4  ;;  %vm9350_vm14 = vmmov %vm9340_vm6 }
 0x5ed   :  { %v3565_v22 = vsel %vm452_vm7, %v3553_v37, %v9186_v17  ;;  %v3094_v33 = vsel %vm452_vm7, %v9338_v5, %v3081_v10  ;;  %v3843_v37 = vld [vmem:[%s9097_s4] sm:$0xff] }
 0x5ee   :  { %v3566_v18 = vsel %vm9339_vm4, %v7729_v60, %v3565_v22  ;;  %v8100_v44 = vsel %vm560_vm9, %v7968_v24, %v3094_v33  ;;  %v2957_v40 = vpop.permute.xlu0 %2956  ;;  %v3160_v43 = vpop.permute.xlu1 %3159  ;;  %v9342_v60 = vrot.slane %v7860_v30, 4  ;;  %vm9352_vm4 = vcmask 990208  }
 0x5ef   :  { %3593 = vst [vmem:[#allocation2 + $0x1e0] sm:$0x88] %v3566_v18  ;;  %v2978_v61 = vrot.slane %v2957_v40, 4  ;;  %3018 = vst.msk [vmem:[#allocation2 + $0x38] sm:$0x8] %vm9340_vm6, %v2957_v40  ;;  %v3172_v27 = vrot.slane %v3160_v43, 4 }
 0x5f0   :  { %3202 = vst.msk [vmem:[#allocation2 + $0xc4] sm:$0xf] %vm9341_vm12, %v3160_v43  ;;  %3685 = vrot.lane.b32.xlu0 %v7676_v53, %s6083_s20  ;;  %3691 = vrot.lane.b32.xlu1 %v7697_v32, %s6083_s20  ;;  %v3845_v18 = vld [vmem:[%s9097_s4 + $0x10] sm:$0xf]  ;;  %vm9353_vm6 = vmmov %vm9344_vm2  ;;  %vm9354_vm12 = vcmask 411648  }
 0x5f1   :  { %v2990_v24 = vsel %vm452_vm7, %v9342_v60, %v2978_v61  ;;  %v3182_v31 = vsel %vm452_vm7, %v9343_v14, %v3172_v27  ;;  %v9349_v27 = vrot.slane %v7896_v29, 4 }
 0x5f2   :  { %v2991_v10 = vsel %vm454_vm15, %v7860_v30, %v2990_v24  ;;  %v8121_v53 = vsel %vm654_vm10, %v7985_v9, %v3182_v31  ;;  %v3057_v32 = vpop.permute.xlu0 %3056  ;;  %v8123_v22 = vpop.permute.xlu1 %3273  ;;  %v9346_v30 = vrot.slane %v7881_v13, 4  ;;  %v3844_v9 = vld [vmem:[%s9097_s4 + $0x8] sm:$0xff] }
 0x5f3   :  { %3017 = vst [vmem:[#allocation2 + $0x30] sm:$0x88] %v2991_v10  ;;  %v3078_v5 = vrot.slane %v3057_v32, 4  ;;  %3118 = vst.msk [vmem:[#allocation2 + $0x74] sm:$0xc] %vm9344_vm2, %v3057_v32  ;;  %vm9355_vm2 = vcmask 998400  }
 0x5f4   :  { %3332 = vst.msk [vmem:[#allocation2 + $0x128] sm:$0xf] %vm9345_vm8, %v8123_v22  ;;  %3697 = vrot.lane.b32.xlu0 %v7868_v62, %s6083_s20  ;;  %3848 = vperm.xlu1 %5952, %v3843_v37   ;;  %vm9356_vm8 = vcmask 1014784  }
 0x5f5   :  { %v3090_v33 = vsel %vm452_vm7, %v9346_v30, %v3078_v5  ;;  %v9351_v30 = vrot.slane %v7913_v1, 4 }
 0x5f6   :  { %v3091_v40 = vsel %vm560_vm9, %v7881_v13, %v3090_v33  ;;  %v3154_v43 = vpop.permute.xlu0 %3153  ;;  %v8141_v61 = vpop.permute.xlu1 %3349 }
 0x5f7   :  { %3117 = vst [vmem:[#allocation2 + $0x6c] sm:$0xcc] %v3091_v40  ;;  %v3169_v62 = vrot.slane %v3154_v43, 4  ;;  %3199 = vst.msk [vmem:[#allocation2 + $0xb0] sm:$0xe] %vm9347_vm11, %v3154_v43 }
 0x5f8   :  { %3408 = vst.msk [vmem:[#allocation2 + $0x164] sm:$0xf] %vm9348_vm3, %v8141_v61  ;;  %3853 = vperm.xlu0 %5951, %v3844_v9   ;;  %3858 = vperm.xlu1 %5952, %v3845_v18   ;;  %vm9358_vm3 = vmmov %vm9352_vm4 }
 0x5f9   :  { %v3178_v60 = vsel %vm452_vm7, %v9349_v27, %v3169_v62 }
 0x5fa   :  { %v3179_v24 = vsel %vm654_vm10, %v7896_v29, %v3178_v60  ;;  %v3268_v13 = vpop.permute.xlu0 %3267  ;;  %v3426_v14 = vpop.permute.xlu1 %3425  ;;  %v3751_v31 = vld [vmem:[#allocation2 + $0x30] sm:$0xff] }
 0x5fb   :  { %3198 = vst [vmem:[#allocation2 + $0xa8] sm:$0xee] %v3179_v24  ;;  %v3289_v37 = vrot.slane %v3268_v13, 4  ;;  %3329 = vst.msk [vmem:[#allocation2 + $0x114] sm:$0x8] %vm9350_vm14, %v3268_v13  ;;  %v3438_v10 = vrot.slane %v3426_v14, 4  ;;  %v5300_v32 = vcombine.low %v3751_v31, %v8057_v41  ;;  %v5301_v5 = vcombine.high %v3751_v31, %v8057_v41 }
 0x5fc   :  { %3468 = vst.msk [vmem:[#allocation2 + $0x1a0] sm:$0xf] %vm9337_vm0, %v3426_v14  ;;  %v2982_v13 = vrot.slane %v7827_v63, 4  ;;  %v3290_v14 = vrot.slane %v7738_v55, 4  ;;  %vm9359_vm14 = vmmov %vm9355_vm2 }
 0x5fd   :  { %v3301_v33 = vsel %vm452_vm7, %v9351_v30, %v3289_v37  ;;  %v3448_v29 = vsel %vm452_vm7, %v3437_v48, %v3438_v10  ;;  %4440 = vmatprep.subr.bf16.mxu1 %v5301_v5  ;;  %v3292_v5 = vrot.slane %v8123_v22, 4  ;;  %vm9360_vm0 = vmmov %vm9355_vm2 }
 0x5fe   :  { %v3302_v9 = vsel %vm780_vm13, %v7913_v1, %v3301_v33  ;;  %v8165_v18 = vsel %vm9352_vm4, %v8011_v49, %v3448_v29  ;;  %v3344_v40 = vpop.permute.xlu0 %3343  ;;  %4441 = vmatpush1.bf16.msra.mxu1 %v5300_v32  ;;  %v3223_v43 = vpop.permute.xlu1 %3222  ;;  %vm9361_vm4 = vcmask 973824  }
 0x5ff   :  { %3328 = vst [vmem:[#allocation2 + $0x10c] sm:$0x88] %v3302_v9  ;;  %v3365_v41 = vrot.slane %v3344_v40, 4  ;;  %3405 = vst.msk [vmem:[#allocation2 + $0x150] sm:$0xc] %vm9353_vm6, %v3344_v40  ;;  %v3232_v62 = vrot.slane %v3223_v43, 4 }
 0x600   :  { %3262 = vst.msk [vmem:[#allocation2 + $0x114] sm:$0x7] %vm9354_vm12, %v3223_v43  ;;  %v3366_v9 = vrot.slane %v7748_v35, 4  ;;  %vm9362_vm6 = vmmov %vm9360_vm0  ;;  %vm2476_vm12 = vcmask 343040  }
 0x601   :  { %v3377_v1 = vsel %vm452_vm7, %v3364_v12, %v3365_v41  ;;  %v3243_v49 = vsel %vm452_vm7, %v3231_v58, %v3232_v62  ;;  %v9357_v58 = vrot.slane %v7928_v23, 4  ;;  %v6030_v62 = vpop.eup %6029 }
 0x602   :  { %v3378_v48 = vsel %vm9355_vm2, %v8059_v46, %v3377_v1  ;;  %v3244_v27 = vsel %vm9356_vm8, %v8061_v6, %v3243_v49  ;;  %v3420_v60 = vpop.permute.xlu0 %3419  ;;  %v8180_v24 = vpop.permute.xlu1 %2966  ;;  %v3173_v1 = vrot.slane %v7858_v16, 4  ;;  %v3368_v49 = vrot.slane %v8141_v61, 4  ;;  %vm9364_vm8 = vmmov %vm9358_vm3 }
 0x603   :  { %3404 = vst [vmem:[#allocation2 + $0x148] sm:$0xcc] %v3378_v48  ;;  %3261 = vst [vmem:[#allocation2 + $0x10c] sm:$0x77] %v3244_v27  ;;  %v3435_v50 = vrot.slane %v3420_v60, 4  ;;  %v2983_v12 = vrot.slane %v8180_v24, 4 }
 0x604   :  { %3465 = vst.msk [vmem:[#allocation2 + $0x18c] sm:$0xe] %vm9347_vm11, %v3420_v60  ;;  %vm9363_vm2 = vcmask 965632   ;;  %vm2483_vm11 = vcmask 338944  }
 0x605   :  { %v3444_v46 = vsel %vm452_vm7, %v9357_v58, %v3435_v50  ;;  %v2996_v6 = vsel %vm452_vm7, %v2982_v13, %v2983_v12  ;;  %v6032_v13 = vpop.eup %6031  ;;  %v8232_v50 = vmul.f32 0.6931472, %v6030_v62 }
 0x606   :  { %v3445_v31 = vsel %vm9358_vm3, %v7928_v23, %v3444_v46  ;;  %v8197_v37 = vsel %vm454_vm15, %v7827_v63, %v2996_v6  ;;  %v3272_v10 = vpop.permute.xlu0 %3271  ;;  %v8199_v32 = vpop.permute.xlu1 %3066  ;;  %vm9365_vm3 = vcmask 982016  }
 0x607   :  { %3464 = vst [vmem:[#allocation2 + $0x184] sm:$0xee] %v3445_v31  ;;  %v3291_v30 = vrot.slane %v3272_v10, 4  ;;  %v9194_v33 = vrot.slane %v8199_v32, 4  ;;  %v3556_v31 = vrot.slane %v7758_v42, 4 }
 0x609   :  { %v3303_v29 = vsel %vm452_vm7, %v3290_v14, %v3291_v30  ;;  %v3305_v23 = vsel %vm452_vm7, %v3291_v30, %v3292_v5  ;;  %v3096_v63 = vsel %vm452_vm7, %v3082_v38, %v9194_v33  ;;  %v2471_v5 = vld [vmem:[%s9099_s6 + $0x8] sm:$0xff]  ;;  %v8256_v30 = vmul.f32 0.6931472, %v6032_v13 }
 0x60a   :  { %v8213_v40 = vsel %vm780_vm13, %v7738_v55, %v3303_v29  ;;  %v8216_v22 = vsel %vm780_vm13, %v3272_v10, %v3305_v23  ;;  %v8220_v21 = vsel %vm560_vm9, %v7848_v8, %v3096_v63  ;;  %v3348_v43 = vpop.permute.xlu0 %3347  ;;  %v8222_v41 = vpop.permute.xlu1 %3163  ;;  %v3369_v10 = vrot.slane %v7879_v28, 4 }
 0x60b   :  { %v3367_v48 = vrot.slane %v3348_v43, 4  ;;  %v9191_v27 = vrot.slane %v8222_v41, 4  ;;  %v2474_v62 = vmul.f32 %v2471_v5, %v8232_v50 }
 0x60d   :  { %v3379_v55 = vsel %vm452_vm7, %v3366_v9, %v3367_v48  ;;  %v3381_v60 = vsel %vm452_vm7, %v3367_v48, %v3368_v49  ;;  %v3184_v8 = vsel %vm452_vm7, %v3173_v1, %v9191_v27  ;;  %v5241_v1 = vld [vmem:[%s9099_s6 + $0x20] sm:$0xff]  ;;  %v3632_v48 = vrot.slane %v7770_v4, 4 }
 0x60e   :  { %v8236_v58 = vsel %vm9359_vm14, %v7748_v35, %v3379_v55  ;;  %v8239_v61 = vsel %vm9360_vm0, %v3348_v43, %v3381_v60  ;;  %v8243_v46 = vsel %vm654_vm10, %v7858_v16, %v3184_v8  ;;  %v8245_v6 = vpop.permute.xlu0 %3537  ;;  %v8247_v14 = vpop.permute.xlu1 %3353  ;;  %v2470_v49 = vld [vmem:[%s9099_s6] sm:$0xff]  ;;  %vm9366_vm14 = vmmov %vm9361_vm4 }
 0x60f   :  { %v9184_v38 = vrot.slane %v8245_v6, 4  ;;  %v9188_v35 = vrot.slane %v8247_v14, 4  ;;  %vm9367_vm0 = vmmov %vm9363_vm2 }
 0x611   :  { %v3569_v16 = vsel %vm452_vm7, %v3556_v31, %v9184_v38  ;;  %v3383_v29 = vsel %vm452_vm7, %v3369_v10, %v9188_v35  ;;  %v2501_v31 = vmul.f32 %v5241_v1, %v8232_v50  ;;  %v2473_v10 = vmul.f32 %v2470_v49, %v8256_v30  ;;  %v5240_v1 = vld [vmem:[%s9099_s6 + $0x18] sm:$0xff] }
 0x612   :  { %v8266_v23 = vsel %vm9361_vm4, %v7758_v42, %v3569_v16  ;;  %v8270_v63 = vsel %vm9362_vm6, %v7879_v28, %v3383_v29  ;;  %v8272_v9 = vpop.permute.xlu0 %3613  ;;  %v8274_v43 = vpop.permute.xlu1 %3429  ;;  %v3439_v28 = vrot.slane %v7894_v54, 4  ;;  %v3496_v49 = vrot.slane %v7777_v36, 4 }
 0x613   :  { %v6034_v42 = vpop.eup %6033  ;;  %v9185_v55 = vrot.slane %v8272_v9, 4  ;;  %v9187_v60 = vrot.slane %v8274_v43, 4  ;;  %v2500_v17 = vmul.f32 %v5240_v1, %v8256_v30  ;;  %vm9368_vm4 = vcmask 412672  }
 0x614   :  { %v8295_v5 = vmul.f32 0.6931472, %v6034_v42  ;;  %v3559_v42 = vrot.slane %v7911_v0, 4  ;;  %vm9369_vm6 = vmmov %vm9368_vm4 }
 0x615   :  { %v3645_v8 = vsel %vm452_vm7, %v3632_v48, %v9185_v55  ;;  %v3450_v13 = vsel %vm452_vm7, %v3439_v28, %v9187_v60  ;;  %v2480_v28 = vsel %vm2476_vm12, %v2474_v62, 0.0  ;;  %v2477_v55 = vsel %vm2476_vm12, %v2473_v10, 0.0 }
 0x616   :  { %v8299_v16 = vsel %vm9363_vm2, %v7770_v4, %v3645_v8  ;;  %v8303_v29 = vsel %vm9364_vm8, %v7894_v54, %v3450_v13  ;;  %v8305_v38 = vpop.permute.xlu0 %3486  ;;  %v8307_v48 = vpop.permute.xlu1 %3543  ;;  %v2472_v54 = vld [vmem:[%s9099_s6 + $0x10] sm:$0xf]  ;;  %v2985_v10 = vrot.slane %v7926_v19, 4  ;;  %vm9371_vm2 = vcmask 998400   ;;  %vm9372_vm8 = vmmov %vm9366_vm14 }
 0x617   :  { %v9189_v4 = vrot.slane %v8305_v38, 4  ;;  %v9190_v8 = vrot.slane %v8307_v48, 4  ;;  %2481 = vadd.xlane.f32.xlu0 %v2480_v28 }
 0x619   :  { %v3507_v62 = vsel %vm452_vm7, %v3496_v49, %v9189_v4  ;;  %v3573_v13 = vsel %vm452_vm7, %v3559_v42, %v9190_v8  ;;  %v2506_v49 = vsel %vm2476_vm12, %v2501_v31, 0.0  ;;  %v2475_v4 = vmul.f32 %v2472_v54, %v8295_v5  ;;  %v5242_v31 = vld [vmem:[%s9099_s6 + $0x28] sm:$0xf] }
 0x61a   :  { %v3508_v28 = vsel %vm9365_vm3, %v7777_v36, %v3507_v62  ;;  %v8332_v26 = vsel %vm9366_vm14, %v7911_v0, %v3573_v13  ;;  %v8334_v60 = vpop.permute.xlu0 %3277  ;;  %v8336_v35 = vpop.permute.xlu1 %2972  ;;  %v3293_v42 = vrot.slane %v7785_v2, 4  ;;  %v5243_v0 = vld [vmem:[%s9099_s6 + $0x30] sm:$0xff]  ;;  %vm9373_vm3 = vmmov %vm9368_vm4  ;;  %vm9374_vm14 = vcmask 410624  }
 0x61b   :  { %3526 = vst [vmem:[#allocation2 + $0x1e0] sm:$0x77] %v3508_v28  ;;  %v9192_v1 = vrot.slane %v8334_v60, 4  ;;  %v9193_v36 = vrot.slane %v8336_v35, 4  ;;  %2507 = vadd.xlane.f32.xlu0 %v2506_v49  ;;  %v2484_v8 = vsel %vm2483_vm11, %v2475_v4, 0.0  ;;  %v2525_v27 = vmul.f32 %v5243_v0, %v8256_v30 }
 0x61c   :  { %2478 = vadd.xlane.f32.xlu1 %v2477_v55  ;;  %v2502_v4 = vmul.f32 %v5242_v31, %v8295_v5 }
 0x61d   :  { %v3307_v54 = vsel %vm452_vm7, %v3293_v42, %v9192_v1  ;;  %v3000_v62 = vsel %vm452_vm7, %v2985_v10, %v9193_v36  ;;  %v5246_v42 = vld [vmem:[%s9099_s6 + $0x48] sm:$0xff]  ;;  %v3635_v10 = vrot.slane %v7792_v20, 4 }
 0x61e   :  { %v8358_v13 = vsel %vm780_vm13, %v7785_v2, %v3307_v54  ;;  %v3001_v28 = vsel %vm454_vm15, %v7926_v19, %v3000_v62  ;;  %v8362_v55 = vpop.permute.xlu0 %3619  ;;  %v8364_v49 = vpop.permute.xlu1 %3623  ;;  %v5244_v2 = vld [vmem:[%s9099_s6 + $0x38] sm:$0xff]  ;;  %v2503_v54 = vsel %vm2476_vm12, %v2500_v17, 0.0  ;;  %v2550_v62 = vmul.f32 %v5246_v42, %v8256_v30 }
 0x61f   :  { %3025 = vst [vmem:[#allocation2 + $0x64] sm:$0x33] %v3001_v28  ;;  %v3636_v19 = vrot.slane %v8362_v55, 4  ;;  %2485 = vadd.xlane.f32.xlu0 %v2484_v8  ;;  %v2526_v1 = vmul.f32 %v5244_v2, %v8232_v50  ;;  %v2528_v17 = vsel %vm2476_vm12, %v2525_v27, 0.0  ;;  %v3085_v8 = vrot.slane %v7941_v57, 4 }
 0x620   :  { %2504 = vadd.xlane.f32.xlu1 %v2503_v54  ;;  %v2509_v30 = vsel %vm2483_vm11, %v2502_v4, 0.0  ;;  %v2553_v2 = vsel %vm2476_vm12, %v2550_v62, 0.0 }
 0x621   :  { %v3649_v0 = vsel %vm452_vm7, %v3635_v10, %v3636_v19  ;;  %v2531_v54 = vsel %vm2476_vm12, %v2526_v1, 0.0 }
 0x622   :  { %v8385_v36 = vsel %vm9367_vm0, %v7792_v20, %v3649_v0  ;;  %v2969_v28 = vpop.permute.xlu0 %2968  ;;  %v8387_v33 = vpop.permute.xlu1 %3072  ;;  %v5245_v20 = vld [vmem:[%s9099_s6 + $0x40] sm:$0xf]  ;;  %v3372_v0 = vrot.slane %v7956_v59, 4  ;;  %vm9378_vm0 = vmmov %vm9373_vm3 }
 0x623   :  { %v2984_v31 = vrot.slane %v2969_v28, 4  ;;  %3024 = vst.msk [vmem:[#allocation2 + $0x60] sm:$0xf] %vm9368_vm4, %v2969_v28  ;;  %v3086_v10 = vrot.slane %v8387_v33, 4  ;;  %2529 = vadd.xlane.f32.xlu0 %v2528_v17  ;;  %vm9384_vm4 = vmmov %vm9371_vm2 }
 0x624   :  { %2510 = vadd.xlane.f32.xlu1 %v2509_v30 }
 0x625   :  { %v2998_v42 = vsel %vm452_vm7, %v2983_v12, %v2984_v31  ;;  %v3100_v27 = vsel %vm452_vm7, %v3085_v8, %v3086_v10  ;;  %v2527_v31 = vmul.f32 %v5245_v20, %v8295_v5 }
 0x626   :  { %v8408_v4 = vsel %vm454_vm15, %v8180_v24, %v2998_v42  ;;  %v3101_v28 = vsel %vm560_vm9, %v7941_v57, %v3100_v27  ;;  %v3069_v17 = vpop.permute.xlu0 %3068  ;;  %v8412_v30 = vpop.permute.xlu1 %3359  ;;  %v3759_v12 = vld [vmem:[#allocation2 + $0x64] sm:$0xff]  ;;  %v9370_v57 = vrot.slane %v8199_v32, 4  ;;  %v5309_v27 = vcombine.high %v7981_v7, %v8220_v21 }
 0x627   :  { %3125 = vst [vmem:[#allocation2 + $0xa0] sm:$0x11] %v3101_v28  ;;  %v3084_v8 = vrot.slane %v3069_v17, 4  ;;  %3124 = vst.msk [vmem:[#allocation2 + $0x9c] sm:$0xf] %vm9369_vm6, %v3069_v17  ;;  %v3373_v1 = vrot.slane %v8412_v30, 4  ;;  %2554 = vadd.xlane.f32.xlu0 %v2553_v2  ;;  %v5303_v62 = vcombine.low %v8197_v37, %v3759_v12  ;;  %v5304_v24 = vcombine.high %v8197_v37, %v3759_v12 }
 0x628   :  { %2532 = vadd.xlane.f32.xlu1 %v2531_v54  ;;  %v2534_v17 = vsel %vm2483_vm11, %v2527_v31, 0.0  ;;  %v3562_v12 = vrot.slane %v7966_v34, 4  ;;  %vm9385_vm6 = vmmov %vm9378_vm0 }
 0x629   :  { %v3098_v42 = vsel %vm452_vm7, %v9370_v57, %v3084_v8  ;;  %v3387_v20 = vsel %vm452_vm7, %v3372_v0, %v3373_v1  ;;  %4340 = vmatprep.subr.bf16.mxu0 %v5304_v24  ;;  %v3296_v0 = vrot.slane %v7798_v11, 4 }
 0x62a   :  { %v8429_v2 = vsel %vm560_vm9, %v8199_v32, %v3098_v42  ;;  %v3388_v37 = vsel %vm9371_vm2, %v7956_v59, %v3387_v20  ;;  %v8433_v54 = vpop.permute.xlu0 %3283  ;;  %4341 = vmatpush1.bf16.msra.mxu0 %v5303_v62  ;;  %v8435_v28 = vpop.permute.xlu1 %3549  ;;  %v5308_v59 = vcombine.low %v7981_v7, %v8220_v21  ;;  %vm9388_vm2 = vmmov %vm9378_vm0 }
 0x62b   :  { %3412 = vst [vmem:[#allocation2 + $0x17c] sm:$0x11] %v3388_v37  ;;  %v3297_v8 = vrot.slane %v8433_v54, 4  ;;  %v3563_v32 = vrot.slane %v8435_v28, 4  ;;  %4342 = vmatprep.subr.bf16.mxu0 %v5309_v27 }
 0x62c   :  { %2535 = vadd.xlane.f32.xlu1 %v2534_v17 }
 0x62d   :  { %v3311_v62 = vsel %vm452_vm7, %v3296_v0, %v3297_v8  ;;  %v3577_v31 = vsel %vm452_vm7, %v3562_v12, %v3563_v32  ;;  %v9376_v0 = vrot.slane %v8336_v35, 4 }
 0x62e   :  { %v3312_v24 = vsel %vm780_vm13, %v7798_v11, %v3311_v62  ;;  %v3578_v57 = vsel %vm9372_vm8, %v7966_v34, %v3577_v31  ;;  %v3166_v42 = vpop.permute.xlu0 %3165  ;;  %4343 = vmatpush1.bf16.msra.mxu0 %v5308_v59  ;;  %v2975_v20 = vpop.permute.xlu1 %2974  ;;  %v3768_v27 = vld [vmem:[#allocation2 + $0xa0] sm:$0xff]  ;;  %v9375_v11 = vrot.slane %v8222_v41, 4  ;;  %vm9390_vm8 = vcmask 965632  }
 0x62f   :  { %3336 = vst [vmem:[#allocation2 + $0x140] sm:$0x33] %v3312_v24  ;;  %3602 = vst [vmem:[#allocation2 + $0x21c] sm:$0x33] %v3578_v57  ;;  %v3175_v7 = vrot.slane %v3166_v42, 4  ;;  %v2987_v21 = vrot.slane %v2975_v20, 4  ;;  %v5313_v37 = vcombine.low %v3768_v27, %v8007_v45  ;;  %v5314_v17 = vcombine.high %v3768_v27, %v8007_v45 }
 0x630   :  { %3205 = vst.msk [vmem:[#allocation2 + $0xd8] sm:$0xf] %vm9373_vm3, %v3166_v42  ;;  %v9377_v59 = vld [vmem:[#allocation16_spill] sm:$0xff]  ;;  %vm9391_vm3 = vcmask 982016  }
 0x631   :  { %3027 = vst.msk [vmem:[#allocation2 + $0x74] sm:$0x3] %vm9374_vm14, %v2975_v20  ;;  %v3186_v34 = vsel %vm452_vm7, %v9375_v11, %v3175_v7  ;;  %v3002_v12 = vsel %vm452_vm7, %v9376_v0, %v2987_v21  ;;  %4344 = vmatprep.subr.bf16.mxu0 %v5314_v17  ;;  %v5319_v62 = vcombine.high %v8243_v46, %v9377_v59  ;;  %v3783_v42 = vld [vmem:[#allocation2 + $0x104] sm:$0xff]  ;;  %v9379_v7 = vrot.slane %v8334_v60, 4  ;;  %v9380_v21 = vld [vmem:[#allocation14_spill] sm:$0xff] }
 0x632   :  { %v8468_v31 = vsel %vm654_vm10, %v8222_v41, %v3186_v34  ;;  %v3003_v24 = vsel %vm454_vm15, %v8336_v35, %v3002_v12  ;;  %v3280_v45 = vpop.permute.xlu0 %3279  ;;  %4345 = vmatpush1.bf16.msra.mxu0 %v5313_v37  ;;  %v8472_v57 = vpop.permute.xlu1 %3681  ;;  %v5318_v27 = vcombine.low %v8243_v46, %v9377_v59  ;;  %v5324_v17 = vcombine.high %v9380_v21, %v3783_v42  ;;  %vm9381_vm15 = vmmov %vm9378_vm0 }
 0x633   :  { %3026 = vst [vmem:[#allocation2 + $0x6c] sm:$0x33] %v3003_v24  ;;  %v3295_v20 = vrot.slane %v3280_v45, 4  ;;  %3335 = vst.msk [vmem:[#allocation2 + $0x13c] sm:$0xf] %vm9378_vm0, %v3280_v45  ;;  %4346 = vmatprep.subr.bf16.mxu0 %v5319_v62  ;;  %vm9382_vm10 = vcmask 409600   ;;  %v5323_v46 = vcombine.low %v9380_v21, %v3783_v42  ;;  %v5329_v62 = vcombine.high %v8213_v40, %v8358_v13 }
 0x634   :  { %v9383_v12 = vrot.slane %v8247_v14, 4  ;;  %vm9392_vm14 = vcmask 411648   ;;  %vm9394_vm0 = vcmask 957440  }
 0x635   :  { %v3309_v41 = vsel %vm452_vm7, %v9379_v7, %v3295_v20 }
 0x636   :  { %v8483_v35 = vsel %vm780_vm13, %v8334_v60, %v3309_v41  ;;  %v3356_v37 = vpop.permute.xlu0 %3355  ;;  %4347 = vmatpush1.bf16.msra.mxu0 %v5318_v27  ;;  %v3075_v11 = vpop.permute.xlu1 %3074  ;;  %v3792_v7 = vld [vmem:[#allocation2 + $0x140] sm:$0xff] }
 0x637   :  { %v3371_v34 = vrot.slane %v3356_v37, 4  ;;  %3411 = vst.msk [vmem:[#allocation2 + $0x178] sm:$0xf] %vm9381_vm15, %v3356_v37  ;;  %v3087_v0 = vrot.slane %v3075_v11, 4  ;;  %4348 = vmatprep.subr.bf16.mxu0 %v5324_v17  ;;  %v5334_v37 = vcombine.high %v3792_v7, %v8236_v58  ;;  %vm9395_vm15 = vmmov %vm9391_vm3 }
 0x638   :  { %3127 = vst.msk [vmem:[#allocation2 + $0xb0] sm:$0x1] %vm9382_vm10, %v3075_v11  ;;  %v5311_v11 = vcombine.high %v8100_v44, %v8429_v2  ;;  %vm9396_vm10 = vcmask 410624  }
 0x639   :  { %v3385_v59 = vsel %vm452_vm7, %v9383_v12, %v3371_v34  ;;  %v3102_v60 = vsel %vm452_vm7, %v3086_v10, %v3087_v0 }
 0x63a   :  { %v8498_v24 = vsel %vm9384_vm4, %v8247_v14, %v3385_v59  ;;  %v3103_v45 = vsel %vm560_vm9, %v8387_v33, %v3102_v60  ;;  %v3432_v20 = vpop.permute.xlu0 %3431  ;;  %4349 = vmatpush1.bf16.msra.mxu0 %v5323_v46  ;;  %v8502_v42 = vpop.permute.xlu1 %3687  ;;  %v3760_v27 = vld [vmem:[#allocation2 + $0x6c] sm:$0xff]  ;;  %v5328_v14 = vcombine.low %v8213_v40, %v8358_v13  ;;  %v9386_v33 = vrot.slane %v8274_v43, 4  ;;  %v3801_v40 = vld [vmem:[#allocation2 + $0x17c] sm:$0xff]  ;;  %vm9397_vm4 = vmmov %vm9394_vm0 }
 0x63b   :  { %3126 = vst [vmem:[#allocation2 + $0xa8] sm:$0x11] %v3103_v45  ;;  %v3441_v41 = vrot.slane %v3432_v20, 4  ;;  %3471 = vst.msk [vmem:[#allocation2 + $0x1b4] sm:$0xf] %vm9385_vm6, %v3432_v20  ;;  %4350 = vmatprep.subr.bf16.mxu0 %v5329_v62  ;;  %v5305_v10 = vcombine.low %v8408_v4, %v3760_v27  ;;  %v5306_v21 = vcombine.high %v8408_v4, %v3760_v27  ;;  %vm9387_vm9 = vcmask 990208  }
 0x63c   :  { %v3638_v13 = vrot.slane %v8364_v49, 4  ;;  %v5333_v59 = vcombine.low %v3792_v7, %v8236_v58  ;;  %v9389_v62 = vrot.slane %v7983_v52, 4  ;;  %v5339_v20 = vcombine.high %v8270_v63, %v3801_v40  ;;  %vm9398_vm6 = vmmov %vm9388_vm2 }
 0x63d   :  { %v3452_v17 = vsel %vm452_vm7, %v9386_v33, %v3441_v41  ;;  %4442 = vmatprep.subr.bf16.mxu1 %v5306_v21  ;;  %v3699_v27 = vrot.slane %v8472_v57, 4  ;;  %v3778_v33 = vld [vmem:[#allocation2 + $0xe4] sm:$0xff] }
 0x63e   :  { %v8517_v34 = vsel %vm9387_vm9, %v8274_v43, %v3452_v17  ;;  %v8519_v0 = vpop.permute.xlu0 %3625  ;;  %4351 = vmatpush1.bf16.msra.mxu0 %v5328_v14  ;;  %4443 = vmatpush1.bf16.msra.mxu1 %v5305_v10  ;;  %v3477_v4 = vpop.permute.xlu1 %3476  ;;  %v5310_v43 = vcombine.low %v8100_v44, %v8429_v2  ;;  %vm9399_vm9 = vcmask 409600  }
 0x63f   :  { %v3639_v46 = vrot.slane %v8519_v0, 4  ;;  %v3492_v12 = vrot.slane %v3477_v4, 4  ;;  %3522 = vst.msk [vmem:[#allocation2 + $0x1c8] sm:$0xf] %vm9388_vm2, %v3477_v4  ;;  %4352 = vmatprep.subr.bf16.mxu0 %v5334_v37  ;;  %4444 = vmatprep.subr.bf16.mxu1 %v5311_v11  ;;  %v9393_v37 = vrot.slane %v8305_v38, 4  ;;  %v5344_v4 = vcombine.high %v8033_v15, %v8303_v29 }
 0x640   :  { %vm9403_vm2 = vcmask 998400  }
 0x641   :  { %v3653_v60 = vsel %vm452_vm7, %v3638_v13, %v3639_v46  ;;  %v3501_v45 = vsel %vm452_vm7, %v9389_v62, %v3492_v12  ;;  %v5321_v13 = vcombine.high %v8468_v31, %v3778_v33 }
 0x642   :  { %v3654_v41 = vsel %vm9390_vm8, %v8364_v49, %v3653_v60  ;;  %v8539_v58 = vsel %vm9391_vm3, %v7983_v52, %v3501_v45  ;;  %v8541_v44 = vpop.permute.xlu0 %3683  ;;  %4353 = vmatpush1.bf16.msra.mxu0 %v5333_v59  ;;  %4445 = vmatpush1.bf16.msra.mxu1 %v5310_v43  ;;  %v3489_v2 = vpop.permute.xlu1 %3488  ;;  %v3769_v7 = vld [vmem:[#allocation2 + $0xa8] sm:$0xff]  ;;  %v5338_v52 = vcombine.low %v8270_v63, %v3801_v40  ;;  %v3702_v43 = vrot.slane %v8502_v42, 4 }
 0x643   :  { %3678 = vst [vmem:[#allocation2 + $0x258] sm:$0x11] %v3654_v41  ;;  %v3700_v10 = vrot.slane %v8541_v44, 4  ;;  %v3498_v21 = vrot.slane %v3489_v2, 4  ;;  %3528 = vst.msk [vmem:[#allocation2 + $0x1f0] sm:$0x7] %vm9392_vm14, %v3489_v2  ;;  %4354 = vmatprep.subr.bf16.mxu0 %v5339_v20  ;;  %v5315_v14 = vcombine.low %v3769_v7, %v8121_v53  ;;  %v5316_v49 = vcombine.high %v3769_v7, %v8121_v53 }
 0x644   :  { %v3784_v59 = vld [vmem:[#allocation2 + $0x10c] sm:$0xff]  ;;  %vm9405_vm8 = vcmask 412675   ;;  %vm9409_vm14 = vcmask 973824  }
 0x645   :  { %v3708_v17 = vsel %vm452_vm7, %v3699_v27, %v3700_v10  ;;  %v3509_v11 = vsel %vm452_vm7, %v9393_v37, %v3498_v21  ;;  %4446 = vmatprep.subr.bf16.mxu1 %v5316_v49  ;;  %v5326_v27 = vcombine.high %v8054_v51, %v3784_v59 }
 0x646   :  { %v3709_v53 = vsel %vm9394_vm0, %v8472_v57, %v3708_v17  ;;  %v3510_v63 = vsel %vm9395_vm15, %v8305_v38, %v3509_v11  ;;  %v8561_v40 = vpop.permute.xlu0 %3689  ;;  %4355 = vmatpush1.bf16.msra.mxu0 %v5338_v52  ;;  %4447 = vmatpush1.bf16.msra.mxu1 %v5315_v14  ;;  %v3286_v12 = vpop.permute.xlu1 %3285  ;;  %v5343_v38 = vcombine.low %v8033_v15, %v8303_v29  ;;  %vm9410_vm0 = vmmov %vm9409_vm14 }
 0x647   :  { %3729 = vst [vmem:[#allocation2 + $0x258] sm:$0xee] %v3709_v53  ;;  %3527 = vst [vmem:[#allocation2 + $0x1e8] sm:$0x77] %v3510_v63  ;;  %v3703_v60 = vrot.slane %v8561_v40, 4  ;;  %v3298_v62 = vrot.slane %v3286_v12, 4  ;;  %4356 = vmatprep.subr.bf16.mxu0 %v5344_v4  ;;  %4448 = vmatprep.subr.bf16.mxu1 %v5321_v13  ;;  %v5320_v57 = vcombine.low %v8468_v31, %v3778_v33 }
 0x648   :  { %3338 = vst.msk [vmem:[#allocation2 + $0x150] sm:$0x3] %vm9396_vm10, %v3286_v12  ;;  %v3816_v31 = vld [vmem:[#allocation2 + $0x1e0] sm:$0xff]  ;;  %v5331_v33 = vcombine.high %v8216_v22, %v8483_v35  ;;  %v9404_v11 = vcombine.low %v8003_v47, %v8029_v3  ;;  %v9408_v63 = vrot.slane %v8245_v6, 4 }
 0x649   :  { %v3712_v45 = vsel %vm452_vm7, %v3702_v43, %v3703_v60  ;;  %v3313_v20 = vsel %vm452_vm7, %v3297_v8, %v3298_v62  ;;  %v9400_v8 = vcombine.high %v8003_v47, %v8029_v3  ;;  %v5354_v52 = vcombine.high %v3816_v31, %v8266_v23 }
 0x64a   :  { %v8578_v41 = vsel %vm9397_vm4, %v8502_v42, %v3712_v45  ;;  %v3314_v2 = vsel %vm780_vm13, %v8433_v54, %v3313_v20  ;;  %v3483_v15 = vpop.permute.xlu0 %3482  ;;  %4357 = vmatpush1.bf16.msra.mxu0 %v5343_v38  ;;  %4449 = vmatpush1.bf16.msra.mxu1 %v5320_v57  ;;  %v3362_v29 = vpop.permute.xlu1 %3361  ;;  %v5325_v42 = vcombine.low %v8054_v51, %v3784_v59  ;;  %v9401_v54 = vrot.slane %v8009_v25, 4  ;;  %vm9402_vm13 = vmmov %vm9391_vm3 }
 0x64b   :  { %3337 = vst [vmem:[#allocation2 + $0x148] sm:$0x33] %v3314_v2  ;;  %v3495_v7 = vrot.slane %v3483_v15, 4  ;;  %3525 = vst.msk [vmem:[#allocation2 + $0x1dc] sm:$0xf] %vm9398_vm6, %v3483_v15  ;;  %v3374_v21 = vrot.slane %v3362_v29, 4  ;;  %4358 = vmatprep.subr.bf16.mxu0 %v9400_v8  ;;  %4450 = vmatprep.subr.bf16.mxu1 %v5326_v27 }
 0x64c   :  { %3414 = vst.msk [vmem:[#allocation2 + $0x18c] sm:$0x1] %vm9399_vm9, %v3362_v29  ;;  %vm9406_vm3 = vmmov %vm9398_vm6  ;;  %v9407_v47 = vrot.slane %v8081_v56, 4  ;;  %v9413_v20 = vrot.slane %v8307_v48, 4  ;;  %v9414_v2 = vrot.slane %v8272_v9, 4  ;;  %v5364_v29 = vcombine.high %v8299_v16, %v8385_v36 }
 0x64d   :  { %v3505_v14 = vsel %vm452_vm7, %v9401_v54, %v3495_v7  ;;  %v3389_v49 = vsel %vm452_vm7, %v3373_v1, %v3374_v21  ;;  %v3825_v1 = vld [vmem:[#allocation2 + $0x21c] sm:$0xff]  ;;  %vm9411_vm15 = vmmov %vm9406_vm3  ;;  %vm9416_vm6 = vcmask 965632   ;;  %vm9417_vm9 = vcmask 412674  }
 0x64e   :  { %v8599_v17 = vsel %vm9402_vm13, %v8009_v25, %v3505_v14  ;;  %v3390_v51 = vsel %vm9403_vm2, %v8412_v30, %v3389_v49  ;;  %v3534_v37 = vpop.permute.xlu0 %3533  ;;  %4359 = vmatpush1.bf16.msra.mxu0 %v9404_v11  ;;  %4451 = vmatpush1.bf16.msra.mxu1 %v5325_v42  ;;  %v3540_v4 = vpop.permute.xlu1 %3539  ;;  %v5353_v25 = vcombine.low %v3816_v31, %v8266_v23  ;;  %vm9412_vm10 = vmmov %vm9406_vm3  ;;  %v3834_v31 = vld [vmem:[#allocation2 + $0x258] sm:$0xff]  ;;  %v9418_v49 = vrot.slane %v7943_v39, 4 }
 0x64f   :  { %3413 = vst [vmem:[#allocation2 + $0x184] sm:$0x11] %v3390_v51  ;;  %v3555_v13 = vrot.slane %v3534_v37, 4  ;;  %3595 = vst.msk [vmem:[#allocation2 + $0x1f0] sm:$0x8] %vm9405_vm8, %v3534_v37  ;;  %v3558_v53 = vrot.slane %v3540_v4, 4  ;;  %4360 = vmatprep.subr.bf16.mxu0 %v5354_v52  ;;  %4452 = vmatprep.subr.bf16.mxu1 %v5331_v33  ;;  %v5330_v30 = vcombine.low %v8216_v22, %v8483_v35 }
 0x650   :  { %3598 = vst.msk [vmem:[#allocation2 + $0x204] sm:$0xf] %vm9406_vm3, %v3540_v4  ;;  %v5359_v59 = vcombine.high %v8332_v26, %v3825_v1  ;;  %vm9415_vm4 = vmmov %vm9410_vm0  ;;  %v5369_v52 = vcombine.high %v3834_v31, %v8578_v41  ;;  %v5346_v33 = vcombine.high %v8165_v18, %v8517_v34  ;;  %vm9421_vm8 = vcmask 410624  }
 0x651   :  { %v3567_v3 = vsel %vm452_vm7, %v9407_v47, %v3555_v13  ;;  %v3571_v12 = vsel %vm452_vm7, %v9408_v63, %v3558_v53  ;;  %vm9419_vm13 = vmmov %vm9416_vm6  ;;  %v5368_v4 = vcombine.low %v3834_v31, %v8578_v41  ;;  %v5351_v53 = vcombine.high %v8539_v58, %v8599_v17 }
 0x652   :  { %v3568_v43 = vsel %vm9409_vm14, %v8081_v56, %v3567_v3  ;;  %v8622_v62 = vsel %vm9410_vm0, %v8245_v6, %v3571_v12  ;;  %v3546_v23 = vpop.permute.xlu0 %3545  ;;  %4361 = vmatpush1.bf16.msra.mxu0 %v5353_v25  ;;  %4453 = vmatpush1.bf16.msra.mxu1 %v5330_v30  ;;  %v3616_v22 = vpop.permute.xlu1 %3615  ;;  %v3793_v35 = vld [vmem:[#allocation2 + $0x148] sm:$0xff]  ;;  %v5358_v6 = vcombine.low %v8332_v26, %v3825_v1  ;;  %vm9420_vm2 = vmmov %vm9406_vm3 }
 0x653   :  { %3594 = vst [vmem:[#allocation2 + $0x1e8] sm:$0x88] %v3568_v43  ;;  %v3561_v38 = vrot.slane %v3546_v23, 4  ;;  %3601 = vst.msk [vmem:[#allocation2 + $0x218] sm:$0xf] %vm9411_vm15, %v3546_v23  ;;  %v3634_v57 = vrot.slane %v3616_v22, 4  ;;  %4362 = vmatprep.subr.bf16.mxu0 %v5359_v59  ;;  %v5335_v45 = vcombine.low %v3793_v35, %v8239_v61  ;;  %v5336_v56 = vcombine.high %v3793_v35, %v8239_v61 }
 0x654   :  { %3674 = vst.msk [vmem:[#allocation2 + $0x240] sm:$0xf] %vm9412_vm10, %v3616_v22  ;;  %v8677_v25 = vld [vmem:[%s9096_s3] ss:$12 sps:$4 sm:$0xff]   ;;  %vm9422_vm3 = vmmov %vm9416_vm6  ;;  %vm9425_vm15 = vcmask 957440  }
 0x655   :  { %v3575_v27 = vsel %vm452_vm7, %v9413_v20, %v3561_v38  ;;  %v3647_v15 = vsel %vm452_vm7, %v9414_v2, %v3634_v57  ;;  %4454 = vmatprep.subr.bf16.mxu1 %v5336_v56  ;;  %vm9423_vm14 = vmmov %vm9410_vm0  ;;  %vm9424_vm0 = vcmask 409600   ;;  %v6010_v20 = vld [vmem:[#allocation2 + $0x150] ss:$20 sps:$4 sm:$0xff]  }
 0x656   :  { %v8639_v7 = vsel %vm9415_vm4, %v8307_v48, %v3575_v27  ;;  %v8643_v26 = vsel %vm9416_vm6, %v8272_v9, %v3647_v15  ;;  %v3610_v61 = vpop.permute.xlu0 %3609  ;;  %4363 = vmatpush1.bf16.msra.mxu0 %v5358_v6  ;;  %4455 = vmatpush1.bf16.msra.mxu1 %v5335_v45  ;;  %v3694_v21 = vpop.permute.xlu1 %3693  ;;  %v3802_v8 = vld [vmem:[#allocation2 + $0x184] sm:$0xff]  ;;  %v5363_v48 = vcombine.low %v8299_v16, %v8385_v36  ;;  %v3742_v36 = vld [vmem:[%s9096_s3 + $0x18] sm:$0x33]  ;;  %vm9426_vm10 = vmmov %vm9422_vm3  ;;  %vm9427_vm4 = vcmask 412673  }
 0x657   :  { %v3631_v42 = vrot.slane %v3610_v61, 4  ;;  %3671 = vst.msk [vmem:[#allocation2 + $0x22c] sm:$0xc] %vm9417_vm9, %v3610_v61  ;;  %4364 = vmatprep.subr.bf16.mxu0 %v5364_v29  ;;  %v5340_v54 = vcombine.low %v8498_v24, %v3802_v8  ;;  %v5341_v14 = vcombine.high %v8498_v24, %v3802_v8  ;;  %v3705_v47 = vrot.slane %v3694_v21, 4  ;;  %vm9428_vm6 = vmmov %vm9420_vm2 }
 0x658   :  { %v8707_v56 = vcombine.low %v3742_v36, %v3742_v36  ;;  %vm9429_vm9 = vmmov %vm9425_vm15  ;;  %v9432_v61 = vmov 0  }
 0x659   :  { %v3643_v9 = vsel %vm452_vm7, %v9418_v49, %v3631_v42  ;;  %4456 = vmatprep.subr.bf16.mxu1 %v5341_v14  ;;  %v6012_v14 = vld [vmem:[#allocation2 + $0x10] ss:$20 sps:$4 sm:$0xff]  }
 0x65a   :  { %v3644_v51 = vsel %vm9419_vm13, %v7943_v39, %v3643_v9  ;;  %v3622_v37 = vpop.permute.xlu0 %3621  ;;  %4365 = vmatpush1.bf16.msra.mxu0 %v5363_v48  ;;  %4457 = vmatpush1.bf16.msra.mxu1 %v5340_v54  ;;  %v3552_v24 = vpop.permute.xlu1 %3551  ;;  %v5345_v39 = vcombine.low %v8165_v18, %v8517_v34  ;;  %v3817_v30 = vld [vmem:[#allocation2 + $0x1e8] sm:$0xff]  ;;  %vm9430_vm13 = vmmov %vm9429_vm9 }
 0x65b   :  { %3670 = vst [vmem:[#allocation2 + $0x224] sm:$0xcc] %v3644_v51  ;;  %v3637_v11 = vrot.slane %v3622_v37, 4  ;;  %3677 = vst.msk [vmem:[#allocation2 + $0x254] sm:$0xf] %vm9420_vm2, %v3622_v37  ;;  %v3564_v16 = vrot.slane %v3552_v24, 4  ;;  %4366 = vmatprep.subr.bf16.mxu0 %v5369_v52  ;;  %4458 = vmatprep.subr.bf16.mxu1 %v5346_v33  ;;  %v5356_v59 = vcombine.high %v3817_v30, %v8622_v62 }
 0x65c   :  { %3604 = vst.msk [vmem:[#allocation2 + $0x22c] sm:$0x3] %vm9421_vm8, %v3552_v24  ;;  %v5355_v57 = vcombine.low %v3817_v30, %v8622_v62  ;;  %vm9431_vm8 = vmmov %vm9429_vm9  ;;  %v6013_v48 = vld [vmem:[#allocation2 + $0x178] ss:$20 sps:$4 sm:$0xff]   ;;  %v6015_v51 = vld [vmem:[#allocation2 + $0x1a0] ss:$20 sps:$4 sm:$0xff]  }
 0x65d   :  { %v3651_v1 = vsel %vm452_vm7, %v3636_v19, %v3637_v11  ;;  %v3579_v13 = vsel %vm452_vm7, %v3563_v32, %v3564_v16  ;;  %v8683_v32 = vcombine.high %v3742_v36, %v3742_v36  ;;  %v8736_v52 = vld [vmem:[%s9096_s3 + $0x20] ss:$0 sps:$4 sm:$0x33]   ;;  %v6019_v11 = vld [vmem:[#allocation2 + $0x1c8] ss:$20 sps:$4 sm:$0xff]  }
 0x65e   :  { %v3652_v41 = vsel %vm9422_vm3, %v8362_v55, %v3651_v1  ;;  %v3580_v18 = vsel %vm9423_vm14, %v8435_v28, %v3579_v13  ;;  %v3696_v34 = vpop.permute.xlu0 %3695  ;;  %4367 = vmatpush1.bf16.msra.mxu0 %v5368_v4  ;;  %4459 = vmatpush1.bf16.msra.mxu1 %v5345_v39  ;;  %v3628_v19 = vpop.permute.xlu1 %3627  ;;  %v5350_v55 = vcombine.low %v8539_v58, %v8599_v17  ;;  %vm9433_vm3 = vcmask 64512   ;;  %v6018_v24 = vld [vmem:[#allocation2 + $0x60] ss:$20 sps:$4 sm:$0xff]   ;;  %v6042_v16 = vld [vmem:[%s9096_s3 + $0x4] ss:$12 sps:$4 sm:$0xff]  }
 0x65f   :  { %3603 = vst [vmem:[#allocation2 + $0x224] sm:$0x33] %v3580_v18  ;;  %v3706_v3 = vrot.slane %v3696_v34, 4  ;;  %v3640_v63 = vrot.slane %v3628_v19, 4  ;;  %3680 = vst.msk [vmem:[#allocation2 + $0x268] sm:$0x1] %vm9424_vm0, %v3628_v19  ;;  %4460 = vmatprep.subr.bf16.mxu1 %v5351_v53 }
 0x660   :  { %vm9434_vm14 = vmmov %vm9433_vm3  ;;  %v6020_v36 = vld [vmem:[#allocation2 + $0x88] ss:$20 sps:$4 sm:$0xff]   ;;  %v6021_v4 = vld [vmem:[#allocation2 + $0x1f0] ss:$20 sps:$4 sm:$0xff]  }
 0x661   :  { %v3716_v12 = vsel %vm452_vm7, %v3705_v47, %v3706_v3  ;;  %v3655_v28 = vsel %vm452_vm7, %v3639_v46, %v3640_v63  ;;  %4369 = vmatmul.mubr.bf16.vlgmr.msra.gmra.mrb[44].mxu0 %v8677_v25  ;;  %v6022_v39 = vld [vmem:[#allocation2 + $0xb0] ss:$20 sps:$4 sm:$0xff]   ;;  %v4668_v53 = vld [vmem:[%s9098_s5 + $0x88] sm:$0xff]  ;;  %vm9435_vm0 = vmmov %vm9433_vm3 }
 0x662   :  { %v3717_v43 = vsel %vm9425_vm15, %v3694_v21, %v3716_v12  ;;  %v3656_v23 = vsel %vm9426_vm10, %v8519_v0, %v3655_v28  ;;  %v3686_v22 = vpop.permute.xlu0 %3685  ;;  %4461 = vmatpush1.bf16.msra.mxu1 %v5350_v55  ;;  %v3692_v35 = vpop.permute.xlu1 %3691  ;;  %4378 = vmatprep.mubr.bf16.mxu0 %v8683_v32  ;;  %v5365_v21 = vcombine.low %v8643_v26, %v3652_v41  ;;  %v4667_v13 = vld [vmem:[%s9098_s5 + $0x80] sm:$0xff]  ;;  %v4684_v28 = vld [vmem:[%s9098_s5 + $0x108] sm:$0xff]  ;;  %vm9436_vm15 = vmmov %vm9435_vm0 }
 0x663   :  { %3679 = vst [vmem:[#allocation2 + $0x260] sm:$0x11] %v3656_v23  ;;  %v3701_v58 = vrot.slane %v3686_v22, 4  ;;  %3731 = vst.msk [vmem:[#allocation2 + $0x268] sm:$0xe] %vm9427_vm4, %v3686_v22  ;;  %v3704_v17 = vrot.slane %v3692_v35, 4  ;;  %4462 = vmatprep.subr.bf16.mxu1 %v5356_v59  ;;  %v5374_v46 = vcombine.high %v3717_v43, %v3717_v43  ;;  %v5373_v38 = vcombine.low %v3717_v43, %v3717_v43 }
 0x664   :  { %3734 = vst.msk [vmem:[#allocation2 + $0x27c] sm:$0xf] %vm9428_vm6, %v3692_v35  ;;  %v6023_v1 = vld [vmem:[#allocation2 + $0x218] ss:$20 sps:$4 sm:$0xff]   ;;  %v5801_v18 = vpack.c.bf16 %v4668_v53, %v4667_v13  ;;  %v6025_v19 = vld [vmem:[#allocation2 + $0x240] ss:$20 sps:$4 sm:$0xff]   ;;  %vm9437_vm10 = vmmov %vm9435_vm0 }
 0x665   :  { %v3710_v0 = vsel %vm452_vm7, %v3700_v10, %v3701_v58  ;;  %v3714_v45 = vsel %vm452_vm7, %v3703_v60, %v3704_v17  ;;  %5378 = vmatprep.subr.msk.bf16.mxu0 %vm452_vm7, %v5374_v46  ;;  %v4322_v6 = vsel %vm452_vm7, %v5373_v38, 0  ;;  %v6026_v30 = vld [vmem:[#allocation2 + $0x100] ss:$20 sps:$4 sm:$0xff]   ;;  %v6028_v59 = vld [vmem:[#allocation2 + $0x128] ss:$20 sps:$4 sm:$0xff]   ;;  %vm9438_vm4 = vmmov %vm9435_vm0  ;;  %vm9441_vm6 = vcmask 1042432  }
 0x666   :  { %v3711_v27 = vsel %vm9429_vm9, %v8541_v44, %v3710_v0  ;;  %v3715_v62 = vsel %vm9430_vm13, %v8561_v40, %v3714_v45  ;;  %v3698_v2 = vpop.permute.xlu0 %3697  ;;  %4463 = vmatpush1.bf16.msra.mxu1 %v5355_v57  ;;  %v3826_v10 = vld [vmem:[#allocation2 + $0x224] sm:$0xff]  ;;  %4388 = vmatpush1.bf16.msra.mxu0 %v4322_v6  ;;  %v5366_v44 = vcombine.high %v8643_v26, %v3652_v41  ;;  %v6014_v26 = vld [vmem:[#allocation2 + $0x38] ss:$20 sps:$4 sm:$0xff]   ;;  %v4701_v43 = vld [vmem:[%s9098_s5 + $0x190] sm:$0xff] }
 0x667   :  { %3730 = vst [vmem:[#allocation2 + $0x260] sm:$0xee] %v3711_v27  ;;  %v3707_v15 = vrot.slane %v3698_v2, 4  ;;  %3737 = vst.msk [vmem:[#allocation2 + $0x290] sm:$0xf] %vm9420_vm2, %v3698_v2  ;;  %v5360_v60 = vcombine.low %v8639_v7, %v3826_v10  ;;  %v5361_v29 = vcombine.high %v8639_v7, %v3826_v10  ;;  %5531 = vmatprep.subr.bf16.mxu0 %v6010_v20  ;;  %v4699_v47 = vld [vmem:[%s9098_s5 + $0x180] sm:$0xff] }
 0x668   :  { %v8727_v7 = vld [vmem:[%s9096_s3 + $0x8] ss:$12 sps:$4 sm:$0xff]   ;;  %v6024_v41 = vld [vmem:[#allocation2 + $0xd8] ss:$20 sps:$4 sm:$0xff]   ;;  %v4683_v12 = vld [vmem:[%s9098_s5 + $0x100] sm:$0xff] }
 0x669   :  { %v3718_v31 = vsel %vm452_vm7, %v3706_v3, %v3707_v15  ;;  %4379 = vmatmul.mubr.bf16.gmra.mrb[48].mxu0 %v8707_v56  ;;  %4464 = vmatprep.subr.bf16.mxu1 %v5361_v29  ;;  %v4700_v3 = vld [vmem:[%s9098_s5 + $0x188] sm:$0xff]  ;;  %v4702_v23 = vld [vmem:[%s9098_s5 + $0x198] sm:$0xff]  ;;  %v5835_v22 = vpack.c.bf16 %v4684_v28, %v4683_v12  ;;  %v4651_v35 = vld [vmem:[%s9098_s5] sm:$0xff] }
 0x66a   :  { %v3719_v40 = vsel %vm9431_vm8, %v3696_v34, %v3718_v31  ;;  %4465 = vmatpush1.bf16.msra.mxu1 %v5360_v60  ;;  %4419 = vmatprep.mubr.bf16.mxu0 %v9432_v61  ;;  %v5833_v55 = vpack.c.bf16 %v4700_v3, %v4699_v47  ;;  %v4652_v58 = vld [vmem:[%s9098_s5 + $0x8] sm:$0xff]  ;;  %v5837_v17 = vpack.c.bf16 %v4702_v23, %v4701_v43  ;;  %v4669_v46 = vld [vmem:[%s9098_s5 + $0x90] sm:$0xff]  ;;  %v4670_v38 = vld [vmem:[%s9098_s5 + $0x98] sm:$0xff]  ;;  %v9439_v23 = vmov 0.0|0.0  }
 0x66b   :  { %4466 = vmatprep.subr.bf16.mxu1 %v5366_v44  ;;  %v5376_v49 = vcombine.high %v3719_v40, %v3719_v40  ;;  %v5375_v9 = vcombine.low %v3719_v40, %v3719_v40  ;;  %v6027_v63 = vld [vmem:[#allocation2 + $0x268] ss:$20 sps:$4 sm:$0xff]   ;;  %v5803_v57 = vpack.c.bf16 %v4652_v58, %v4651_v35  ;;  %v5805_v0 = vpack.c.bf16 %v4670_v38, %v4669_v46  ;;  %v4653_v45 = vld [vmem:[%s9098_s5 + $0x10] sm:$0xff]  ;;  %v4671_v20 = vld [vmem:[%s9098_s5 + $0xa0] sm:$0xff] }
 0x66c   :  { %v4654_v6 = vld [vmem:[%s9098_s5 + $0x18] sm:$0xff]  ;;  %v4656_v2 = vld [vmem:[%s9098_s5 + $0x28] sm:$0xff]  ;;  %v4673_v10 = vld [vmem:[%s9098_s5 + $0xb0] sm:$0xff] }
 0x66d   :  { %v4328_v33 = vsel %vm452_vm7, %v5375_v9, 0  ;;  %v4674_v15 = vld [vmem:[%s9098_s5 + $0xb8] sm:$0xff]  ;;  %v4657_v31 = vld [vmem:[%s9098_s5 + $0x30] sm:$0xff]  ;;  %v4675_v40 = vld [vmem:[%s9098_s5 + $0xc0] sm:$0xff] }
 0x66e   :  { %4467 = vmatpush1.bf16.msra.mxu1 %v5365_v21  ;;  %v3835_v8 = vld [vmem:[#allocation2 + $0x260] sm:$0xff]  ;;  %v6016_v37 = vld [vmem:[#allocation2 + $0x290] ss:$0 sps:$4 sm:$0xff]   ;;  %v5813_v29 = vpack.c.bf16 %v4674_v15, %v4673_v10  ;;  %v4658_v44 = vld [vmem:[%s9098_s5 + $0x38] sm:$0xff] }
 0x66f   :  { %v5370_v42 = vcombine.low %v3835_v8, %v3715_v62  ;;  %v5371_v54 = vcombine.high %v3835_v8, %v3715_v62  ;;  %v4334_v34 = vsel %vm452_vm7, %v6016_v37, 0  ;;  %v4655_v62 = vld [vmem:[%s9098_s5 + $0x20] sm:$0xff]  ;;  %v4660_v8 = vld [vmem:[%s9098_s5 + $0x48] sm:$0xff]  ;;  %v4662_v9 = vld [vmem:[%s9098_s5 + $0x58] sm:$0xff] }
 0x670   :  { %v5811_v60 = vpack.c.bf16 %v4656_v2, %v4655_v62  ;;  %v4703_v13 = vld [vmem:[%s9098_s5 + $0x1a0] sm:$0xff]  ;;  %v4688_v3 = vld [vmem:[%s9098_s5 + $0x128] sm:$0xff]  ;;  %v4706_v12 = vld [vmem:[%s9098_s5 + $0x1b8] sm:$0xff] }
 0x671   :  { %5379 = vmatmul.mubr.msk.bf16.vlgmr.msra.gmra.mrb[44].mxu0 %vm9433_vm3, %v8727_v7  ;;  %4468 = vmatprep.subr.bf16.mxu1 %v5371_v54  ;;  %v4678_v54 = vld [vmem:[%s9098_s5 + $0xd8] sm:$0xff]  ;;  %v4687_v47 = vld [vmem:[%s9098_s5 + $0x120] sm:$0xff]  ;;  %v4708_v58 = vld [vmem:[%s9098_s5 + $0x1c8] sm:$0xff] }
 0x672   :  { %4469 = vmatpush1.bf16.msra.mxu1 %v5370_v42  ;;  %5532 = vmatpush3.bf16.msra.mxu0 %v6012_v14  ;;  %v4677_v42 = vld [vmem:[%s9098_s5 + $0xd0] sm:$0xff]  ;;  %v4690_v43 = vld [vmem:[%s9098_s5 + $0x138] sm:$0xff]  ;;  %v4707_v35 = vld [vmem:[%s9098_s5 + $0x1c0] sm:$0xff] }
 0x673   :  { %5533 = vmatprep.subr.bf16.mxu0 %v6013_v48  ;;  %5381 = vmatprep.subr.msk.bf16.mxu1 %vm452_vm7, %v5376_v49  ;;  %v5821_v48 = vpack.c.bf16 %v4678_v54, %v4677_v42  ;;  %v4661_v49 = vld [vmem:[%s9098_s5 + $0x50] sm:$0xff]  ;;  %v5849_v46 = vpack.c.bf16 %v4708_v58, %v4707_v35  ;;  %v4692_v38 = vld [vmem:[%s9098_s5 + $0x148] sm:$0xff]  ;;  %v4695_v10 = vld [vmem:[%s9098_s5 + $0x160] sm:$0xff] }
 0x674   :  { %4429 = vmatprep.mubr.bf16.mxu0 %v9432_v61  ;;  %v4696_v15 = vld [vmem:[%s9098_s5 + $0x168] sm:$0xff]  ;;  %v4715_v54 = vld [vmem:[%s9098_s5 + $0x200] sm:$0xff] }
 0x675   :  { %4471 = vmatmul.mubr.bf16.vlgmr.msra.gmra.mrb[44].mxu1 %v8677_v25 }
 0x676   :  { %4490 = vmatpush1.bf16.msra.mxu1 %v4328_v33  ;;  %5534 = vmatpush3.bf16.msra.mxu0 %v6014_v26  ;;  %v4679_v26 = vld [vmem:[%s9098_s5 + $0xe0] sm:$0xff]  ;;  %v5823_v33 = vpack.c.bf16 %v4662_v9, %v4661_v49 }
 0x677   :  { %5535 = vmatprep.subr.bf16.mxu0 %v6015_v51  ;;  %5933 = vmatprep.subr.msk.bf16.mxu1 %vm452_vm7, %v6016_v37  ;;  %v4663_v37 = vld [vmem:[%s9098_s5 + $0x60] sm:$0xff]  ;;  %v8965_v9 = vpop.permute.xlu0 %3853 }
 0x678   :  { %4480 = vmatprep.mubr.bf16.mxu1 %v8683_v32 }
 0x679   :  { %5380 = vmatmul.mubr.msk.bf16.gmra.mrb[48].mxu0 %vm9434_vm14, %v8736_v52 }
 0x67a   :  { %5536 = vmatpush3.bf16.msra.mxu0 %v6018_v24  ;;  %4572 = vmatprep.mubr.bf16.mxu0 %v6042_v16  ;;  %v4664_v24 = vld [vmem:[%s9098_s5 + $0x68] sm:$0xff] }
 0x67b   :  { %5537 = vmatprep.subr.bf16.mxu0 %v6019_v11  ;;  %v4685_v11 = vld [vmem:[%s9098_s5 + $0x110] sm:$0xff]  ;;  %v5827_v16 = vpack.c.bf16 %v4664_v24, %v4663_v37 }
 0x67d   :  { %4481 = vmatmul.mubr.bf16.gmra.mrb[48].mxu1 %v8707_v56 }
 0x67e   :  { %5538 = vmatpush3.bf16.msra.mxu0 %v6020_v36  ;;  %4521 = vmatprep.mubr.bf16.mxu1 %v9432_v61  ;;  %v4686_v36 = vld [vmem:[%s9098_s5 + $0x118] sm:$0xff] }
 0x67f   :  { %5539 = vmatprep.subr.bf16.mxu0 %v6021_v4  ;;  %v5839_v4 = vpack.c.bf16 %v4686_v36, %v4685_v11  ;;  %v4717_v11 = vld [vmem:[%s9098_s5 + $0x210] sm:$0xff] }
 0x682   :  { %5540 = vmatpush3.bf16.msra.mxu0 %v6022_v39  ;;  %v4681_v39 = vld [vmem:[%s9098_s5 + $0xf0] sm:$0xff] }
 0x683   :  { %5541 = vmatprep.subr.bf16.mxu0 %v6023_v1  ;;  %v4682_v1 = vld [vmem:[%s9098_s5 + $0xf8] sm:$0xff] }
 0x684   :  { %v5829_v53 = vpack.c.bf16 %v4682_v1, %v4681_v39 }
 0x685   :  { %5382 = vmatmul.mubr.msk.bf16.vlgmr.msra.gmra.mrb[44].mxu1 %vm9435_vm0, %v8727_v7 }
 0x686   :  { %5700 = vmatpush3.bf16.msra.mxu1 %v4334_v34  ;;  %5542 = vmatpush3.bf16.msra.mxu0 %v6024_v41  ;;  %v4704_v41 = vld [vmem:[%s9098_s5 + $0x1a8] sm:$0xff]  ;;  %v4666_v34 = vld [vmem:[%s9098_s5 + $0x78] sm:$0xff] }
 0x687   :  { %5543 = vmatprep.subr.bf16.mxu0 %v6025_v19  ;;  %4531 = vmatprep.mubr.bf16.mxu1 %v9432_v61  ;;  %v5815_v61 = vpack.c.bf16 %v4658_v44, %v4657_v31  ;;  %v5841_v19 = vpack.c.bf16 %v4704_v41, %v4703_v13  ;;  %v4714_v31 = vld [vmem:[%s9098_s5 + $0x1f8] sm:$0xff]  ;;  %v4697_v44 = vld [vmem:[%s9098_s5 + $0x170] sm:$0xff] }
 0x688   :  { %5802 = vmatprep.subr.bf16.mxu1 %v5801_v18  ;;  %v4665_v18 = vld [vmem:[%s9098_s5 + $0x70] sm:$0xff] }
 0x68a   :  { %5544 = vmatpush3.bf16.msra.mxu0 %v6026_v30  ;;  %v5831_v30 = vpack.c.bf16 %v4666_v34, %v4665_v18  ;;  %v4719_v18 = vld [vmem:[%s9098_s5 + $0x220] sm:$0xff]  ;;  %v4720_v34 = vld [vmem:[%s9098_s5 + $0x228] sm:$0xff] }
 0x68b   :  { %5545 = vmatprep.subr.bf16.mxu0 %v6027_v63  ;;  %v4705_v63 = vld [vmem:[%s9098_s5 + $0x1b0] sm:$0xff] }
 0x68c   :  { %v5845_v28 = vpack.c.bf16 %v4706_v12, %v4705_v63  ;;  %v5872_v63 = vpack.c.bf16 %v4720_v34, %v4719_v18  ;;  %v9440_v12 = vmov 0.0  }
 0x68d   :  { %5383 = vmatmul.mubr.msk.bf16.gmra.mrb[48].mxu1 %vm9436_vm15, %v8736_v52 }
 0x68e   :  { %5546 = vmatpush3.bf16.msra.mxu0 %v6028_v59  ;;  %5701 = vmatprep.mubr.msk.bf16.mxu1 %vm9437_vm10, %v8727_v7  ;;  %v4659_v7 = vld [vmem:[%s9098_s5 + $0x40] sm:$0xff]  ;;  %v4689_v59 = vld [vmem:[%s9098_s5 + $0x130] sm:$0xff] }
 0x68f   :  { %5834 = vmatprep.subr.bf16.mxu0 %v5833_v55  ;;  %v5819_v14 = vpack.c.bf16 %v4660_v8, %v4659_v7  ;;  %v5843_v55 = vpack.c.bf16 %v4688_v3, %v4687_v47 }
 0x691   :  { %4573 = vmatmul.mubr.bf16.vlgmr.msra.gmra.mrb[52].mxu0 %v8677_v25  ;;  %v4672_v25 = vld [vmem:[%s9098_s5 + $0xa8] sm:$0xff] }
 0x692   :  { %4580 = vmatprep.mubr.bf16.mxu0 %v8683_v32  ;;  %5836 = vmatpush3.bf16.msra.mxu0 %v5835_v22  ;;  %v5807_v32 = vpack.c.bf16 %v4654_v6, %v4653_v45  ;;  %v5809_v27 = vpack.c.bf16 %v4672_v25, %v4671_v20  ;;  %v5847_v22 = vpack.c.bf16 %v4690_v43, %v4689_v59  ;;  %v4710_v45 = vld [vmem:[%s9098_s5 + $0x1d8] sm:$0xff]  ;;  %v4693_v20 = vld [vmem:[%s9098_s5 + $0x150] sm:$0xff] }
 0x693   :  { %5838 = vmatprep.subr.bf16.mxu0 %v5837_v17  ;;  %v4691_v17 = vld [vmem:[%s9098_s5 + $0x140] sm:$0xff]  ;;  %v4694_v25 = vld [vmem:[%s9098_s5 + $0x158] sm:$0xff] }
 0x694   :  { %v5855_v62 = vpack.c.bf16 %v4694_v25, %v4693_v20 }
 0x695   :  { %5702 = vmatmul.mubr.msk.bf16.vlgmr.msra.gmra.mrb[52].mxu1 %vm9438_vm4, %v8736_v52  ;;  %v4680_v52 = vld [vmem:[%s9098_s5 + $0xe8] sm:$0xff] }
 0x696   :  { %5804 = vmatpush3.bf16.msra.mxu1 %v5803_v57  ;;  %v5825_v51 = vpack.c.bf16 %v4680_v52, %v4679_v26  ;;  %5840 = vmatpush3.bf16.msra.mxu0 %v5839_v4  ;;  %v5851_v57 = vpack.c.bf16 %v4692_v38, %v4691_v17 }
 0x697   :  { %5806 = vmatprep.subr.bf16.mxu1 %v5805_v0  ;;  %5842 = vmatprep.subr.bf16.mxu0 %v5841_v19  ;;  %v4709_v0 = vld [vmem:[%s9098_s5 + $0x1d0] sm:$0xff] }
 0x698   :  { %v5853_v6 = vpack.c.bf16 %v4710_v45, %v4709_v0 }
 0x699   :  { %4581 = vmatmul.mubr.bf16.gmra.mrb[56].mxu0 %v8707_v56  ;;  %v4676_v56 = vld [vmem:[%s9098_s5 + $0xc8] sm:$0xff] }
 0x69a   :  { %5808 = vmatpush3.bf16.msra.mxu1 %v5807_v32  ;;  %v5817_v21 = vpack.c.bf16 %v4676_v56, %v4675_v40  ;;  %5844 = vmatpush3.bf16.msra.mxu0 %v5843_v55  ;;  %v4711_v32 = vld [vmem:[%s9098_s5 + $0x1e0] sm:$0xff]  ;;  %v4698_v56 = vld [vmem:[%s9098_s5 + $0x178] sm:$0xff] }
 0x69b   :  { %5810 = vmatprep.subr.bf16.mxu1 %v5809_v27  ;;  %5846 = vmatprep.subr.bf16.mxu0 %v5845_v28  ;;  %v4712_v27 = vld [vmem:[%s9098_s5 + $0x1e8] sm:$0xff]  ;;  %v4721_v28 = vld [vmem:[%s9098_s5 + $0x230] sm:$0x7] }
 0x69c   :  { %v5857_v2 = vpack.c.bf16 %v4712_v27, %v4711_v32 }
 0x69e   :  { %5812 = vmatpush3.bf16.msra.mxu1 %v5811_v60  ;;  %5848 = vmatpush3.bf16.msra.mxu0 %v5847_v22  ;;  %v5859_v60 = vpack.c.bf16 %v4696_v15, %v4695_v10 }
 0x69f   :  { %5814 = vmatprep.subr.bf16.mxu1 %v5813_v29  ;;  %5850 = vmatprep.subr.bf16.mxu0 %v5849_v46  ;;  %v4713_v29 = vld [vmem:[%s9098_s5 + $0x1f0] sm:$0xff] }
 0x6a0   :  { %v5861_v40 = vpack.c.bf16 %v4714_v31, %v4713_v29 }
 0x6a2   :  { %5816 = vmatpush3.bf16.msra.mxu1 %v5815_v61  ;;  %5852 = vmatpush3.bf16.msra.mxu0 %v5851_v57  ;;  %v5863_v61 = vpack.c.bf16 %v4698_v56, %v4697_v44 }
 0x6a3   :  { %5818 = vmatprep.subr.bf16.mxu1 %v5817_v21  ;;  %5854 = vmatprep.subr.bf16.mxu0 %v5853_v6  ;;  %v8955_v21 = vpop.permute.xlu1 %3848 }
 0x6a6   :  { %5820 = vmatpush3.bf16.msra.mxu1 %v5819_v14  ;;  %5856 = vmatpush3.bf16.msra.mxu0 %v5855_v62  ;;  %v4716_v14 = vld [vmem:[%s9098_s5 + $0x208] sm:$0xff] }
 0x6a7   :  { %5822 = vmatprep.subr.bf16.mxu1 %v5821_v48  ;;  %5858 = vmatprep.subr.bf16.mxu0 %v5857_v2  ;;  %v8975_v4 = vpop.permute.xlu1 %3858 }
 0x6aa   :  { %5824 = vmatpush3.bf16.msra.mxu1 %v5823_v33  ;;  %5860 = vmatpush3.bf16.msra.mxu0 %v5859_v60 }
 0x6ab   :  { %5826 = vmatprep.subr.bf16.mxu1 %v5825_v51  ;;  %5862 = vmatprep.subr.bf16.mxu0 %v5861_v40  ;;  %v5866_v51 = vpack.c.bf16 %v4716_v14, %v4715_v54 }
 0x6ae   :  { %5828 = vmatpush3.bf16.msra.mxu1 %v5827_v16  ;;  %5864 = vmatpush3.bf16.msra.mxu0 %v5863_v61  ;;  %v4718_v16 = vld [vmem:[%s9098_s5 + $0x218] sm:$0xff]  ;;  %s5100_s5 = sshll.u32 %s6087_s23, 4  ;;  %s5101_s5 = int_to_ptr.vmem [resolvable:$true] %s5100_s5 }
 0x6af   :  { %5830 = vmatprep.subr.bf16.mxu1 %v5829_v53  ;;  %v5869_v1 = vpack.c.bf16 %v4718_v16, %v4717_v11  ;;  %s6047_s24 = scalar_lea.vmem %s5101_s5, 32  ;;  %p6052_p1 = scmp.lt.s32.totalorder %s5101_s5, %s5101_s5 }
 0x6b0   :  { %p6048_p0 = scmp.ne.s32.totalorder %s5101_s5, %s6047_s24  ;;  %p6053_p2 = scmp.lt.s32.totalorder %s6047_s24, %s6047_s24 }
 0x6b2   :  { %5832 = vmatpush3.bf16.msra.mxu1 %v5831_v30  ;;  %p6054_p3 = por %p6053_p2, %p6052_p1 }
 0x6b3   :  { %5865 = vmatprep.subr.bf16.mxu1 %v9439_v23 }
 0x6b4   :  { %p6055_p4 = pnand %p6054_p3, %p6048_p0 }
 0x744   :  { %v4421_v7 = vpop.f32.mrb[44].mxu0 }
 0x745   :  { %v5886_v8 = vadd.f32 %v4421_v7, %v8955_v21  ;;  %v4423_v42 = vpop.f32.mrb[45].mxu0 }
 0x746   :  { %v5887_v48 = vadd.f32 %v4423_v42, %v8955_v21  ;;  %v4425_v49 = vpop.f32.mrb[46].mxu0 }
 0x747   :  { %v4427_v26 = vpop.f32.mrb[47].mxu0  ;;  %v4636_v37 = vmul.f32 %v5886_v8, %v5886_v8  ;;  %v5888_v24 = vadd.f32 %v4425_v49, %v8965_v9 }
 0x748   :  { %v4637_v52 = vmul.f32 %v5887_v48, %v5887_v48  ;;  %v5889_v33 = vadd.f32 %v4427_v26, %v8965_v9 }
 0x749   :  { %v4641_v13 = vmul.f32 %v5888_v24, %v5888_v24 }
 0x74a   :  { %v4642_v36 = vmul.f32 %v5889_v33, %v5889_v33  ;;  %4798 = vmatprep.mubr.f32.mxu1 %v4637_v52 }
 0x74b   :  { %4799 = vmatmul.mubr.f32.vlgmr.msra.gmra.mrb[30].mxu1 %v4636_v37 }
 0x74c   :  { %v4431_v39 = vpop.f32.mrb[48].mxu0  ;;  %4803 = vmatprep.mubr.f32.mxu1 %v4642_v36  ;;  %5867 = vmatpush3.bf16.msra.mxu1 %v5866_v51 }
 0x74d   :  { %v5890_v53 = vadd.f32 %v4431_v39, %v8975_v4  ;;  %v4433_v41 = vpop.f32.mrb[49].mxu0  ;;  %5868 = vmatprep.subr.bf16.mxu1 %v9439_v23 }
 0x74e   :  { %v5891_v19 = vadd.f32 %v4433_v41, %v8975_v4  ;;  %v4435_v30 = vpop.f32.mrb[50].mxu0 }
 0x74f   :  { %v4436_v47 = vpop.f32.mrb[51].mxu0  ;;  %4804 = vmatmul.mubr.f32.gmra.mrb[56].mxu1 %v4641_v13  ;;  %v4646_v55 = vmul.f32 %v5890_v53, %v5890_v53 }
 0x750   :  { %v4647_v3 = vmul.f32 %v5891_v19, %v5891_v19  ;;  %5870 = vmatpush3.bf16.msra.mxu1 %v5869_v1 }
 0x751   :  { %5871 = vmatprep.subr.bf16.mxu1 %v9439_v23 }
 0x752   :  { %4808 = vmatprep.mubr.f32.mxu1 %v4647_v3 }
 0x753   :  { %4809 = vmatmul.mubr.f32.gmra.mrb[58].mxu1 %v4646_v55 }
 0x754   :  { %5873 = vmatpush3.bf16.msra.mxu1 %v5872_v63  ;;  %5719 = vmatprep.mubr.msk.f32.mxu1 %vm6085_vm5, %v9440_v12 }
 0x755   :  { %5717 = vmatprep.subr.mxu1 %v9440_v12 }
 0x758   :  { %v4523_v59 = vpop.f32.mrb[44].mxu1  ;;  %5718 = vmatpush3.msk.msra.mxu1 %vm9441_vm6, %v4721_v28 }
 0x759   :  { %v5892_v43 = vadd.f32 %v4523_v59, %v8955_v21  ;;  %v4525_v22 = vpop.f32.mrb[45].mxu1 }
 0x75a   :  { %v5893_v23 = vadd.f32 %v4525_v22, %v8955_v21  ;;  %v4527_v35 = vpop.f32.mrb[46].mxu1 }
 0x75b   :  { %v4529_v58 = vpop.f32.mrb[47].mxu1  ;;  %v4638_v38 = vmul.f32 %v5892_v43, %v5892_v43  ;;  %v5894_v57 = vadd.f32 %v4527_v35, %v8965_v9 }
 0x75c   :  { %v4639_v17 = vmul.f32 %v5893_v23, %v5893_v23  ;;  %v5895_v46 = vadd.f32 %v4529_v58, %v8965_v9 }
 0x75d   :  { %v4643_v6 = vmul.f32 %v5894_v57, %v5894_v57 }
 0x75e   :  { %v4644_v0 = vmul.f32 %v5895_v46, %v5895_v46  ;;  %4878 = vmatprep.mubr.f32.mxu0 %v4639_v17 }
 0x75f   :  { %4879 = vmatmul.mubr.f32.vlgmr.msra.gmra.mrb[60].mxu0 %v4638_v38 }
 0x760   :  { %v4533_v45 = vpop.f32.mrb[48].mxu1  ;;  %4883 = vmatprep.mubr.f32.mxu0 %v4644_v0 }
 0x761   :  { %v5896_v20 = vadd.f32 %v4533_v45, %v8975_v4  ;;  %v4535_v25 = vpop.f32.mrb[49].mxu1 }
 0x762   :  { %v5897_v32 = vadd.f32 %v4535_v25, %v8975_v4  ;;  %v4537_v27 = vpop.f32.mrb[50].mxu1  ;;  %v4980_v25 = vld [vmem:[%s9099_s6] sm:$0xff] }
 0x763   :  { %v4538_v62 = vpop.f32.mrb[51].mxu1  ;;  %4884 = vmatmul.mubr.f32.gmra.mrb[62].mxu0 %v4643_v6  ;;  %v4648_v15 = vmul.f32 %v5896_v20, %v5896_v20  ;;  %v5393_v20 = vld [vmem:[%s9099_s6 + $0x30] sm:$0xff]  ;;  %v5390_v27 = vld [vmem:[%s9099_s6 + $0x18] sm:$0xff] }
 0x764   :  { %v4649_v2 = vmul.f32 %v5897_v32, %v5897_v32  ;;  %v5547_v10 = vpop.f32.mrb[52].mxu0 }
 0x765   :  { %v5548_v60 = vpop.f32.mrb[53].mxu0 }
 0x766   :  { %v5549_v29 = vadd.f32 %v5548_v60, %v5547_v10  ;;  %v5550_v31 = vpop.f32.mrb[54].mxu0  ;;  %4888 = vmatprep.mubr.f32.mxu0 %v4649_v2 }
 0x767   :  { %v5551_v44 = vpop.f32.mrb[55].mxu0  ;;  %4889 = vmatmul.mubr.f32.gmra.mrb[64].mxu0 %v4648_v15  ;;  %v4981_v15 = vld [vmem:[%s9099_s6 + $0x8] sm:$0xff] }
 0x768   :  { %v5552_v40 = vadd.f32 %v5551_v44, %v5550_v31  ;;  %v5703_v56 = vpop.f32.mrb[52].mxu1  ;;  %v4575_v61 = vadd.f32 %v5549_v29, %v8955_v21 }
 0x769   :  { %v4622_v7 = vpop.f32.mrb[53].mxu1 }
 0x76a   :  { %v4623_v8 = vadd.f32 %v4622_v7, %v4575_v61  ;;  %v5704_v42 = vpop.f32.mrb[54].mxu1  ;;  %v4578_v54 = vadd.f32 %v5552_v40, %v8965_v9  ;;  %v5396_v40 = vld [vmem:[%s9099_s6 + $0x48] sm:$0xff] }
 0x76b   :  { %v4625_v14 = vpop.f32.mrb[55].mxu1 }
 0x76c   :  { %v4640_v48 = vmul.f32 %v4623_v8, %v4623_v8  ;;  %v4626_v49 = vadd.f32 %v4625_v14, %v4578_v54  ;;  %v5553_v26 = vpop.f32.mrb[56].mxu0  ;;  %v5397_v8 = vld [vmem:[%s9099_s6 + $0x50] sm:$0xff] }
 0x76d   :  { %v5554_v52 = vpop.f32.mrb[57].mxu0 }
 0x76e   :  { %v5555_v33 = vadd.f32 %v5554_v52, %v5553_v26  ;;  %5720 = vmatmul.mubr.msk.f32.vlgmr.msra.gmra.mrb[60].mxu1 %vm2211_vm1, %v4640_v48  ;;  %v5556_v51 = vpop.f32.mrb[58].mxu0  ;;  %v4645_v24 = vmul.f32 %v4626_v49, %v4626_v49  ;;  %v5391_v49 = vld [vmem:[%s9099_s6 + $0x20] sm:$0xff]  ;;  %v4982_v26 = vld [vmem:[%s9099_s6 + $0x10] sm:$0xf] }
 0x76f   :  { %5722 = vmatprep.mubr.msk.f32.mxu1 %vm6085_vm5, %v9440_v12  ;;  %v5557_v37 = vpop.f32.mrb[59].mxu0 }
 0x770   :  { %v4583_v21 = vadd.f32 %v5555_v33, %v8975_v4 }
 0x772   :  { %v4631_v11 = vadd.f32 %v5703_v56, %v4583_v21  ;;  %5723 = vmatmul.mubr.msk.f32.gmra.mrb[62].mxu1 %vm2211_vm1, %v4645_v24  ;;  %v5394_v24 = vld [vmem:[%s9099_s6 + $0x38] sm:$0xff]  ;;  %v5395_v21 = vld [vmem:[%s9099_s6 + $0x40] sm:$0xf] }
 0x773   :  { %5725 = vmatprep.mubr.msk.f32.mxu1 %vm6085_vm5, %v9440_v12  ;;  %vm2571_vm5 = vcmask 7168  }
 0x774   :  { %v4650_v9 = vmul.f32 %v4631_v11, %v4631_v11 }
 0x776   :  { %5726 = vmatmul.mubr.msk.f32.gmra.mrb[64].mxu1 %vm2211_vm1, %v4650_v9  ;;  %vm2573_vm1 = vcmask 15360  }
 0x81e   :  { %v5594_v16 = vpop.f32.mrb[30].mxu1 }
 0x81f   :  { %v5595_v36 = vpop.f32.mrb[31].mxu1 }
 0x820   :  { %v5596_v39 = vadd.f32 %v5595_v36, %v5594_v16 }
 0x822   :  { %v5597_v1 = vpop.f32.mrb[56].mxu1 }
 0x823   :  { %v5598_v13 = vpop.f32.mrb[57].mxu1 }
 0x824   :  { %v5599_v53 = vadd.f32 %v5598_v13, %v5597_v1 }
 0x826   :  { %v5600_v41 = vpop.f32.mrb[58].mxu1 }
 0x827   :  { %v5601_v18 = vpop.f32.mrb[59].mxu1 }
 0x828   :  { %v5602_v34 = vadd.f32 %v5601_v18, %v5600_v41  ;;  %v2551_v41 = vmul.f32 %v5397_v8, %v8232_v50  ;;  %v5398_v18 = vld [vmem:[%s9099_s6 + $0x58] sm:$0xf] }
 0x832   :  { %v5635_v19 = vpop.f32.mrb[60].mxu0 }
 0x833   :  { %v5636_v4 = vpop.f32.mrb[61].mxu0 }
 0x834   :  { %v5637_v30 = vadd.f32 %v5636_v4, %v5635_v19  ;;  %v2556_v19 = vsel %vm2476_vm12, %v2551_v41, 0.0 }
 0x836   :  { %v5638_v47 = vpop.f32.mrb[62].mxu0  ;;  %v4881_v3 = vadd.f32 %v5637_v30, %v5596_v39  ;;  %v5392_v39 = vld [vmem:[%s9099_s6 + $0x28] sm:$0xf]  ;;  %v5248_v30 = vld [vmem:[%s9099_s6 + $0x58] sm:$0xf] }
 0x837   :  { %v5639_v63 = vpop.f32.mrb[63].mxu0  ;;  %v2552_v50 = vmul.f32 %v5248_v30, %v8295_v5 }
 0x838   :  { %v5640_v55 = vadd.f32 %v5639_v63, %v5638_v47  ;;  %v2482_v63 = vpop.xlane.xlu0 %2481 }
 0x83a   :  { %v5641_v12 = vpop.f32.mrb[64].mxu0  ;;  %v4886_v28 = vadd.f32 %v5640_v55, %v5599_v53  ;;  %v2479_v55 = vpop.xlane.xlu1 %2478 }
 0x83b   :  { %v5642_v59 = vpop.f32.mrb[65].mxu0 }
 0x83c   :  { %v5643_v43 = vadd.f32 %v5642_v59, %v5641_v12  ;;  %v2508_v12 = vpop.xlane.xlu0 %2507 }
 0x83e   :  { %v4891_v22 = vadd.f32 %v5643_v43, %v5602_v34 }
 0x840   :  { %v2486_v59 = vpop.xlane.xlu0 %2485 }
 0x841   :  { %v4960_v23 = vpop.f32.mrb[60].mxu1 }
 0x842   :  { %v4961_v35 = vadd.f32 %v4960_v23, %v4881_v3  ;;  %v5721_v58 = vpop.f32.mrb[61].mxu1  ;;  %v2559_v3 = vsel %vm2483_vm11, %v2552_v50, 0.0 }
 0x844   :  { %6035 = vlog2.f32 %v4961_v35 }
 0x845   :  { %v4965_v17 = vpop.f32.mrb[62].mxu1 }
 0x846   :  { %v4966_v46 = vadd.f32 %v4965_v17, %v4886_v28  ;;  %v5724_v38 = vpop.f32.mrb[63].mxu1  ;;  %v2505_v28 = vpop.xlane.xlu1 %2504 }
 0x848   :  { %6037 = vlog2.f32 %v4966_v46 }
 0x849   :  { %v4970_v57 = vpop.f32.mrb[64].mxu1 }
 0x84a   :  { %v4971_v0 = vadd.f32 %v4970_v57, %v4891_v22  ;;  %v5727_v45 = vpop.f32.mrb[65].mxu1  ;;  %v2511_v43 = vpop.xlane.xlu1 %2510 }
 0x84b   :  { %v2530_v22 = vpop.xlane.xlu0 %2529  ;;  %v2513_v45 = vsel %vm452_vm7, %v2511_v43, 0.0 }
 0x84c   :  { %6039 = vlog2.f32 %v4971_v0 }
 0x84e   :  { %v6036_v6 = vpop.eup %6035  ;;  %v2533_v23 = vpop.xlane.xlu1 %2532 }
 0x84f   :  { %v4975_v32 = vmul.f32 0.6931472, %v6036_v6  ;;  %v2555_v35 = vpop.xlane.xlu0 %2554  ;;  %v2512_v6 = vadd.f32 %v2508_v12, %v2505_v28 }
 0x851   :  { %v5031_v62 = vmul.f32 %v5393_v20, %v4975_v32  ;;  %v4983_v2 = vmul.f32 %v4980_v25, %v4975_v32  ;;  %v5007_v44 = vmul.f32 %v5390_v27, %v4975_v32  ;;  %v5055_v7 = vmul.f32 %v5396_v40, %v4975_v32 }
 0x852   :  { %v6038_v10 = vpop.eup %6037  ;;  %v2536_v58 = vpop.xlane.xlu1 %2535 }
 0x853   :  { %v4977_v60 = vmul.f32 0.6931472, %v6038_v10  ;;  %v5034_v29 = vsel %vm2476_vm12, %v5031_v62, 0.0  ;;  %v4986_v31 = vsel %vm2476_vm12, %v4983_v2, 0.0  ;;  %v5010_v54 = vsel %vm2476_vm12, %v5007_v44, 0.0 }
 0x854   :  { %5035 = vadd.xlane.f32.xlu1 %v5034_v29  ;;  %4987 = vadd.xlane.f32.xlu0 %v4986_v31  ;;  %v5058_v52 = vsel %vm2476_vm12, %v5055_v7, 0.0  ;;  %v2538_v20 = vsel %vm452_vm7, %v2536_v58, 0.0  ;;  %v2488_v62 = vsel %vm452_vm7, %v2486_v59, 0.0  ;;  %v2514_v2 = vadd.f32 %v2513_v45, %v2512_v6 }
 0x855   :  { %v4984_v56 = vmul.f32 %v4981_v15, %v4977_v60  ;;  %v5056_v48 = vmul.f32 %v5397_v8, %v4977_v60  ;;  %v5008_v51 = vmul.f32 %v5391_v49, %v4977_v60  ;;  %v5032_v16 = vmul.f32 %v5394_v24, %v4977_v60 }
 0x856   :  { %v6040_v61 = vpop.eup %6039  ;;  %v2537_v10 = vadd.f32 %v2533_v23, %v2530_v22  ;;  %v2487_v60 = vadd.f32 %v2482_v63, %v2479_v55  ;;  %v2515_v7 = vrot.slane %v2514_v2, 4 }
 0x857   :  { %v4979_v42 = vmul.f32 0.6931472, %v6040_v61  ;;  %v4989_v14 = vsel %vm2476_vm12, %v4984_v56, 0.0  ;;  %v5061_v33 = vsel %vm2476_vm12, %v5056_v48, 0.0  ;;  %v5013_v11 = vsel %vm2476_vm12, %v5008_v51, 0.0 }
 0x858   :  { %5011 = vadd.xlane.f32.xlu0 %v5010_v54  ;;  %4990 = vadd.xlane.f32.xlu1 %v4989_v14  ;;  %v5037_v1 = vsel %vm2476_vm12, %v5032_v16, 0.0  ;;  %v2539_v31 = vadd.f32 %v2538_v20, %v2537_v10  ;;  %v2489_v44 = vadd.f32 %v2488_v62, %v2487_v60  ;;  %vm9442_vm12 = vcmask 1040384  }
 0x859   :  { %v4985_v37 = vmul.f32 %v4982_v26, %v4979_v42  ;;  %v5033_v36 = vmul.f32 %v5395_v21, %v4979_v42  ;;  %v5009_v53 = vmul.f32 %v5392_v39, %v4979_v42  ;;  %v5057_v4 = vmul.f32 %v5398_v18, %v4979_v42 }
 0x85a   :  { %v2540_v14 = vrot.slane %v2539_v31, 4  ;;  %v2490_v49 = vrot.slane %v2489_v44, 4 }
 0x85b   :  { %v4992_v9 = vsel %vm2483_vm11, %v4985_v37, 0.0  ;;  %v5040_v13 = vsel %vm2483_vm11, %v5033_v36, 0.0  ;;  %v5016_v34 = vsel %vm2483_vm11, %v5009_v53, 0.0  ;;  %v5064_v47 = vsel %vm2483_vm11, %v5057_v4, 0.0 }
 0x85c   :  { %5059 = vadd.xlane.f32.xlu0 %v5058_v52  ;;  %5062 = vadd.xlane.f32.xlu1 %v5061_v33  ;;  %v2516_v33 = vadd.f32 %v2515_v7, %v2514_v2  ;;  %v2491_v16 = vadd.f32 %v2490_v49, %v2489_v44  ;;  %vm5092_vm11 = vcmask 25600  }
 0x860   :  { %5014 = vadd.xlane.f32.xlu0 %v5013_v11  ;;  %4993 = vadd.xlane.f32.xlu1 %v4992_v9  ;;  %v2541_v11 = vadd.f32 %v2540_v14, %v2539_v31 }
 0x862   :  { %v2542_v30 = vrot.slane %v2541_v11, 2 }
 0x864   :  { %5038 = vadd.xlane.f32.xlu0 %v5037_v1  ;;  %5041 = vadd.xlane.f32.xlu1 %v5040_v13  ;;  %v2517_v13 = vrot.slane %v2516_v33, 2 }
 0x866   :  { %v2518_v12 = vadd.f32 %v2517_v13, %v2516_v33 }
 0x868   :  { %5017 = vadd.xlane.f32.xlu0 %v5016_v34  ;;  %2557 = vadd.xlane.f32.xlu1 %v2556_v19 }
 0x86c   :  { %5065 = vadd.xlane.f32.xlu0 %v5064_v47  ;;  %v2492_v47 = vrot.slane %v2491_v16, 2 }
 0x870   :  { %2560 = vadd.xlane.f32.xlu0 %v2559_v3 }
 0x8e1   :  { %v4988_v17 = vpop.xlane.xlu0 %4987  ;;  %v5036_v46 = vpop.xlane.xlu1 %5035 }
 0x8e5   :  { %v5012_v38 = vpop.xlane.xlu0 %5011  ;;  %v4991_v57 = vpop.xlane.xlu1 %4990 }
 0x8e6   :  { %v4995_v25 = vadd.f32 %v4991_v57, %v4988_v17  ;;  %v2543_v17 = vadd.f32 %v2542_v30, %v2541_v11 }
 0x8e9   :  { %v5060_v0 = vpop.xlane.xlu0 %5059  ;;  %v5063_v5 = vpop.xlane.xlu1 %5062 }
 0x8ea   :  { %v5067_v36 = vadd.f32 %v5063_v5, %v5060_v0  ;;  %v2519_v5 = vrot.slane %v2518_v12, 1 }
 0x8ec   :  { %v2520_v60 = vadd.f32 %v2519_v5, %v2518_v12 }
 0x8ed   :  { %v5015_v32 = vpop.xlane.xlu0 %5014  ;;  %v4994_v27 = vpop.xlane.xlu1 %4993 }
 0x8ee   :  { %v4996_v15 = vsel %vm452_vm7, %v4994_v27, 0.0  ;;  %v5019_v26 = vadd.f32 %v5015_v32, %v5012_v38  ;;  %v2544_v32 = vrot.slane %v2543_v17, 1 }
 0x8ef   :  { %v4997_v29 = vadd.f32 %v4996_v15, %v4995_v25 }
 0x8f0   :  { %v2545_v44 = vadd.f32 %v2544_v32, %v2543_v17 }
 0x8f1   :  { %v4998_v40 = vrot.slane %v4997_v29, 4  ;;  %v5039_v56 = vpop.xlane.xlu0 %5038  ;;  %v5042_v61 = vpop.xlane.xlu1 %5041 }
 0x8f2   :  { %v5043_v8 = vadd.f32 %v5039_v56, %v5036_v46  ;;  %v5044_v42 = vsel %vm452_vm7, %v5042_v61, 0.0  ;;  %v2493_v46 = vadd.f32 %v2492_v47, %v2491_v16 }
 0x8f3   :  { %v4999_v54 = vadd.f32 %v4998_v40, %v4997_v29 }
 0x8f4   :  { %v5045_v48 = vadd.f32 %v5044_v42, %v5043_v8  ;;  %v2494_v27 = vrot.slane %v2493_v46, 1 }
 0x8f5   :  { %v5018_v52 = vpop.xlane.xlu0 %5017  ;;  %v5000_v24 = vrot.slane %v4999_v54, 2  ;;  %v2558_v41 = vpop.xlane.xlu1 %2557 }
 0x8f6   :  { %v5046_v51 = vrot.slane %v5045_v48, 4  ;;  %v5020_v37 = vsel %vm452_vm7, %v5018_v52, 0.0  ;;  %v2562_v3 = vadd.f32 %v2558_v41, %v2555_v35  ;;  %v2495_v56 = vadd.f32 %v2494_v27, %v2493_v46 }
 0x8f7   :  { %v5021_v21 = vadd.f32 %v5020_v37, %v5019_v26  ;;  %v5001_v34 = vadd.f32 %v5000_v24, %v4999_v54 }
 0x8f8   :  { %v5047_v9 = vadd.f32 %v5046_v51, %v5045_v48  ;;  %v2572_v42 = vsel %vm2571_vm5, %v2495_v56, %v2520_v60  ;;  %v5399_v48 = vld [vmem:[%s9100_s7] ss:$0 sm:$0xff] }
 0x8f9   :  { %v5022_v39 = vrot.slane %v5021_v21, 4  ;;  %v5066_v1 = vpop.xlane.xlu0 %5065  ;;  %v5002_v43 = vrot.slane %v5001_v34, 1  ;;  %v2574_v54 = vsel %vm2573_vm1, %v2572_v42, %v2545_v44 }
 0x8fa   :  { %v5048_v53 = vrot.slane %v5047_v9, 2  ;;  %v5068_v18 = vsel %vm452_vm7, %v5066_v1, 0.0 }
 0x8fb   :  { %v5023_v19 = vadd.f32 %v5022_v39, %v5021_v21  ;;  %v5069_v4 = vadd.f32 %v5068_v18, %v5067_v36  ;;  %v5003_v6 = vadd.f32 %v5002_v43, %v5001_v34 }
 0x8fc   :  { %v5049_v28 = vadd.f32 %v5048_v53, %v5047_v9 }
 0x8fd   :  { %v5024_v50 = vrot.slane %v5023_v19, 2  ;;  %v5070_v63 = vrot.slane %v5069_v4, 4  ;;  %v2561_v55 = vpop.xlane.xlu0 %2560 }
 0x8fe   :  { %v2563_v59 = vsel %vm452_vm7, %v2561_v55, 0.0  ;;  %v5050_v45 = vrot.slane %v5049_v28, 1  ;;  %vm2575_vm7 = vcmask 23552  }
 0x8ff   :  { %v5025_v22 = vadd.f32 %v5024_v50, %v5023_v19  ;;  %v5071_v23 = vadd.f32 %v5070_v63, %v5069_v4  ;;  %v2564_v58 = vadd.f32 %v2563_v59, %v2562_v3 }
 0x900   :  { %v5051_v15 = vadd.f32 %v5050_v45, %v5049_v28 }
 0x901   :  { %v5026_v38 = vrot.slane %v5025_v22, 1  ;;  %v5072_v57 = vrot.slane %v5071_v23, 2  ;;  %v2565_v0 = vrot.slane %v2564_v58, 4 }
 0x903   :  { %v5027_v20 = vadd.f32 %v5026_v38, %v5025_v22  ;;  %v5073_v35 = vadd.f32 %v5072_v57, %v5071_v23  ;;  %v2566_v25 = vadd.f32 %v2565_v0, %v2564_v58 }
 0x905   :  { %v5076_v62 = vsel %vm2571_vm5, %v5003_v6, %v5027_v20  ;;  %v5074_v2 = vrot.slane %v5073_v35, 1  ;;  %v2567_v10 = vrot.slane %v2566_v25, 2 }
 0x906   :  { %v5077_v40 = vsel %vm2573_vm1, %v5076_v62, %v5051_v15 }
 0x907   :  { %v5075_v29 = vadd.f32 %v5074_v2, %v5073_v35  ;;  %v2568_v31 = vadd.f32 %v2567_v10, %v2566_v25 }
 0x909   :  { %v2569_v61 = vrot.slane %v2568_v31, 1  ;;  %v5078_v7 = vsel %vm2575_vm7, %v5077_v40, %v5075_v29 }
 0x90a   :  { %v5080_v14 = vrot.slane %v5078_v7, 7 }
 0x90b   :  { %v2570_v8 = vadd.f32 %v2569_v61, %v2568_v31 }
 0x90d   :  { %v2576_v49 = vsel %vm2575_vm7, %v2574_v54, %v2570_v8 }
 0x90e   :  { %v5083_v26 = vsel %vm9442_vm12, %v2576_v49, %v5080_v14 }
 0x90f   :  { %v5091_v52 = vadd.f32 %v5399_v48, %v5083_v26 }
 0x911   :  { %5093 = vst.msk [vmem:[#allocation3] sm:$0x3] %vm5092_vm11, %v5091_v52 }
 0x912   :  { %6058 = shalt.err (!%p6055_p4)
}
 0x913   :  { %s6059_s7 = scalar_lea.hbm %s9101_s8, 32 }
 0x914   :  { %p6060_p5 = scmp.ne.s32.totalorder %s9101_s8, %s6059_s7  ;;  %p6063_p6 = scmp.lt.u32.totalorder %s6059_s7, %s9101_s8 }
 0x916   :  { %p6065_p7 = pnand %p6063_p6, %p6060_p5 }
 0x918   :  { %6068 = shalt.err (!%p6065_p7)
}
 0x919   :  { %5103 = dma.vmem_to_hbm [thread:$0]  %s5101_s5, 32, %s9101_s8, [#allocation4]  }
 0x91a   :  { %6069 = dma.done.wait [#allocation4], 32  }
 0x91b   :  { %6070 = vsyncadd [#allocation4], 4294967264 }
 0x91c   :  { %5107 = vsyncpa [#allocation4], 1 }

</bundles_post_ra>
